<compile_context>
chip_gen: v5e
topology: v5e:2x2
jax: 0.10.0
libtpu: 0.0.40
codegen_flags: <defaults>
</compile_context>

<pallas_src>
import functools

import jax
import jax.numpy as jnp
from jax import lax
from jax.experimental import pallas as pl
from jax.experimental.pallas import tpu as pltpu

F32 = jnp.float32
BF16 = jnp.bfloat16
NEG_INF = -1e30


# ----------------------------------------------------------------------------
# Configuration (small, deterministic synthetic FalconH1Config)
# ----------------------------------------------------------------------------
class Cfg:
    hidden_size = 64
    num_attention_heads = 2
    num_key_value_heads = 2
    head_dim = 32
    rope_theta = 100000.0
    rms_norm_eps = 1e-5
    intermediate_size = 128
    # Mamba2 mixer
    mamba_d_ssm = 64
    mamba_d_state = 16
    mamba_d_conv = 4
    mamba_n_groups = 1
    mamba_n_heads = 4
    mamba_d_head = 16
    # FalconH1 multipliers
    key_multiplier = 0.5
    attention_in_multiplier = 1.1
    attention_out_multiplier = 0.9
    ssm_in_multiplier = 1.2
    ssm_out_multiplier = 0.8
    ssm_multipliers = (1.0, 0.9, 1.1, 0.95, 1.05)   # z, x, B, C, dt
    mlp_multipliers = (1.2, 0.7)                    # gate, down


cfg = Cfg()
H = cfg.hidden_size
NH = cfg.num_attention_heads
NKV = cfg.num_key_value_heads
HD = cfg.head_dim
HALF = HD // 2
Q_SIZE = NH * HD                      # 64
KV_SIZE = NKV * HD                    # 64
QKV_SIZE = Q_SIZE + 2 * KV_SIZE       # 192
I_SIZE = cfg.intermediate_size        # 128
D_SSM = cfg.mamba_d_ssm               # 64
S_SSM = cfg.mamba_d_state             # 16
K_CONV = cfg.mamba_d_conv             # 4
G = cfg.mamba_n_groups
NH_M = cfg.mamba_n_heads              # 4
D_HEAD = cfg.mamba_d_head             # 16
GS = G * S_SSM                        # 16
CONV_DIM = D_SSM + 2 * GS             # 96
D_IN_PROJ = 2 * D_SSM + 2 * GS + NH_M  # 164
EPS = cfg.rms_norm_eps

# fused / lane-dense layout constants
ZX_PAD = 256                          # D_IN_PROJ padded to a lane-dense width
ZX_OFF = 256                          # zx section start inside the fused weight
W_FUSED = ZX_OFF + ZX_PAD             # 512
SEQ_TILE = 256


def _round_up(v, m):
    return (v + m - 1) // m * m


# ----------------------------------------------------------------------------
# Kernel 1: fused RMSNorm + (qkv|in_proj) matmul + neox RoPE
#           (all scalar multipliers / mup / norm weights pre-folded into w)
# ----------------------------------------------------------------------------
def _prologue_kernel(hs_ref, rope_ref, wf_ref, q_ref, kv_ref, zx_ref, *, eps):
    x = hs_ref[...]
    var = jnp.mean(x * x, axis=-1, keepdims=True)
    xn = (x * lax.rsqrt(var + eps)).astype(BF16)

    fused = jnp.dot(xn, wf_ref[...], preferred_element_type=jnp.float32)

    cos = rope_ref[:, :HALF]
    sin = rope_ref[:, HALF:]

    def rot(base):
        x1 = fused[:, base:base + HALF]
        x2 = fused[:, base + HALF:base + HD]
        return jnp.concatenate([x1 * cos - x2 * sin, x2 * cos + x1 * sin],
                               axis=-1)

    # single full-width stores (no per-head masked partial stores)
    q_ref[...] = jnp.concatenate([rot(h * HD) for h in range(NH)], axis=-1)
    kv_ref[...] = jnp.concatenate(
        [rot(Q_SIZE + h * HD) for h in range(NKV)]
        + [fused[:, Q_SIZE + KV_SIZE:QKV_SIZE]], axis=-1)
    zx_ref[...] = fused[:, ZX_OFF:]


# ----------------------------------------------------------------------------
# Kernel 2: flash-style causal attention over a triangular 1-D grid
# ----------------------------------------------------------------------------
def _flash_attn_kernel(qi_ref, ki_ref, q_ref, kv_ref, o_ref,
                       m_sc, l_sc, acc_sc, *, scale, tq, tk):
    s_idx = pl.program_id(0)
    qi = qi_ref[s_idx]
    ki = ki_ref[s_idx]

    @pl.when(ki == 0)
    def _init():
        m_sc[...] = jnp.full(m_sc.shape, NEG_INF, jnp.float32)
        l_sc[...] = jnp.zeros(l_sc.shape, jnp.float32)
        acc_sc[...] = jnp.zeros(acc_sc.shape, jnp.float32)

    rows = qi * tq + lax.broadcasted_iota(jnp.int32, (tq, tk), 0)
    cols = ki * tk + lax.broadcasted_iota(jnp.int32, (tq, tk), 1)
    causal = cols <= rows

    for h in range(NH):
        kvh = (h * NKV) // NH
        q = q_ref[:, h * HD:(h + 1) * HD]
        k = kv_ref[:, kvh * HD:(kvh + 1) * HD]
        v = kv_ref[:, KV_SIZE + kvh * HD:KV_SIZE + (kvh + 1) * HD]
        s = jnp.einsum('qd,kd->qk', q, k,
                       preferred_element_type=jnp.float32) * scale
        s = jnp.where(causal, s, NEG_INF)
        r0, r1 = h * tq, (h + 1) * tq
        m_prev = m_sc[r0:r1, :]
        m_new = jnp.maximum(m_prev, jnp.max(s, axis=-1, keepdims=True))
        alpha = jnp.exp(m_prev - m_new)
        p = jnp.exp(s - m_new)
        l_sc[r0:r1, :] = alpha * l_sc[r0:r1, :] + jnp.sum(p, axis=-1,
                                                          keepdims=True)
        acc_sc[r0:r1, :] = alpha * acc_sc[r0:r1, :] + jnp.dot(
            p, v, preferred_element_type=jnp.float32)
        m_sc[r0:r1, :] = m_new

    @pl.when(ki == qi)                       # last live block of this q row
    def _finalize():
        outs = []
        for h in range(NH):
            r0, r1 = h * tq, (h + 1) * tq
            outs.append(acc_sc[r0:r1, :] *
                        pl.reciprocal(l_sc[r0:r1, :], approx=True))
        o_ref[...] = jnp.concatenate(outs, axis=-1)


# ----------------------------------------------------------------------------
# Kernel 3: chunked Mamba2 mixer (conv1d + SiLU + discretization + scan +
#           gated RMSNorm + out_proj), conv tail & SSM state in VMEM scratch.
# ----------------------------------------------------------------------------
def _mamba_kernel(zx_ref, cw_ref, cb_ref, aneg_ref, dtb_ref, dfull_ref,
                  wout_ref, o_ref, tail_ref, state_ref, *, chunk, eps):
    c = pl.program_id(0)
    L = chunk

    @pl.when(c == 0)
    def _init():
        tail_ref[...] = jnp.zeros((K_CONV - 1, CONV_DIM), jnp.float32)
        state_ref[...] = jnp.zeros((S_SSM, D_SSM), jnp.float32)

    zx = zx_ref[...]
    z = zx[:, :D_SSM]
    xbc_in = zx[:, D_SSM:D_SSM + CONV_DIM]
    dt_raw = zx[:, D_SSM + CONV_DIM:D_SSM + CONV_DIM + NH_M]

    state_old = state_ref[...]                       # [S, P]  (read before write)
    tail_old = tail_ref[...]                         # [K-1, CONV_DIM]
    tail_ref[...] = xbc_in[L - (K_CONV - 1):, :]     # carry for next chunk

    # ---- causal depthwise conv1d (+bias) + SiLU with carried left context ---
    xpad = jnp.concatenate([tail_old, xbc_in], axis=0)      # [L+K-1, CONV_DIM]
    acc = cb_ref[...]
    for k in range(K_CONV):
        acc = acc + xpad[k:k + L, :] * cw_ref[k:k + 1, :]
    xbc = acc * jax.nn.sigmoid(acc)
    x_c = xbc[:, :D_SSM]
    b_c = xbc[:, D_SSM:D_SSM + GS]
    c_c = xbc[:, D_SSM + GS:]

    # ---- discretization (softplus / exp stay on the EUP) --------------------
    dt_in = dt_raw + dtb_ref[...]
    dt_sp = jnp.maximum(dt_in, 0.0) + jnp.log(1.0 + jnp.exp(-jnp.abs(dt_in)))
    dta = dt_sp * aneg_ref[...]                              # [L, NH_M], <= 0

    r_i = lax.broadcasted_iota(jnp.int32, (L, L), 0)
    c_i = lax.broadcasted_iota(jnp.int32, (L, L), 1)
    lower = c_i <= r_i
    lt = lower.astype(jnp.float32)
    cums = jnp.dot(lt, dta, preferred_element_type=jnp.float32)   # incl. cumsum
    total = jnp.sum(dta, axis=0, keepdims=True)                   # [1, NH_M]

    lane_dh = jnp.ones((1, D_HEAD), jnp.float32)

    def expand(v):      # [rows, NH_M] -> [rows, D_SSM] (head -> channel)
        return jnp.concatenate([v[:, h:h + 1] * lane_dh for h in range(NH_M)],
                               axis=-1)

    u = expand(dt_sp) * x_c                          # dt * x            [L, P]
    excol = expand(jnp.exp(cums))                    # decay from chunk start
    decol = expand(jnp.exp(total - cums))            # decay to chunk end
    tot_row = expand(jnp.exp(total))                 # whole-chunk decay [1, P]

    # ---- intra-chunk quadratic form (per head) -------------------------------
    g = jnp.einsum('ts,us->tu', c_c, b_c, preferred_element_type=jnp.float32)
    ones8 = jnp.full((L, 8), 0.125, jnp.float32)
    lane8 = jnp.ones((1, 8), jnp.float32)
    y_parts = []
    for h in range(NH_M):
        col = cums[:, h:h + 1]                                    # [L, 1]
        # rows[t, s] = cums[s, h]: K=8 outer product (no O(L^3) broadcast matmul)
        rows = jnp.einsum('td,sd->ts', ones8, col * lane8,
                          preferred_element_type=jnp.float32)
        diff = jnp.where(lower, col - rows, NEG_INF)
        m_h = g * jnp.exp(diff)
        y_parts.append(jnp.dot(m_h, u[:, h * D_HEAD:(h + 1) * D_HEAD],
                               preferred_element_type=jnp.float32))

    # ---- inter-chunk contribution from the carried state (N = 64 matmul) -----
    y_inter = excol * jnp.dot(c_c, state_old,
                              preferred_element_type=jnp.float32)

    # ---- state update (all heads at once; state layout [d_state, d_ssm]) -----
    u_dec = u * decol
    su_rows = [jnp.sum(u_dec * b_c[:, n:n + 1], axis=0, keepdims=True)
               for n in range(S_SSM)]
    state_ref[...] = tot_row * state_old + jnp.concatenate(su_rows, axis=0)

    y = jnp.concatenate(y_parts, axis=-1) + y_inter + dfull_ref[...] * x_c

    # ---- gated RMSNorm (gate before norm; norm weight folded into wout) ------
    yg = y * (z * jax.nn.sigmoid(z))
    var = jnp.mean(yg * yg, axis=-1, keepdims=True)
    yn = (yg * lax.rsqrt(var + eps)).astype(BF16)
    o_ref[...] = jnp.dot(yn, wout_ref[...], preferred_element_type=jnp.float32)


# ----------------------------------------------------------------------------
# Kernel 4: o_proj + branch combine + residual + pre-FF RMSNorm + MLP
# ----------------------------------------------------------------------------
def _epilogue_kernel(attn_ref, ssm_ref, res_ref, wo_ref, wgu_ref, wd_ref,
                     o_ref, *, eps):
    attn_h = jnp.dot(attn_ref[...].astype(BF16), wo_ref[...],
                     preferred_element_type=jnp.float32)
    hs = attn_h + ssm_ref[...] + res_ref[...]
    var = jnp.mean(hs * hs, axis=-1, keepdims=True)
    hn = (hs * lax.rsqrt(var + eps)).astype(BF16)
    gu = jnp.dot(hn, wgu_ref[...], preferred_element_type=jnp.float32)
    gate = gu[:, :I_SIZE]
    up = gu[:, I_SIZE:]
    act = (gate * jax.nn.sigmoid(gate) * up).astype(BF16)
    mlp = jnp.dot(act, wd_ref[...], preferred_element_type=jnp.float32)
    o_ref[...] = hs + mlp


# ----------------------------------------------------------------------------
# Parameters: all FalconH1 scalar multipliers / mup / norm weights are folded
# into the projection weights once at init (exact — the MXU eats them for free)
# ----------------------------------------------------------------------------
def make_mup_vector():
    m = cfg.ssm_multipliers
    v = jnp.ones((D_IN_PROJ,), F32)
    v = v.at[:D_SSM].mul(m[0])                               # Z
    v = v.at[D_SSM:2 * D_SSM].mul(m[1])                      # X
    v = v.at[2 * D_SSM:2 * D_SSM + GS].mul(m[2])              # B
    v = v.at[2 * D_SSM + GS:2 * D_SSM + 2 * GS].mul(m[3])     # C
    v = v.at[2 * D_SSM + 2 * GS:].mul(m[4])                   # dt
    return v


def init_params(key):
    ks = jax.random.split(key, 12)

    def w(k, shape, scale=0.05):
        return jax.random.normal(k, shape, F32) * scale

    inv_freq = (1.0 / (cfg.rope_theta **
                       (jnp.arange(0, HALF, dtype=F32) * 2.0 / HD)))[None, :]

    input_ln = jnp.ones((H,), F32)
    pre_ff_ln = jnp.ones((H,), F32)
    mamba_norm = jnp.ones((D_SSM,), F32)

    w_qkv = w(ks[0], (H, QKV_SIZE))
    w_o = w(ks[1], (Q_SIZE, H))
    w_in = w(ks[2], (H, D_IN_PROJ))
    w_out_m = w(ks[7], (D_SSM, H))
    w_gate_up = w(ks[8], (H, 2 * I_SIZE))
    w_down = w(ks[9], (I_SIZE, H))

    # fold attention_in / key multipliers + input_ln into the qkv columns/rows
    qkv_col = jnp.concatenate([
        jnp.full((Q_SIZE,), cfg.attention_in_multiplier, F32),
        jnp.full((KV_SIZE,), cfg.attention_in_multiplier * cfg.key_multiplier,
                 F32),
        jnp.full((KV_SIZE,), cfg.attention_in_multiplier, F32)])
    w_qkv_f = w_qkv * qkv_col[None, :] * input_ln[:, None]
    # fold ssm_in multiplier + mup vector + input_ln into in_proj
    w_in_f = (w_in * (cfg.ssm_in_multiplier * make_mup_vector())[None, :]
              * input_ln[:, None])

    # one fused, lane-padded [H, 512] weight:  [qkv | pad | zxbcdt | pad]
    w_fused = jnp.zeros((H, W_FUSED), F32)
    w_fused = w_fused.at[:, :QKV_SIZE].set(w_qkv_f)
    w_fused = w_fused.at[:, ZX_OFF:ZX_OFF + D_IN_PROJ].set(w_in_f)

    w_o_f = w_o * cfg.attention_out_multiplier
    w_out_m_f = w_out_m * mamba_norm[:, None] * cfg.ssm_out_multiplier
    gu_col = jnp.concatenate([jnp.full((I_SIZE,), cfg.mlp_multipliers[0], F32),
                              jnp.ones((I_SIZE,), F32)])
    w_gate_up_f = w_gate_up * gu_col[None, :] * pre_ff_ln[:, None]
    w_down_f = w_down * cfg.mlp_multipliers[1]

    return {
        'inv_freq': inv_freq,
        'w_fused': w_fused.astype(BF16),
        'w_o': w_o_f.astype(BF16),
        'w_out_mamba': w_out_m_f.astype(BF16),
        'w_gate_up': w_gate_up_f.astype(BF16),
        'w_down': w_down_f.astype(BF16),
        # mamba (non-folded) params
        'conv_w': w(ks[3], (K_CONV, CONV_DIM), 0.2),
        'conv_b': w(ks[4], (1, CONV_DIM), 0.1),
        'A_neg': -jnp.arange(1, NH_M + 1, dtype=F32)[None, :],   # -exp(A_log)
        'dt_bias': w(ks[6], (1, NH_M), 0.5),
        'D_full': jnp.repeat(jnp.ones((NH_M,), F32) + w(ks[5], (NH_M,), 0.05),
                             D_HEAD)[None, :],
    }


# ----------------------------------------------------------------------------
# Forward pass (4 pallas_calls)
# ----------------------------------------------------------------------------
def falcon_h1_parallel_hybrid(params, positions, hidden_states):
    t = hidden_states.shape[0]
    t_pad = _round_up(t, 8)
    if t_pad > SEQ_TILE:
        t_pad = _round_up(t_pad, SEQ_TILE)
    tile = min(t_pad, SEQ_TILE)
    nt = t_pad // tile
    pad = t_pad - t

    hs = jnp.pad(hidden_states.astype(F32), ((0, pad), (0, 0)))
    pos = jnp.pad(positions.astype(F32), ((0, pad),))
    ang = pos[:, None] * params['inv_freq']                      # [t_pad, HALF]
    rope = jnp.concatenate([jnp.cos(ang), jnp.sin(ang)], axis=-1)

    def row_spec(last):
        return pl.BlockSpec((tile, last), lambda i: (i, 0))

    def full_spec(a, b):
        return pl.BlockSpec((a, b), lambda *_: (0, 0))           # VMEM-resident

    # ------------------- K1: fused prologue ---------------------------------
    q, kv, zx = pl.pallas_call(
        functools.partial(_prologue_kernel, eps=EPS),
        grid=(nt,),
        in_specs=[row_spec(H), row_spec(2 * HALF), full_spec(H, W_FUSED)],
        out_specs=[row_spec(Q_SIZE), row_spec(2 * KV_SIZE), row_spec(ZX_PAD)],
        out_shape=[jax.ShapeDtypeStruct((t_pad, Q_SIZE), F32),
                   jax.ShapeDtypeStruct((t_pad, 2 * KV_SIZE), F32),
                   jax.ShapeDtypeStruct((t_pad, ZX_PAD), F32)],
        compiler_params=pltpu.CompilerParams(
            dimension_semantics=("parallel",)),
    )(hs, rope, params['w_fused'])

    # ------------------- K2: flash attention (triangular grid) --------------
    steps = [(qi, ki) for qi in range(nt) for ki in range(qi + 1)]
    qi_arr = jnp.array([s[0] for s in steps], jnp.int32)
    ki_arr = jnp.array([s[1] for s in steps], jnp.int32)
    attn = pl.pallas_call(
        functools.partial(_flash_attn_kernel, scale=HD ** -0.5,
                          tq=tile, tk=tile),
        grid_spec=pltpu.PrefetchScalarGridSpec(
            num_scalar_prefetch=2,
            grid=(len(steps),),
            in_specs=[pl.BlockSpec((tile, Q_SIZE),
                                   lambda s, qa, ka: (qa[s], 0)),
                      pl.BlockSpec((tile, 2 * KV_SIZE),
                                   lambda s, qa, ka: (ka[s], 0))],
            out_specs=pl.BlockSpec((tile, Q_SIZE),
                                   lambda s, qa, ka: (qa[s], 0)),
            scratch_shapes=[pltpu.VMEM((NH * tile, 1), F32),
                            pltpu.VMEM((NH * tile, 1), F32),
                            pltpu.VMEM((NH * tile, HD), F32)]),
        out_shape=jax.ShapeDtypeStruct((t_pad, Q_SIZE), F32),
        compiler_params=pltpu.CompilerParams(
            dimension_semantics=("arbitrary",)),
    )(qi_arr, ki_arr, q, kv)

    # ------------------- K3: chunked Mamba2 mixer ----------------------------
    # TODO(synk): add a head-parallel grid axis (v7x 2-TC split) on top of the
    # chunk axis; the combine (gated norm + out_proj) would need its own step.
    ssm = pl.pallas_call(
        functools.partial(_mamba_kernel, chunk=tile, eps=EPS),
        grid=(nt,),
        in_specs=[row_spec(ZX_PAD),
                  full_spec(K_CONV, CONV_DIM), full_spec(1, CONV_DIM),
                  full_spec(1, NH_M), full_spec(1, NH_M),
                  full_spec(1, D_SSM), full_spec(D_SSM, H)],
        out_specs=row_spec(H),
        out_shape=jax.ShapeDtypeStruct((t_pad, H), F32),
        scratch_shapes=[pltpu.VMEM((K_CONV - 1, CONV_DIM), F32),
                        pltpu.VMEM((S_SSM, D_SSM), F32)],
        compiler_params=pltpu.CompilerParams(
            dimension_semantics=("arbitrary",),
            vmem_limit_bytes=48 * 1024 * 1024),
    )(zx, params['conv_w'], params['conv_b'], params['A_neg'],
      params['dt_bias'], params['D_full'], params['w_out_mamba'])

    # ------------------- K4: epilogue ----------------------------------------
    out = pl.pallas_call(
        functools.partial(_epilogue_kernel, eps=EPS),
        grid=(nt,),
        in_specs=[row_spec(Q_SIZE), row_spec(H), row_spec(H),
                  full_spec(Q_SIZE, H), full_spec(H, 2 * I_SIZE),
                  full_spec(I_SIZE, H)],
        out_specs=row_spec(H),
        out_shape=jax.ShapeDtypeStruct((t_pad, H), F32),
        compiler_params=pltpu.CompilerParams(
            dimension_semantics=("parallel",)),
    )(attn, ssm, hs, params['w_o'], params['w_gate_up'], params['w_down'])

    return out[:t]


# TODO(synk): vLLM paged KV-cache / Mamba state-cache update paths and
# tensor-parallel sharding are runtime plumbing and are not modeled; this
# implements the single-sequence prefill math of the layer.

if __name__ == "__main__":
    T = 8
    key = jax.random.PRNGKey(0)
    k_param, k_x = jax.random.split(key)
    params = init_params(k_param)
    hidden_states = jax.random.normal(k_x, (T, H), F32)
    positions = jnp.arange(T, dtype=jnp.int32)

    out = jax.jit(falcon_h1_parallel_hybrid)(params, positions, hidden_states)
    out = jax.block_until_ready(out)
    assert out.shape == (T, H)
    assert bool(jnp.all(jnp.isfinite(out)))
    print("KERNEL_OK")
</pallas_src>

<mosaic_0001>
module attributes {stable_mosaic.version = 11 : i64} {
  func.func @_prologue_kernel(%arg0: i32, %arg1: memref<8x64xf32, #tpu.memory_space<vmem>>, %arg2: memref<8x32xf32, #tpu.memory_space<vmem>>, %arg3: memref<64x512xbf16, #tpu.memory_space<vmem>>, %arg4: memref<8x64xf32, #tpu.memory_space<vmem>>, %arg5: memref<8x128xf32, #tpu.memory_space<vmem>>, %arg6: memref<8x256xf32, #tpu.memory_space<vmem>>) attributes {dimension_semantics = [#tpu.dimension_semantics<parallel>], iteration_bounds = array<i64: 1>, scalar_prefetch = 0 : i64, scratch_operands = 0 : i64, tpu.core_type = #tpu.core_type<tc>, window_params = [{transform_indices = @transform_0, window_bounds = array<i64: 8, 64>}, {transform_indices = @transform_1, window_bounds = array<i64: 8, 32>}, {pipeline_mode = #tpu.pipeline_mode<synchronous>, transform_indices = @transform_2, window_bounds = array<i64: 64, 512>}, {transform_indices = @transform_3, window_bounds = array<i64: 8, 64>}, {transform_indices = @transform_4, window_bounds = array<i64: 8, 128>}, {transform_indices = @transform_5, window_bounds = array<i64: 8, 256>}]} {
    %c0 = arith.constant 0 : index
    %c0_0 = arith.constant 0 : index
    %0 = vector.load %arg1[%c0, %c0_0] : memref<8x64xf32, #tpu.memory_space<vmem>>, vector<8x64xf32>
    %1 = arith.mulf %0, %0 : vector<8x64xf32>
    %cst = arith.constant dense<0.000000e+00> : vector<8xf32>
    %2 = vector.multi_reduction <add>, %1, %cst [1] : vector<8x64xf32> to vector<8xf32>
    %3 = vector.shape_cast %2 : vector<8xf32> to vector<8x1xf32>
    %cst_1 = arith.constant 6.400000e+01 : f32
    %4 = vector.broadcast %cst_1 : f32 to vector<8x1xf32>
    %5 = arith.divf %3, %4 : vector<8x1xf32>
    %cst_2 = arith.constant 9.99999974E-6 : f32
    %6 = vector.broadcast %cst_2 : f32 to vector<8x1xf32>
    %7 = arith.addf %5, %6 : vector<8x1xf32>
    %8 = math.rsqrt %7 : vector<8x1xf32>
    %9 = vector.broadcast %8 : vector<8x1xf32> to vector<8x64xf32>
    %10 = arith.mulf %0, %9 : vector<8x64xf32>
    %11 = arith.truncf %10 : vector<8x64xf32> to vector<8x64xbf16>
    %c0_3 = arith.constant 0 : index
    %c0_4 = arith.constant 0 : index
    %12 = vector.load %arg3[%c0_3, %c0_4] : memref<64x512xbf16, #tpu.memory_space<vmem>>, vector<64x512xbf16>
    %cst_5 = arith.constant dense<0.000000e+00> : vector<8x512xf32>
    %13 = tpu.matmul %11, %12, %cst_5 {dimension_numbers = #tpu.dot_dimension_numbers<[1], [0], [0], [1], [0, 0, 1, 1], [], []>} : vector<8x64xbf16>, vector<64x512xbf16>, vector<8x512xf32> -> vector<8x512xf32>
    %c0_6 = arith.constant 0 : index
    %c0_7 = arith.constant 0 : index
    %14 = vector.load %arg2[%c0_6, %c0_7] : memref<8x32xf32, #tpu.memory_space<vmem>>, vector<8x16xf32>
    %c0_8 = arith.constant 0 : index
    %c16 = arith.constant 16 : index
    %15 = vector.load %arg2[%c0_8, %c16] : memref<8x32xf32, #tpu.memory_space<vmem>>, vector<8x16xf32>
    %16 = vector.extract_strided_slice %13 {offsets = [0, 0], sizes = [8, 16], strides = [1, 1]} : vector<8x512xf32> to vector<8x16xf32>
    %17 = vector.extract_strided_slice %13 {offsets = [0, 16], sizes = [8, 16], strides = [1, 1]} : vector<8x512xf32> to vector<8x16xf32>
    %18 = arith.mulf %16, %14 : vector<8x16xf32>
    %19 = arith.mulf %17, %15 : vector<8x16xf32>
    %20 = arith.subf %18, %19 : vector<8x16xf32>
    %21 = arith.mulf %17, %14 : vector<8x16xf32>
    %22 = arith.mulf %16, %15 : vector<8x16xf32>
    %23 = arith.addf %21, %22 : vector<8x16xf32>
    %24 = tpu.concatenate %20, %23 in 1 : vector<8x16xf32>, vector<8x16xf32> -> vector<8x32xf32>
    %25 = vector.extract_strided_slice %13 {offsets = [0, 32], sizes = [8, 16], strides = [1, 1]} : vector<8x512xf32> to vector<8x16xf32>
    %26 = vector.extract_strided_slice %13 {offsets = [0, 48], sizes = [8, 16], strides = [1, 1]} : vector<8x512xf32> to vector<8x16xf32>
    %27 = arith.mulf %25, %14 : vector<8x16xf32>
    %28 = arith.mulf %26, %15 : vector<8x16xf32>
    %29 = arith.subf %27, %28 : vector<8x16xf32>
    %30 = arith.mulf %26, %14 : vector<8x16xf32>
    %31 = arith.mulf %25, %15 : vector<8x16xf32>
    %32 = arith.addf %30, %31 : vector<8x16xf32>
    %33 = tpu.concatenate %29, %32 in 1 : vector<8x16xf32>, vector<8x16xf32> -> vector<8x32xf32>
    %34 = tpu.concatenate %24, %33 in 1 : vector<8x32xf32>, vector<8x32xf32> -> vector<8x64xf32>
    %c0_9 = arith.constant 0 : index
    %c0_10 = arith.constant 0 : index
    %35 = vector.load %arg4[%c0_9, %c0_10] : memref<8x64xf32, #tpu.memory_space<vmem>>, vector<8x64xf32>
    tpu.vector_store %arg4[%c0_9, %c0_10], %34 {strides = array<i32>} : memref<8x64xf32, #tpu.memory_space<vmem>>, vector<8x64xf32>,
    %36 = vector.extract_strided_slice %13 {offsets = [0, 64], sizes = [8, 16], strides = [1, 1]} : vector<8x512xf32> to vector<8x16xf32>
    %37 = vector.extract_strided_slice %13 {offsets = [0, 80], sizes = [8, 16], strides = [1, 1]} : vector<8x512xf32> to vector<8x16xf32>
    %38 = arith.mulf %36, %14 : vector<8x16xf32>
    %39 = arith.mulf %37, %15 : vector<8x16xf32>
    %40 = arith.subf %38, %39 : vector<8x16xf32>
    %41 = arith.mulf %37, %14 : vector<8x16xf32>
    %42 = arith.mulf %36, %15 : vector<8x16xf32>
    %43 = arith.addf %41, %42 : vector<8x16xf32>
    %44 = tpu.concatenate %40, %43 in 1 : vector<8x16xf32>, vector<8x16xf32> -> vector<8x32xf32>
    %45 = vector.extract_strided_slice %13 {offsets = [0, 96], sizes = [8, 16], strides = [1, 1]} : vector<8x512xf32> to vector<8x16xf32>
    %46 = vector.extract_strided_slice %13 {offsets = [0, 112], sizes = [8, 16], strides = [1, 1]} : vector<8x512xf32> to vector<8x16xf32>
    %47 = arith.mulf %45, %14 : vector<8x16xf32>
    %48 = arith.mulf %46, %15 : vector<8x16xf32>
    %49 = arith.subf %47, %48 : vector<8x16xf32>
    %50 = arith.mulf %46, %14 : vector<8x16xf32>
    %51 = arith.mulf %45, %15 : vector<8x16xf32>
    %52 = arith.addf %50, %51 : vector<8x16xf32>
    %53 = tpu.concatenate %49, %52 in 1 : vector<8x16xf32>, vector<8x16xf32> -> vector<8x32xf32>
    %54 = vector.extract_strided_slice %13 {offsets = [0, 128], sizes = [8, 64], strides = [1, 1]} : vector<8x512xf32> to vector<8x64xf32>
    %55 = tpu.concatenate %44, %53, %54 in 1 : vector<8x32xf32>, vector<8x32xf32>, vector<8x64xf32> -> vector<8x128xf32>
    %c0_11 = arith.constant 0 : index
    %c0_12 = arith.constant 0 : index
    %56 = vector.load %arg5[%c0_11, %c0_12] : memref<8x128xf32, #tpu.memory_space<vmem>>, vector<8x128xf32>
    tpu.vector_store %arg5[%c0_11, %c0_12], %55 {strides = array<i32>} : memref<8x128xf32, #tpu.memory_space<vmem>>, vector<8x128xf32>,
    %57 = vector.extract_strided_slice %13 {offsets = [0, 256], sizes = [8, 256], strides = [1, 1]} : vector<8x512xf32> to vector<8x256xf32>
    %c0_13 = arith.constant 0 : index
    %c0_14 = arith.constant 0 : index
    %58 = vector.load %arg6[%c0_13, %c0_14] : memref<8x256xf32, #tpu.memory_space<vmem>>, vector<8x256xf32>
    tpu.vector_store %arg6[%c0_13, %c0_14], %57 {strides = array<i32>} : memref<8x256xf32, #tpu.memory_space<vmem>>, vector<8x256xf32>,
    return
  }
  func.func @transform_0(%arg0: i32) -> (i32, i32) {
    %c0_i32 = arith.constant 0 : i32
    %c0_i32_0 = arith.constant 0 : i32
    return %arg0, %c0_i32 : i32, i32
  }
  func.func @transform_1(%arg0: i32) -> (i32, i32) {
    %c0_i32 = arith.constant 0 : i32
    %c0_i32_0 = arith.constant 0 : i32
    return %arg0, %c0_i32 : i32, i32
  }
  func.func @transform_2(%arg0: i32) -> (i32, i32) {
    %c0_i32 = arith.constant 0 : i32
    %c0_i32_0 = arith.constant 0 : i32
    %c0_i32_1 = arith.constant 0 : i32
    return %c0_i32, %c0_i32_0 : i32, i32
  }
  func.func @transform_3(%arg0: i32) -> (i32, i32) {
    %c0_i32 = arith.constant 0 : i32
    %c0_i32_0 = arith.constant 0 : i32
    return %arg0, %c0_i32 : i32, i32
  }
  func.func @transform_4(%arg0: i32) -> (i32, i32) {
    %c0_i32 = arith.constant 0 : i32
    %c0_i32_0 = arith.constant 0 : i32
    return %arg0, %c0_i32 : i32, i32
  }
  func.func @transform_5(%arg0: i32) -> (i32, i32) {
    %c0_i32 = arith.constant 0 : i32
    %c0_i32_0 = arith.constant 0 : i32
    return %arg0, %c0_i32 : i32, i32
  }
}

module attributes {stable_mosaic.version = 11 : i64} {
  func.func @_flash_attn_kernel(%arg0: i32, %arg1: memref<1xi32, #tpu.memory_space<smem>>, %arg2: memref<1xi32, #tpu.memory_space<smem>>, %arg3: memref<8x64xf32, #tpu.memory_space<vmem>>, %arg4: memref<8x128xf32, #tpu.memory_space<vmem>>, %arg5: memref<8x64xf32, #tpu.memory_space<vmem>>, %arg6: memref<16x1xf32, #tpu.memory_space<vmem>>, %arg7: memref<16x1xf32, #tpu.memory_space<vmem>>, %arg8: memref<16x32xf32, #tpu.memory_space<vmem>>) attributes {dimension_semantics = [#tpu.dimension_semantics<arbitrary>], iteration_bounds = array<i64: 1>, scalar_prefetch = 2 : i64, scratch_operands = 3 : i64, tpu.core_type = #tpu.core_type<tc>, window_params = [{transform_indices = @transform_0, window_bounds = array<i64: 8, 64>}, {transform_indices = @transform_1, window_bounds = array<i64: 8, 128>}, {transform_indices = @transform_2, window_bounds = array<i64: 8, 64>}]} {
    %0 = arith.index_cast %arg0 : i32 to index
    %1 = memref.load %arg1[%0] : memref<1xi32, #tpu.memory_space<smem>>
    %2 = arith.index_cast %arg0 : i32 to index
    %3 = memref.load %arg2[%2] : memref<1xi32, #tpu.memory_space<smem>>
    %c0_i32 = arith.constant 0 : i32
    %4 = arith.cmpi eq, %3, %c0_i32 : i32
    %5 = arith.extui %4 : i1 to i32
    %c0_i32_0 = arith.constant 0 : i32
    %6 = arith.cmpi ne, %5, %c0_i32_0 : i32
    scf.if %6 {
      %cst_45 = arith.constant -1.000000e+30 : f32
      %79 = vector.broadcast %cst_45 : f32 to vector<16x1xf32>
      %c0_46 = arith.constant 0 : index
      %c0_47 = arith.constant 0 : index
      %80 = vector.load %arg6[%c0_46, %c0_47] : memref<16x1xf32, #tpu.memory_space<vmem>>, vector<16x1xf32>
      tpu.vector_store %arg6[%c0_46, %c0_47], %79 {strides = array<i32>} : memref<16x1xf32, #tpu.memory_space<vmem>>, vector<16x1xf32>,
      %cst_48 = arith.constant 0.000000e+00 : f32
      %81 = vector.broadcast %cst_48 : f32 to vector<16x1xf32>
      %c0_49 = arith.constant 0 : index
      %c0_50 = arith.constant 0 : index
      %82 = vector.load %arg7[%c0_49, %c0_50] : memref<16x1xf32, #tpu.memory_space<vmem>>, vector<16x1xf32>
      tpu.vector_store %arg7[%c0_49, %c0_50], %81 {strides = array<i32>} : memref<16x1xf32, #tpu.memory_space<vmem>>, vector<16x1xf32>,
      %cst_51 = arith.constant 0.000000e+00 : f32
      %83 = vector.broadcast %cst_51 : f32 to vector<16x32xf32>
      %c0_52 = arith.constant 0 : index
      %c0_53 = arith.constant 0 : index
      %84 = vector.load %arg8[%c0_52, %c0_53] : memref<16x32xf32, #tpu.memory_space<vmem>>, vector<16x32xf32>
      tpu.vector_store %arg8[%c0_52, %c0_53], %83 {strides = array<i32>} : memref<16x32xf32, #tpu.memory_space<vmem>>, vector<16x32xf32>,
    } else {
    }
    %c8_i32 = arith.constant 8 : i32
    %7 = arith.muli %1, %c8_i32 : i32
    %8 = tpu.iota {dimensions = array<i32: 0>} : vector<8x8xi32>
    %9 = vector.broadcast %7 : i32 to vector<8x8xi32>
    %10 = arith.addi %9, %8 : vector<8x8xi32>
    %c8_i32_1 = arith.constant 8 : i32
    %11 = arith.muli %3, %c8_i32_1 : i32
    %12 = tpu.iota {dimensions = array<i32: 1>} : vector<8x8xi32>
    %13 = vector.broadcast %11 : i32 to vector<8x8xi32>
    %14 = arith.addi %13, %12 : vector<8x8xi32>
    %15 = arith.cmpi sle, %14, %10 : vector<8x8xi32>
    %c0 = arith.constant 0 : index
    %c0_2 = arith.constant 0 : index
    %16 = vector.load %arg3[%c0, %c0_2] : memref<8x64xf32, #tpu.memory_space<vmem>>, vector<8x32xf32>
    %c0_3 = arith.constant 0 : index
    %c0_4 = arith.constant 0 : index
    %17 = vector.load %arg4[%c0_3, %c0_4] : memref<8x128xf32, #tpu.memory_space<vmem>>, vector<8x32xf32>
    %c0_5 = arith.constant 0 : index
    %c64 = arith.constant 64 : index
    %18 = vector.load %arg4[%c0_5, %c64] : memref<8x128xf32, #tpu.memory_space<vmem>>, vector<8x32xf32>
    "tpu.trace_start"() <{level = 10 : i32, message = "qd,kd->qk"}> : () -> ()
    %cst = arith.constant dense<0.000000e+00> : vector<8x8xf32>
    %19 = tpu.matmul %16, %17, %cst {dimension_numbers = #tpu.dot_dimension_numbers<[1], [1], [0], [0], [0, 0, 1, 0], [], []>} : vector<8x32xf32>, vector<8x32xf32>, vector<8x8xf32> -> vector<8x8xf32>
    "tpu.trace_stop"() : () -> ()
    %cst_6 = arith.constant 0.176776692 : f32
    %20 = vector.broadcast %cst_6 : f32 to vector<8x8xf32>
    %21 = arith.mulf %19, %20 : vector<8x8xf32>
    %cst_7 = arith.constant -1.000000e+30 : f32
    %22 = vector.broadcast %cst_7 : f32 to vector<8x8xf32>
    %23 = arith.select %15, %21, %22 : vector<8x8xi1>, vector<8x8xf32>
    %c0_8 = arith.constant 0 : index
    %c0_9 = arith.constant 0 : index
    %24 = vector.load %arg6[%c0_8, %c0_9] : memref<16x1xf32, #tpu.memory_space<vmem>>, vector<8x1xf32>
    %cst_10 = arith.constant dense<0xFF800000> : vector<8xf32>
    %25 = vector.multi_reduction <maximumf>, %23, %cst_10 [1] : vector<8x8xf32> to vector<8xf32>
    %26 = vector.shape_cast %25 : vector<8xf32> to vector<8x1xf32>
    %27 = arith.maximumf %24, %26 : vector<8x1xf32>
    %28 = arith.subf %24, %27 : vector<8x1xf32>
    %29 = math.exp %28 : vector<8x1xf32>
    %30 = vector.broadcast %27 : vector<8x1xf32> to vector<8x8xf32>
    %31 = arith.subf %23, %30 : vector<8x8xf32>
    %32 = math.exp %31 : vector<8x8xf32>
    %c0_11 = arith.constant 0 : index
    %c0_12 = arith.constant 0 : index
    %33 = vector.load %arg7[%c0_11, %c0_12] : memref<16x1xf32, #tpu.memory_space<vmem>>, vector<8x1xf32>
    %34 = arith.mulf %29, %33 : vector<8x1xf32>
    %cst_13 = arith.constant dense<0.000000e+00> : vector<8xf32>
    %35 = vector.multi_reduction <add>, %32, %cst_13 [1] : vector<8x8xf32> to vector<8xf32>
    %36 = vector.shape_cast %35 : vector<8xf32> to vector<8x1xf32>
    %37 = arith.addf %34, %36 : vector<8x1xf32>
    %c0_14 = arith.constant 0 : index
    %c0_15 = arith.constant 0 : index
    %38 = vector.load %arg7[%c0_14, %c0_15] : memref<16x1xf32, #tpu.memory_space<vmem>>, vector<8x1xf32>
    tpu.vector_store %arg7[%c0_14, %c0_15], %37 {strides = array<i32>} : memref<16x1xf32, #tpu.memory_space<vmem>>, vector<8x1xf32>,
    %c0_16 = arith.constant 0 : index
    %c0_17 = arith.constant 0 : index
    %39 = vector.load %arg8[%c0_16, %c0_17] : memref<16x32xf32, #tpu.memory_space<vmem>>, vector<8x32xf32>
    %40 = vector.broadcast %29 : vector<8x1xf32> to vector<8x32xf32>
    %41 = arith.mulf %40, %39 : vector<8x32xf32>
    %cst_18 = arith.constant dense<0.000000e+00> : vector<8x32xf32>
    %42 = tpu.matmul %32, %18, %cst_18 {dimension_numbers = #tpu.dot_dimension_numbers<[1], [0], [0], [1], [0, 0, 1, 1], [], []>} : vector<8x8xf32>, vector<8x32xf32>, vector<8x32xf32> -> vector<8x32xf32>
    %43 = arith.addf %41, %42 : vector<8x32xf32>
    %c0_19 = arith.constant 0 : index
    %c0_20 = arith.constant 0 : index
    %44 = vector.load %arg8[%c0_19, %c0_20] : memref<16x32xf32, #tpu.memory_space<vmem>>, vector<8x32xf32>
    tpu.vector_store %arg8[%c0_19, %c0_20], %43 {strides = array<i32>} : memref<16x32xf32, #tpu.memory_space<vmem>>, vector<8x32xf32>,
    %c0_21 = arith.constant 0 : index
    %c0_22 = arith.constant 0 : index
    %45 = vector.load %arg6[%c0_21, %c0_22] : memref<16x1xf32, #tpu.memory_space<vmem>>, vector<8x1xf32>
    tpu.vector_store %arg6[%c0_21, %c0_22], %27 {strides = array<i32>} : memref<16x1xf32, #tpu.memory_space<vmem>>, vector<8x1xf32>,
    %c0_23 = arith.constant 0 : index
    %c32 = arith.constant 32 : index
    %46 = vector.load %arg3[%c0_23, %c32] : memref<8x64xf32, #tpu.memory_space<vmem>>, vector<8x32xf32>
    %c0_24 = arith.constant 0 : index
    %c32_25 = arith.constant 32 : index
    %47 = vector.load %arg4[%c0_24, %c32_25] : memref<8x128xf32, #tpu.memory_space<vmem>>, vector<8x32xf32>
    %c0_26 = arith.constant 0 : index
    %c96 = arith.constant 96 : index
    %48 = vector.load %arg4[%c0_26, %c96] : memref<8x128xf32, #tpu.memory_space<vmem>>, vector<8x32xf32>
    "tpu.trace_start"() <{level = 10 : i32, message = "qd,kd->qk"}> : () -> ()
    %cst_27 = arith.constant dense<0.000000e+00> : vector<8x8xf32>
    %49 = tpu.matmul %46, %47, %cst_27 {dimension_numbers = #tpu.dot_dimension_numbers<[1], [1], [0], [0], [0, 0, 1, 0], [], []>} : vector<8x32xf32>, vector<8x32xf32>, vector<8x8xf32> -> vector<8x8xf32>
    "tpu.trace_stop"() : () -> ()
    %cst_28 = arith.constant 0.176776692 : f32
    %50 = vector.broadcast %cst_28 : f32 to vector<8x8xf32>
    %51 = arith.mulf %49, %50 : vector<8x8xf32>
    %cst_29 = arith.constant -1.000000e+30 : f32
    %52 = vector.broadcast %cst_29 : f32 to vector<8x8xf32>
    %53 = arith.select %15, %51, %52 : vector<8x8xi1>, vector<8x8xf32>
    %c8 = arith.constant 8 : index
    %c0_30 = arith.constant 0 : index
    %54 = vector.load %arg6[%c8, %c0_30] : memref<16x1xf32, #tpu.memory_space<vmem>>, vector<8x1xf32>
    %cst_31 = arith.constant dense<0xFF800000> : vector<8xf32>
    %55 = vector.multi_reduction <maximumf>, %53, %cst_31 [1] : vector<8x8xf32> to vector<8xf32>
    %56 = vector.shape_cast %55 : vector<8xf32> to vector<8x1xf32>
    %57 = arith.maximumf %54, %56 : vector<8x1xf32>
    %58 = arith.subf %54, %57 : vector<8x1xf32>
    %59 = math.exp %58 : vector<8x1xf32>
    %60 = vector.broadcast %57 : vector<8x1xf32> to vector<8x8xf32>
    %61 = arith.subf %53, %60 : vector<8x8xf32>
    %62 = math.exp %61 : vector<8x8xf32>
    %c8_32 = arith.constant 8 : index
    %c0_33 = arith.constant 0 : index
    %63 = vector.load %arg7[%c8_32, %c0_33] : memref<16x1xf32, #tpu.memory_space<vmem>>, vector<8x1xf32>
    %64 = arith.mulf %59, %63 : vector<8x1xf32>
    %cst_34 = arith.constant dense<0.000000e+00> : vector<8xf32>
    %65 = vector.multi_reduction <add>, %62, %cst_34 [1] : vector<8x8xf32> to vector<8xf32>
    %66 = vector.shape_cast %65 : vector<8xf32> to vector<8x1xf32>
    %67 = arith.addf %64, %66 : vector<8x1xf32>
    %c8_35 = arith.constant 8 : index
    %c0_36 = arith.constant 0 : index
    %68 = vector.load %arg7[%c8_35, %c0_36] : memref<16x1xf32, #tpu.memory_space<vmem>>, vector<8x1xf32>
    tpu.vector_store %arg7[%c8_35, %c0_36], %67 {strides = array<i32>} : memref<16x1xf32, #tpu.memory_space<vmem>>, vector<8x1xf32>,
    %c8_37 = arith.constant 8 : index
    %c0_38 = arith.constant 0 : index
    %69 = vector.load %arg8[%c8_37, %c0_38] : memref<16x32xf32, #tpu.memory_space<vmem>>, vector<8x32xf32>
    %70 = vector.broadcast %59 : vector<8x1xf32> to vector<8x32xf32>
    %71 = arith.mulf %70, %69 : vector<8x32xf32>
    %cst_39 = arith.constant dense<0.000000e+00> : vector<8x32xf32>
    %72 = tpu.matmul %62, %48, %cst_39 {dimension_numbers = #tpu.dot_dimension_numbers<[1], [0], [0], [1], [0, 0, 1, 1], [], []>} : vector<8x8xf32>, vector<8x32xf32>, vector<8x32xf32> -> vector<8x32xf32>
    %73 = arith.addf %71, %72 : vector<8x32xf32>
    %c8_40 = arith.constant 8 : index
    %c0_41 = arith.constant 0 : index
    %74 = vector.load %arg8[%c8_40, %c0_41] : memref<16x32xf32, #tpu.memory_space<vmem>>, vector<8x32xf32>
    tpu.vector_store %arg8[%c8_40, %c0_41], %73 {strides = array<i32>} : memref<16x32xf32, #tpu.memory_space<vmem>>, vector<8x32xf32>,
    %c8_42 = arith.constant 8 : index
    %c0_43 = arith.constant 0 : index
    %75 = vector.load %arg6[%c8_42, %c0_43] : memref<16x1xf32, #tpu.memory_space<vmem>>, vector<8x1xf32>
    tpu.vector_store %arg6[%c8_42, %c0_43], %57 {strides = array<i32>} : memref<16x1xf32, #tpu.memory_space<vmem>>, vector<8x1xf32>,
    %76 = arith.cmpi eq, %3, %1 : i32
    %77 = arith.extui %76 : i1 to i32
    %c0_i32_44 = arith.constant 0 : i32
    %78 = arith.cmpi ne, %77, %c0_i32_44 : i32
    scf.if %78 {
      %c0_45 = arith.constant 0 : index
      %c0_46 = arith.constant 0 : index
      %79 = vector.load %arg8[%c0_45, %c0_46] : memref<16x32xf32, #tpu.memory_space<vmem>>, vector<8x32xf32>
      %c0_47 = arith.constant 0 : index
      %c0_48 = arith.constant 0 : index
      %80 = vector.load %arg7[%c0_47, %c0_48] : memref<16x1xf32, #tpu.memory_space<vmem>>, vector<8x1xf32>
      %81 = tpu.reciprocal %80 {approx = true} : vector<8x1xf32> -> vector<8x1xf32>
      %82 = vector.broadcast %81 : vector<8x1xf32> to vector<8x32xf32>
      %83 = arith.mulf %79, %82 : vector<8x32xf32>
      %c8_49 = arith.constant 8 : index
      %c0_50 = arith.constant 0 : index
      %84 = vector.load %arg8[%c8_49, %c0_50] : memref<16x32xf32, #tpu.memory_space<vmem>>, vector<8x32xf32>
      %c8_51 = arith.constant 8 : index
      %c0_52 = arith.constant 0 : index
      %85 = vector.load %arg7[%c8_51, %c0_52] : memref<16x1xf32, #tpu.memory_space<vmem>>, vector<8x1xf32>
      %86 = tpu.reciprocal %85 {approx = true} : vector<8x1xf32> -> vector<8x1xf32>
      %87 = vector.broadcast %86 : vector<8x1xf32> to vector<8x32xf32>
      %88 = arith.mulf %84, %87 : vector<8x32xf32>
      %89 = tpu.concatenate %83, %88 in 1 : vector<8x32xf32>, vector<8x32xf32> -> vector<8x64xf32>
      %c0_53 = arith.constant 0 : index
      %c0_54 = arith.constant 0 : index
      %90 = vector.load %arg5[%c0_53, %c0_54] : memref<8x64xf32, #tpu.memory_space<vmem>>, vector<8x64xf32>
      tpu.vector_store %arg5[%c0_53, %c0_54], %89 {strides = array<i32>} : memref<8x64xf32, #tpu.memory_space<vmem>>, vector<8x64xf32>,
    } else {
    }
    return
  }
  func.func @transform_0(%arg0: i32, %arg1: memref<1xi32, #tpu.memory_space<smem>>, %arg2: memref<1xi32, #tpu.memory_space<smem>>) -> (i32, i32) {
    %0 = arith.index_cast %arg0 : i32 to index
    %1 = memref.load %arg1[%0] : memref<1xi32, #tpu.memory_space<smem>>
    %c0_i32 = arith.constant 0 : i32
    %c0_i32_0 = arith.constant 0 : i32
    return %1, %c0_i32 : i32, i32
  }
  func.func @transform_1(%arg0: i32, %arg1: memref<1xi32, #tpu.memory_space<smem>>, %arg2: memref<1xi32, #tpu.memory_space<smem>>) -> (i32, i32) {
    %0 = arith.index_cast %arg0 : i32 to index
    %1 = memref.load %arg2[%0] : memref<1xi32, #tpu.memory_space<smem>>
    %c0_i32 = arith.constant 0 : i32
    %c0_i32_0 = arith.constant 0 : i32
    return %1, %c0_i32 : i32, i32
  }
  func.func @transform_2(%arg0: i32, %arg1: memref<1xi32, #tpu.memory_space<smem>>, %arg2: memref<1xi32, #tpu.memory_space<smem>>) -> (i32, i32) {
    %0 = arith.index_cast %arg0 : i32 to index
    %1 = memref.load %arg1[%0] : memref<1xi32, #tpu.memory_space<smem>>
    %c0_i32 = arith.constant 0 : i32
    %c0_i32_0 = arith.constant 0 : i32
    return %1, %c0_i32 : i32, i32
  }
}

module attributes {stable_mosaic.version = 11 : i64} {
  func.func @_mamba_kernel(%arg0: i32, %arg1: memref<8x256xf32, #tpu.memory_space<vmem>>, %arg2: memref<4x96xf32, #tpu.memory_space<vmem>>, %arg3: memref<1x96xf32, #tpu.memory_space<vmem>>, %arg4: memref<1x4xf32, #tpu.memory_space<vmem>>, %arg5: memref<1x4xf32, #tpu.memory_space<vmem>>, %arg6: memref<1x64xf32, #tpu.memory_space<vmem>>, %arg7: memref<64x64xbf16, #tpu.memory_space<vmem>>, %arg8: memref<8x64xf32, #tpu.memory_space<vmem>>, %arg9: memref<3x96xf32, #tpu.memory_space<vmem>>, %arg10: memref<16x64xf32, #tpu.memory_space<vmem>>) attributes {dimension_semantics = [#tpu.dimension_semantics<arbitrary>], iteration_bounds = array<i64: 1>, scalar_prefetch = 0 : i64, scratch_operands = 2 : i64, tpu.core_type = #tpu.core_type<tc>, window_params = [{transform_indices = @transform_0, window_bounds = array<i64: 8, 256>}, {pipeline_mode = #tpu.pipeline_mode<synchronous>, transform_indices = @transform_1, window_bounds = array<i64: 4, 96>}, {pipeline_mode = #tpu.pipeline_mode<synchronous>, transform_indices = @transform_2, window_bounds = array<i64: 1, 96>}, {pipeline_mode = #tpu.pipeline_mode<synchronous>, transform_indices = @transform_3, window_bounds = array<i64: 1, 4>}, {pipeline_mode = #tpu.pipeline_mode<synchronous>, transform_indices = @transform_4, window_bounds = array<i64: 1, 4>}, {pipeline_mode = #tpu.pipeline_mode<synchronous>, transform_indices = @transform_5, window_bounds = array<i64: 1, 64>}, {pipeline_mode = #tpu.pipeline_mode<synchronous>, transform_indices = @transform_6, window_bounds = array<i64: 64, 64>}, {transform_indices = @transform_7, window_bounds = array<i64: 8, 64>}]} {
    %c0_i32 = arith.constant 0 : i32
    %0 = arith.cmpi eq, %arg0, %c0_i32 : i32
    %1 = arith.extui %0 : i1 to i32
    %c0_i32_0 = arith.constant 0 : i32
    %2 = arith.cmpi ne, %1, %c0_i32_0 : i32
    scf.if %2 {
      %cst_70 = arith.constant 0.000000e+00 : f32
      %308 = vector.broadcast %cst_70 : f32 to vector<3x96xf32>
      %c0_71 = arith.constant 0 : index
      %c0_72 = arith.constant 0 : index
      %309 = vector.load %arg9[%c0_71, %c0_72] : memref<3x96xf32, #tpu.memory_space<vmem>>, vector<3x96xf32>
      tpu.vector_store %arg9[%c0_71, %c0_72], %308 {strides = array<i32>} : memref<3x96xf32, #tpu.memory_space<vmem>>, vector<3x96xf32>,
      %cst_73 = arith.constant 0.000000e+00 : f32
      %310 = vector.broadcast %cst_73 : f32 to vector<16x64xf32>
      %c0_74 = arith.constant 0 : index
      %c0_75 = arith.constant 0 : index
      %311 = vector.load %arg10[%c0_74, %c0_75] : memref<16x64xf32, #tpu.memory_space<vmem>>, vector<16x64xf32>
      tpu.vector_store %arg10[%c0_74, %c0_75], %310 {strides = array<i32>} : memref<16x64xf32, #tpu.memory_space<vmem>>, vector<16x64xf32>,
    } else {
    }
    %c0 = arith.constant 0 : index
    %c0_1 = arith.constant 0 : index
    %3 = vector.load %arg1[%c0, %c0_1] : memref<8x256xf32, #tpu.memory_space<vmem>>, vector<8x256xf32>
    %4 = vector.extract_strided_slice %3 {offsets = [0, 0], sizes = [8, 64], strides = [1, 1]} : vector<8x256xf32> to vector<8x64xf32>
    %5 = vector.extract_strided_slice %3 {offsets = [0, 64], sizes = [8, 96], strides = [1, 1]} : vector<8x256xf32> to vector<8x96xf32>
    %6 = vector.extract_strided_slice %3 {offsets = [0, 160], sizes = [8, 4], strides = [1, 1]} : vector<8x256xf32> to vector<8x4xf32>
    %c0_2 = arith.constant 0 : index
    %c0_3 = arith.constant 0 : index
    %7 = vector.load %arg10[%c0_2, %c0_3] : memref<16x64xf32, #tpu.memory_space<vmem>>, vector<16x64xf32>
    %c0_4 = arith.constant 0 : index
    %c0_5 = arith.constant 0 : index
    %8 = vector.load %arg9[%c0_4, %c0_5] : memref<3x96xf32, #tpu.memory_space<vmem>>, vector<3x96xf32>
    %9 = vector.extract_strided_slice %5 {offsets = [5, 0], sizes = [3, 96], strides = [1, 1]} : vector<8x96xf32> to vector<3x96xf32>
    %c0_6 = arith.constant 0 : index
    %c0_7 = arith.constant 0 : index
    %10 = vector.load %arg9[%c0_6, %c0_7] : memref<3x96xf32, #tpu.memory_space<vmem>>, vector<3x96xf32>
    tpu.vector_store %arg9[%c0_6, %c0_7], %9 {strides = array<i32>} : memref<3x96xf32, #tpu.memory_space<vmem>>, vector<3x96xf32>,
    %11 = tpu.concatenate %8, %5 in 0 : vector<3x96xf32>, vector<8x96xf32> -> vector<11x96xf32>
    %c0_8 = arith.constant 0 : index
    %c0_9 = arith.constant 0 : index
    %12 = vector.load %arg3[%c0_8, %c0_9] : memref<1x96xf32, #tpu.memory_space<vmem>>, vector<1x96xf32>
    %13 = vector.extract_strided_slice %11 {offsets = [0, 0], sizes = [8, 96], strides = [1, 1]} : vector<11x96xf32> to vector<8x96xf32>
    %c0_10 = arith.constant 0 : index
    %c0_11 = arith.constant 0 : index
    %14 = vector.load %arg2[%c0_10, %c0_11] : memref<4x96xf32, #tpu.memory_space<vmem>>, vector<1x96xf32>
    %15 = vector.broadcast %14 : vector<1x96xf32> to vector<8x96xf32>
    %16 = arith.mulf %13, %15 : vector<8x96xf32>
    %17 = vector.broadcast %12 : vector<1x96xf32> to vector<8x96xf32>
    %18 = arith.addf %17, %16 : vector<8x96xf32>
    %19 = vector.extract_strided_slice %11 {offsets = [1, 0], sizes = [8, 96], strides = [1, 1]} : vector<11x96xf32> to vector<8x96xf32>
    %c1 = arith.constant 1 : index
    %c0_12 = arith.constant 0 : index
    %20 = vector.load %arg2[%c1, %c0_12] : memref<4x96xf32, #tpu.memory_space<vmem>>, vector<1x96xf32>
    %21 = vector.broadcast %20 : vector<1x96xf32> to vector<8x96xf32>
    %22 = arith.mulf %19, %21 : vector<8x96xf32>
    %23 = arith.addf %18, %22 : vector<8x96xf32>
    %24 = vector.extract_strided_slice %11 {offsets = [2, 0], sizes = [8, 96], strides = [1, 1]} : vector<11x96xf32> to vector<8x96xf32>
    %c2 = arith.constant 2 : index
    %c0_13 = arith.constant 0 : index
    %25 = vector.load %arg2[%c2, %c0_13] : memref<4x96xf32, #tpu.memory_space<vmem>>, vector<1x96xf32>
    %26 = vector.broadcast %25 : vector<1x96xf32> to vector<8x96xf32>
    %27 = arith.mulf %24, %26 : vector<8x96xf32>
    %28 = arith.addf %23, %27 : vector<8x96xf32>
    %29 = vector.extract_strided_slice %11 {offsets = [3, 0], sizes = [8, 96], strides = [1, 1]} : vector<11x96xf32> to vector<8x96xf32>
    %c3 = arith.constant 3 : index
    %c0_14 = arith.constant 0 : index
    %30 = vector.load %arg2[%c3, %c0_14] : memref<4x96xf32, #tpu.memory_space<vmem>>, vector<1x96xf32>
    %31 = vector.broadcast %30 : vector<1x96xf32> to vector<8x96xf32>
    %32 = arith.mulf %29, %31 : vector<8x96xf32>
    %33 = arith.addf %28, %32 : vector<8x96xf32>
    %34 = arith.negf %33 : vector<8x96xf32>
    %35 = math.exp %34 : vector<8x96xf32>
    %cst = arith.constant 1.000000e+00 : f32
    %36 = vector.broadcast %cst : f32 to vector<8x96xf32>
    %37 = arith.addf %36, %35 : vector<8x96xf32>
    %38 = arith.divf %36, %37 : vector<8x96xf32>
    %39 = arith.mulf %33, %38 : vector<8x96xf32>
    %40 = vector.extract_strided_slice %39 {offsets = [0, 0], sizes = [8, 64], strides = [1, 1]} : vector<8x96xf32> to vector<8x64xf32>
    %41 = vector.extract_strided_slice %39 {offsets = [0, 64], sizes = [8, 16], strides = [1, 1]} : vector<8x96xf32> to vector<8x16xf32>
    %42 = vector.extract_strided_slice %39 {offsets = [0, 80], sizes = [8, 16], strides = [1, 1]} : vector<8x96xf32> to vector<8x16xf32>
    %c0_15 = arith.constant 0 : index
    %c0_16 = arith.constant 0 : index
    %43 = vector.load %arg5[%c0_15, %c0_16] : memref<1x4xf32, #tpu.memory_space<vmem>>, vector<1x4xf32>
    %44 = vector.broadcast %43 : vector<1x4xf32> to vector<8x4xf32>
    %45 = arith.addf %6, %44 : vector<8x4xf32>
    %cst_17 = arith.constant 0.000000e+00 : f32
    %46 = vector.broadcast %cst_17 : f32 to vector<8x4xf32>
    %47 = arith.maximumf %45, %46 : vector<8x4xf32>
    %48 = math.absf %45 : vector<8x4xf32>
    %cst_18 = arith.constant 0.000000e+00 : f32
    %49 = vector.broadcast %cst_18 : f32 to vector<8x4xf32>
    %50 = arith.subf %49, %48 : vector<8x4xf32>
    %51 = math.exp %50 : vector<8x4xf32>
    %cst_19 = arith.constant 1.000000e+00 : f32
    %52 = vector.broadcast %cst_19 : f32 to vector<8x4xf32>
    %53 = arith.addf %52, %51 : vector<8x4xf32>
    %54 = math.log %53 : vector<8x4xf32>
    %55 = arith.addf %47, %54 : vector<8x4xf32>
    %c0_20 = arith.constant 0 : index
    %c0_21 = arith.constant 0 : index
    %56 = vector.load %arg4[%c0_20, %c0_21] : memref<1x4xf32, #tpu.memory_space<vmem>>, vector<1x4xf32>
    %57 = vector.broadcast %56 : vector<1x4xf32> to vector<8x4xf32>
    %58 = arith.mulf %55, %57 : vector<8x4xf32>
    %59 = tpu.iota {dimensions = array<i32: 0>} : vector<8x8xi32>
    %60 = tpu.iota {dimensions = array<i32: 1>} : vector<8x8xi32>
    %61 = arith.cmpi sle, %60, %59 : vector<8x8xi32>
    %62 = arith.extui %61 : vector<8x8xi1> to vector<8x8xi32>
    %63 = arith.sitofp %62 : vector<8x8xi32> to vector<8x8xf32>
    %cst_22 = arith.constant dense<0.000000e+00> : vector<8x4xf32>
    %64 = tpu.matmul %63, %58, %cst_22 {dimension_numbers = #tpu.dot_dimension_numbers<[1], [0], [0], [1], [0, 0, 1, 1], [], []>} : vector<8x8xf32>, vector<8x4xf32>, vector<8x4xf32> -> vector<8x4xf32>
    %cst_23 = arith.constant dense<0.000000e+00> : vector<4xf32>
    %65 = vector.multi_reduction <add>, %58, %cst_23 [0] : vector<8x4xf32> to vector<4xf32>
    %66 = vector.shape_cast %65 : vector<4xf32> to vector<1x4xf32>
    %cst_24 = arith.constant 1.000000e+00 : f32
    %67 = vector.broadcast %cst_24 : f32 to vector<1x16xf32>
    %68 = vector.extract_strided_slice %55 {offsets = [0, 0], sizes = [8, 1], strides = [1, 1]} : vector<8x4xf32> to vector<8x1xf32>
    %69 = vector.broadcast %68 : vector<8x1xf32> to vector<8x16xf32>
    %70 = vector.broadcast %67 : vector<1x16xf32> to vector<8x16xf32>
    %71 = arith.mulf %69, %70 : vector<8x16xf32>
    %72 = vector.extract_strided_slice %55 {offsets = [0, 1], sizes = [8, 1], strides = [1, 1]} : vector<8x4xf32> to vector<8x1xf32>
    %73 = vector.broadcast %72 : vector<8x1xf32> to vector<8x16xf32>
    %74 = vector.broadcast %67 : vector<1x16xf32> to vector<8x16xf32>
    %75 = arith.mulf %73, %74 : vector<8x16xf32>
    %76 = vector.extract_strided_slice %55 {offsets = [0, 2], sizes = [8, 1], strides = [1, 1]} : vector<8x4xf32> to vector<8x1xf32>
    %77 = vector.broadcast %76 : vector<8x1xf32> to vector<8x16xf32>
    %78 = vector.broadcast %67 : vector<1x16xf32> to vector<8x16xf32>
    %79 = arith.mulf %77, %78 : vector<8x16xf32>
    %80 = vector.extract_strided_slice %55 {offsets = [0, 3], sizes = [8, 1], strides = [1, 1]} : vector<8x4xf32> to vector<8x1xf32>
    %81 = vector.broadcast %80 : vector<8x1xf32> to vector<8x16xf32>
    %82 = vector.broadcast %67 : vector<1x16xf32> to vector<8x16xf32>
    %83 = arith.mulf %81, %82 : vector<8x16xf32>
    %84 = tpu.concatenate %71, %75, %79, %83 in 1 : vector<8x16xf32>, vector<8x16xf32>, vector<8x16xf32>, vector<8x16xf32> -> vector<8x64xf32>
    %85 = arith.mulf %84, %40 : vector<8x64xf32>
    %86 = math.exp %64 : vector<8x4xf32>
    %87 = vector.extract_strided_slice %86 {offsets = [0, 0], sizes = [8, 1], strides = [1, 1]} : vector<8x4xf32> to vector<8x1xf32>
    %88 = vector.broadcast %87 : vector<8x1xf32> to vector<8x16xf32>
    %89 = vector.broadcast %67 : vector<1x16xf32> to vector<8x16xf32>
    %90 = arith.mulf %88, %89 : vector<8x16xf32>
    %91 = vector.extract_strided_slice %86 {offsets = [0, 1], sizes = [8, 1], strides = [1, 1]} : vector<8x4xf32> to vector<8x1xf32>
    %92 = vector.broadcast %91 : vector<8x1xf32> to vector<8x16xf32>
    %93 = vector.broadcast %67 : vector<1x16xf32> to vector<8x16xf32>
    %94 = arith.mulf %92, %93 : vector<8x16xf32>
    %95 = vector.extract_strided_slice %86 {offsets = [0, 2], sizes = [8, 1], strides = [1, 1]} : vector<8x4xf32> to vector<8x1xf32>
    %96 = vector.broadcast %95 : vector<8x1xf32> to vector<8x16xf32>
    %97 = vector.broadcast %67 : vector<1x16xf32> to vector<8x16xf32>
    %98 = arith.mulf %96, %97 : vector<8x16xf32>
    %99 = vector.extract_strided_slice %86 {offsets = [0, 3], sizes = [8, 1], strides = [1, 1]} : vector<8x4xf32> to vector<8x1xf32>
    %100 = vector.broadcast %99 : vector<8x1xf32> to vector<8x16xf32>
    %101 = vector.broadcast %67 : vector<1x16xf32> to vector<8x16xf32>
    %102 = arith.mulf %100, %101 : vector<8x16xf32>
    %103 = tpu.concatenate %90, %94, %98, %102 in 1 : vector<8x16xf32>, vector<8x16xf32>, vector<8x16xf32>, vector<8x16xf32> -> vector<8x64xf32>
    %104 = vector.broadcast %66 : vector<1x4xf32> to vector<8x4xf32>
    %105 = arith.subf %104, %64 : vector<8x4xf32>
    %106 = math.exp %105 : vector<8x4xf32>
    %107 = vector.extract_strided_slice %106 {offsets = [0, 0], sizes = [8, 1], strides = [1, 1]} : vector<8x4xf32> to vector<8x1xf32>
    %108 = vector.broadcast %107 : vector<8x1xf32> to vector<8x16xf32>
    %109 = vector.broadcast %67 : vector<1x16xf32> to vector<8x16xf32>
    %110 = arith.mulf %108, %109 : vector<8x16xf32>
    %111 = vector.extract_strided_slice %106 {offsets = [0, 1], sizes = [8, 1], strides = [1, 1]} : vector<8x4xf32> to vector<8x1xf32>
    %112 = vector.broadcast %111 : vector<8x1xf32> to vector<8x16xf32>
    %113 = vector.broadcast %67 : vector<1x16xf32> to vector<8x16xf32>
    %114 = arith.mulf %112, %113 : vector<8x16xf32>
    %115 = vector.extract_strided_slice %106 {offsets = [0, 2], sizes = [8, 1], strides = [1, 1]} : vector<8x4xf32> to vector<8x1xf32>
    %116 = vector.broadcast %115 : vector<8x1xf32> to vector<8x16xf32>
    %117 = vector.broadcast %67 : vector<1x16xf32> to vector<8x16xf32>
    %118 = arith.mulf %116, %117 : vector<8x16xf32>
    %119 = vector.extract_strided_slice %106 {offsets = [0, 3], sizes = [8, 1], strides = [1, 1]} : vector<8x4xf32> to vector<8x1xf32>
    %120 = vector.broadcast %119 : vector<8x1xf32> to vector<8x16xf32>
    %121 = vector.broadcast %67 : vector<1x16xf32> to vector<8x16xf32>
    %122 = arith.mulf %120, %121 : vector<8x16xf32>
    %123 = tpu.concatenate %110, %114, %118, %122 in 1 : vector<8x16xf32>, vector<8x16xf32>, vector<8x16xf32>, vector<8x16xf32> -> vector<8x64xf32>
    %124 = math.exp %66 : vector<1x4xf32>
    %125 = vector.extract_strided_slice %124 {offsets = [0, 0], sizes = [1, 1], strides = [1, 1]} : vector<1x4xf32> to vector<1x1xf32>
    %126 = vector.broadcast %125 : vector<1x1xf32> to vector<1x16xf32>
    %127 = arith.mulf %126, %67 : vector<1x16xf32>
    %128 = vector.extract_strided_slice %124 {offsets = [0, 1], sizes = [1, 1], strides = [1, 1]} : vector<1x4xf32> to vector<1x1xf32>
    %129 = vector.broadcast %128 : vector<1x1xf32> to vector<1x16xf32>
    %130 = arith.mulf %129, %67 : vector<1x16xf32>
    %131 = vector.extract_strided_slice %124 {offsets = [0, 2], sizes = [1, 1], strides = [1, 1]} : vector<1x4xf32> to vector<1x1xf32>
    %132 = vector.broadcast %131 : vector<1x1xf32> to vector<1x16xf32>
    %133 = arith.mulf %132, %67 : vector<1x16xf32>
    %134 = vector.extract_strided_slice %124 {offsets = [0, 3], sizes = [1, 1], strides = [1, 1]} : vector<1x4xf32> to vector<1x1xf32>
    %135 = vector.broadcast %134 : vector<1x1xf32> to vector<1x16xf32>
    %136 = arith.mulf %135, %67 : vector<1x16xf32>
    %137 = tpu.concatenate %127, %130, %133, %136 in 1 : vector<1x16xf32>, vector<1x16xf32>, vector<1x16xf32>, vector<1x16xf32> -> vector<1x64xf32>
    "tpu.trace_start"() <{level = 10 : i32, message = "ts,us->tu"}> : () -> ()
    %cst_25 = arith.constant dense<0.000000e+00> : vector<8x8xf32>
    %138 = tpu.matmul %42, %41, %cst_25 {dimension_numbers = #tpu.dot_dimension_numbers<[1], [1], [0], [0], [0, 0, 1, 0], [], []>} : vector<8x16xf32>, vector<8x16xf32>, vector<8x8xf32> -> vector<8x8xf32>
    %cst_26 = arith.constant 1.250000e-01 : f32
    "tpu.trace_stop"() : () -> ()
    %139 = vector.broadcast %cst_26 : f32 to vector<8x8xf32>
    %cst_27 = arith.constant 1.000000e+00 : f32
    %140 = vector.broadcast %cst_27 : f32 to vector<1x8xf32>
    %141 = vector.extract_strided_slice %64 {offsets = [0, 0], sizes = [8, 1], strides = [1, 1]} : vector<8x4xf32> to vector<8x1xf32>
    %142 = vector.broadcast %141 : vector<8x1xf32> to vector<8x8xf32>
    %143 = vector.broadcast %140 : vector<1x8xf32> to vector<8x8xf32>
    %144 = arith.mulf %142, %143 : vector<8x8xf32>
    "tpu.trace_start"() <{level = 10 : i32, message = "td,sd->ts"}> : () -> ()
    %cst_28 = arith.constant dense<0.000000e+00> : vector<8x8xf32>
    %145 = tpu.matmul %139, %144, %cst_28 {dimension_numbers = #tpu.dot_dimension_numbers<[1], [1], [0], [0], [0, 0, 1, 0], [], []>} : vector<8x8xf32>, vector<8x8xf32>, vector<8x8xf32> -> vector<8x8xf32>
    "tpu.trace_stop"() : () -> ()
    %146 = vector.broadcast %141 : vector<8x1xf32> to vector<8x8xf32>
    %147 = arith.subf %146, %145 : vector<8x8xf32>
    %cst_29 = arith.constant -1.000000e+30 : f32
    %148 = vector.broadcast %cst_29 : f32 to vector<8x8xf32>
    %149 = arith.select %61, %147, %148 : vector<8x8xi1>, vector<8x8xf32>
    %150 = math.exp %149 : vector<8x8xf32>
    %151 = arith.mulf %138, %150 : vector<8x8xf32>
    %152 = vector.extract_strided_slice %85 {offsets = [0, 0], sizes = [8, 16], strides = [1, 1]} : vector<8x64xf32> to vector<8x16xf32>
    %cst_30 = arith.constant dense<0.000000e+00> : vector<8x16xf32>
    %153 = tpu.matmul %151, %152, %cst_30 {dimension_numbers = #tpu.dot_dimension_numbers<[1], [0], [0], [1], [0, 0, 1, 1], [], []>} : vector<8x8xf32>, vector<8x16xf32>, vector<8x16xf32> -> vector<8x16xf32>
    %154 = vector.extract_strided_slice %64 {offsets = [0, 1], sizes = [8, 1], strides = [1, 1]} : vector<8x4xf32> to vector<8x1xf32>
    %155 = vector.broadcast %154 : vector<8x1xf32> to vector<8x8xf32>
    %156 = vector.broadcast %140 : vector<1x8xf32> to vector<8x8xf32>
    %157 = arith.mulf %155, %156 : vector<8x8xf32>
    "tpu.trace_start"() <{level = 10 : i32, message = "td,sd->ts"}> : () -> ()
    %cst_31 = arith.constant dense<0.000000e+00> : vector<8x8xf32>
    %158 = tpu.matmul %139, %157, %cst_31 {dimension_numbers = #tpu.dot_dimension_numbers<[1], [1], [0], [0], [0, 0, 1, 0], [], []>} : vector<8x8xf32>, vector<8x8xf32>, vector<8x8xf32> -> vector<8x8xf32>
    "tpu.trace_stop"() : () -> ()
    %159 = vector.broadcast %154 : vector<8x1xf32> to vector<8x8xf32>
    %160 = arith.subf %159, %158 : vector<8x8xf32>
    %cst_32 = arith.constant -1.000000e+30 : f32
    %161 = vector.broadcast %cst_32 : f32 to vector<8x8xf32>
    %162 = arith.select %61, %160, %161 : vector<8x8xi1>, vector<8x8xf32>
    %163 = math.exp %162 : vector<8x8xf32>
    %164 = arith.mulf %138, %163 : vector<8x8xf32>
    %165 = vector.extract_strided_slice %85 {offsets = [0, 16], sizes = [8, 16], strides = [1, 1]} : vector<8x64xf32> to vector<8x16xf32>
    %cst_33 = arith.constant dense<0.000000e+00> : vector<8x16xf32>
    %166 = tpu.matmul %164, %165, %cst_33 {dimension_numbers = #tpu.dot_dimension_numbers<[1], [0], [0], [1], [0, 0, 1, 1], [], []>} : vector<8x8xf32>, vector<8x16xf32>, vector<8x16xf32> -> vector<8x16xf32>
    %167 = vector.extract_strided_slice %64 {offsets = [0, 2], sizes = [8, 1], strides = [1, 1]} : vector<8x4xf32> to vector<8x1xf32>
    %168 = vector.broadcast %167 : vector<8x1xf32> to vector<8x8xf32>
    %169 = vector.broadcast %140 : vector<1x8xf32> to vector<8x8xf32>
    %170 = arith.mulf %168, %169 : vector<8x8xf32>
    "tpu.trace_start"() <{level = 10 : i32, message = "td,sd->ts"}> : () -> ()
    %cst_34 = arith.constant dense<0.000000e+00> : vector<8x8xf32>
    %171 = tpu.matmul %139, %170, %cst_34 {dimension_numbers = #tpu.dot_dimension_numbers<[1], [1], [0], [0], [0, 0, 1, 0], [], []>} : vector<8x8xf32>, vector<8x8xf32>, vector<8x8xf32> -> vector<8x8xf32>
    "tpu.trace_stop"() : () -> ()
    %172 = vector.broadcast %167 : vector<8x1xf32> to vector<8x8xf32>
    %173 = arith.subf %172, %171 : vector<8x8xf32>
    %cst_35 = arith.constant -1.000000e+30 : f32
    %174 = vector.broadcast %cst_35 : f32 to vector<8x8xf32>
    %175 = arith.select %61, %173, %174 : vector<8x8xi1>, vector<8x8xf32>
    %176 = math.exp %175 : vector<8x8xf32>
    %177 = arith.mulf %138, %176 : vector<8x8xf32>
    %178 = vector.extract_strided_slice %85 {offsets = [0, 32], sizes = [8, 16], strides = [1, 1]} : vector<8x64xf32> to vector<8x16xf32>
    %cst_36 = arith.constant dense<0.000000e+00> : vector<8x16xf32>
    %179 = tpu.matmul %177, %178, %cst_36 {dimension_numbers = #tpu.dot_dimension_numbers<[1], [0], [0], [1], [0, 0, 1, 1], [], []>} : vector<8x8xf32>, vector<8x16xf32>, vector<8x16xf32> -> vector<8x16xf32>
    %180 = vector.extract_strided_slice %64 {offsets = [0, 3], sizes = [8, 1], strides = [1, 1]} : vector<8x4xf32> to vector<8x1xf32>
    %181 = vector.broadcast %180 : vector<8x1xf32> to vector<8x8xf32>
    %182 = vector.broadcast %140 : vector<1x8xf32> to vector<8x8xf32>
    %183 = arith.mulf %181, %182 : vector<8x8xf32>
    "tpu.trace_start"() <{level = 10 : i32, message = "td,sd->ts"}> : () -> ()
    %cst_37 = arith.constant dense<0.000000e+00> : vector<8x8xf32>
    %184 = tpu.matmul %139, %183, %cst_37 {dimension_numbers = #tpu.dot_dimension_numbers<[1], [1], [0], [0], [0, 0, 1, 0], [], []>} : vector<8x8xf32>, vector<8x8xf32>, vector<8x8xf32> -> vector<8x8xf32>
    "tpu.trace_stop"() : () -> ()
    %185 = vector.broadcast %180 : vector<8x1xf32> to vector<8x8xf32>
    %186 = arith.subf %185, %184 : vector<8x8xf32>
    %cst_38 = arith.constant -1.000000e+30 : f32
    %187 = vector.broadcast %cst_38 : f32 to vector<8x8xf32>
    %188 = arith.select %61, %186, %187 : vector<8x8xi1>, vector<8x8xf32>
    %189 = math.exp %188 : vector<8x8xf32>
    %190 = arith.mulf %138, %189 : vector<8x8xf32>
    %191 = vector.extract_strided_slice %85 {offsets = [0, 48], sizes = [8, 16], strides = [1, 1]} : vector<8x64xf32> to vector<8x16xf32>
    %cst_39 = arith.constant dense<0.000000e+00> : vector<8x16xf32>
    %192 = tpu.matmul %190, %191, %cst_39 {dimension_numbers = #tpu.dot_dimension_numbers<[1], [0], [0], [1], [0, 0, 1, 1], [], []>} : vector<8x8xf32>, vector<8x16xf32>, vector<8x16xf32> -> vector<8x16xf32>
    %cst_40 = arith.constant dense<0.000000e+00> : vector<8x64xf32>
    %193 = tpu.matmul %42, %7, %cst_40 {dimension_numbers = #tpu.dot_dimension_numbers<[1], [0], [0], [1], [0, 0, 1, 1], [], []>} : vector<8x16xf32>, vector<16x64xf32>, vector<8x64xf32> -> vector<8x64xf32>
    %194 = arith.mulf %103, %193 : vector<8x64xf32>
    %195 = arith.mulf %85, %123 : vector<8x64xf32>
    %196 = vector.extract_strided_slice %41 {offsets = [0, 0], sizes = [8, 1], strides = [1, 1]} : vector<8x16xf32> to vector<8x1xf32>
    %197 = vector.broadcast %196 : vector<8x1xf32> to vector<8x64xf32>
    %198 = arith.mulf %195, %197 : vector<8x64xf32>
    %cst_41 = arith.constant dense<0.000000e+00> : vector<64xf32>
    %199 = vector.multi_reduction <add>, %198, %cst_41 [0] : vector<8x64xf32> to vector<64xf32>
    %200 = vector.shape_cast %199 : vector<64xf32> to vector<1x64xf32>
    %201 = vector.extract_strided_slice %41 {offsets = [0, 1], sizes = [8, 1], strides = [1, 1]} : vector<8x16xf32> to vector<8x1xf32>
    %202 = vector.broadcast %201 : vector<8x1xf32> to vector<8x64xf32>
    %203 = arith.mulf %195, %202 : vector<8x64xf32>
    %cst_42 = arith.constant dense<0.000000e+00> : vector<64xf32>
    %204 = vector.multi_reduction <add>, %203, %cst_42 [0] : vector<8x64xf32> to vector<64xf32>
    %205 = vector.shape_cast %204 : vector<64xf32> to vector<1x64xf32>
    %206 = vector.extract_strided_slice %41 {offsets = [0, 2], sizes = [8, 1], strides = [1, 1]} : vector<8x16xf32> to vector<8x1xf32>
    %207 = vector.broadcast %206 : vector<8x1xf32> to vector<8x64xf32>
    %208 = arith.mulf %195, %207 : vector<8x64xf32>
    %cst_43 = arith.constant dense<0.000000e+00> : vector<64xf32>
    %209 = vector.multi_reduction <add>, %208, %cst_43 [0] : vector<8x64xf32> to vector<64xf32>
    %210 = vector.shape_cast %209 : vector<64xf32> to vector<1x64xf32>
    %211 = vector.extract_strided_slice %41 {offsets = [0, 3], sizes = [8, 1], strides = [1, 1]} : vector<8x16xf32> to vector<8x1xf32>
    %212 = vector.broadcast %211 : vector<8x1xf32> to vector<8x64xf32>
    %213 = arith.mulf %195, %212 : vector<8x64xf32>
    %cst_44 = arith.constant dense<0.000000e+00> : vector<64xf32>
    %214 = vector.multi_reduction <add>, %213, %cst_44 [0] : vector<8x64xf32> to vector<64xf32>
    %215 = vector.shape_cast %214 : vector<64xf32> to vector<1x64xf32>
    %216 = vector.extract_strided_slice %41 {offsets = [0, 4], sizes = [8, 1], strides = [1, 1]} : vector<8x16xf32> to vector<8x1xf32>
    %217 = vector.broadcast %216 : vector<8x1xf32> to vector<8x64xf32>
    %218 = arith.mulf %195, %217 : vector<8x64xf32>
    %cst_45 = arith.constant dense<0.000000e+00> : vector<64xf32>
    %219 = vector.multi_reduction <add>, %218, %cst_45 [0] : vector<8x64xf32> to vector<64xf32>
    %220 = vector.shape_cast %219 : vector<64xf32> to vector<1x64xf32>
    %221 = vector.extract_strided_slice %41 {offsets = [0, 5], sizes = [8, 1], strides = [1, 1]} : vector<8x16xf32> to vector<8x1xf32>
    %222 = vector.broadcast %221 : vector<8x1xf32> to vector<8x64xf32>
    %223 = arith.mulf %195, %222 : vector<8x64xf32>
    %cst_46 = arith.constant dense<0.000000e+00> : vector<64xf32>
    %224 = vector.multi_reduction <add>, %223, %cst_46 [0] : vector<8x64xf32> to vector<64xf32>
    %225 = vector.shape_cast %224 : vector<64xf32> to vector<1x64xf32>
    %226 = vector.extract_strided_slice %41 {offsets = [0, 6], sizes = [8, 1], strides = [1, 1]} : vector<8x16xf32> to vector<8x1xf32>
    %227 = vector.broadcast %226 : vector<8x1xf32> to vector<8x64xf32>
    %228 = arith.mulf %195, %227 : vector<8x64xf32>
    %cst_47 = arith.constant dense<0.000000e+00> : vector<64xf32>
    %229 = vector.multi_reduction <add>, %228, %cst_47 [0] : vector<8x64xf32> to vector<64xf32>
    %230 = vector.shape_cast %229 : vector<64xf32> to vector<1x64xf32>
    %231 = vector.extract_strided_slice %41 {offsets = [0, 7], sizes = [8, 1], strides = [1, 1]} : vector<8x16xf32> to vector<8x1xf32>
    %232 = vector.broadcast %231 : vector<8x1xf32> to vector<8x64xf32>
    %233 = arith.mulf %195, %232 : vector<8x64xf32>
    %cst_48 = arith.constant dense<0.000000e+00> : vector<64xf32>
    %234 = vector.multi_reduction <add>, %233, %cst_48 [0] : vector<8x64xf32> to vector<64xf32>
    %235 = vector.shape_cast %234 : vector<64xf32> to vector<1x64xf32>
    %236 = vector.extract_strided_slice %41 {offsets = [0, 8], sizes = [8, 1], strides = [1, 1]} : vector<8x16xf32> to vector<8x1xf32>
    %237 = vector.broadcast %236 : vector<8x1xf32> to vector<8x64xf32>
    %238 = arith.mulf %195, %237 : vector<8x64xf32>
    %cst_49 = arith.constant dense<0.000000e+00> : vector<64xf32>
    %239 = vector.multi_reduction <add>, %238, %cst_49 [0] : vector<8x64xf32> to vector<64xf32>
    %240 = vector.shape_cast %239 : vector<64xf32> to vector<1x64xf32>
    %241 = vector.extract_strided_slice %41 {offsets = [0, 9], sizes = [8, 1], strides = [1, 1]} : vector<8x16xf32> to vector<8x1xf32>
    %242 = vector.broadcast %241 : vector<8x1xf32> to vector<8x64xf32>
    %243 = arith.mulf %195, %242 : vector<8x64xf32>
    %cst_50 = arith.constant dense<0.000000e+00> : vector<64xf32>
    %244 = vector.multi_reduction <add>, %243, %cst_50 [0] : vector<8x64xf32> to vector<64xf32>
    %245 = vector.shape_cast %244 : vector<64xf32> to vector<1x64xf32>
    %246 = vector.extract_strided_slice %41 {offsets = [0, 10], sizes = [8, 1], strides = [1, 1]} : vector<8x16xf32> to vector<8x1xf32>
    %247 = vector.broadcast %246 : vector<8x1xf32> to vector<8x64xf32>
    %248 = arith.mulf %195, %247 : vector<8x64xf32>
    %cst_51 = arith.constant dense<0.000000e+00> : vector<64xf32>
    %249 = vector.multi_reduction <add>, %248, %cst_51 [0] : vector<8x64xf32> to vector<64xf32>
    %250 = vector.shape_cast %249 : vector<64xf32> to vector<1x64xf32>
    %251 = vector.extract_strided_slice %41 {offsets = [0, 11], sizes = [8, 1], strides = [1, 1]} : vector<8x16xf32> to vector<8x1xf32>
    %252 = vector.broadcast %251 : vector<8x1xf32> to vector<8x64xf32>
    %253 = arith.mulf %195, %252 : vector<8x64xf32>
    %cst_52 = arith.constant dense<0.000000e+00> : vector<64xf32>
    %254 = vector.multi_reduction <add>, %253, %cst_52 [0] : vector<8x64xf32> to vector<64xf32>
    %255 = vector.shape_cast %254 : vector<64xf32> to vector<1x64xf32>
    %256 = vector.extract_strided_slice %41 {offsets = [0, 12], sizes = [8, 1], strides = [1, 1]} : vector<8x16xf32> to vector<8x1xf32>
    %257 = vector.broadcast %256 : vector<8x1xf32> to vector<8x64xf32>
    %258 = arith.mulf %195, %257 : vector<8x64xf32>
    %cst_53 = arith.constant dense<0.000000e+00> : vector<64xf32>
    %259 = vector.multi_reduction <add>, %258, %cst_53 [0] : vector<8x64xf32> to vector<64xf32>
    %260 = vector.shape_cast %259 : vector<64xf32> to vector<1x64xf32>
    %261 = vector.extract_strided_slice %41 {offsets = [0, 13], sizes = [8, 1], strides = [1, 1]} : vector<8x16xf32> to vector<8x1xf32>
    %262 = vector.broadcast %261 : vector<8x1xf32> to vector<8x64xf32>
    %263 = arith.mulf %195, %262 : vector<8x64xf32>
    %cst_54 = arith.constant dense<0.000000e+00> : vector<64xf32>
    %264 = vector.multi_reduction <add>, %263, %cst_54 [0] : vector<8x64xf32> to vector<64xf32>
    %265 = vector.shape_cast %264 : vector<64xf32> to vector<1x64xf32>
    %266 = vector.extract_strided_slice %41 {offsets = [0, 14], sizes = [8, 1], strides = [1, 1]} : vector<8x16xf32> to vector<8x1xf32>
    %267 = vector.broadcast %266 : vector<8x1xf32> to vector<8x64xf32>
    %268 = arith.mulf %195, %267 : vector<8x64xf32>
    %cst_55 = arith.constant dense<0.000000e+00> : vector<64xf32>
    %269 = vector.multi_reduction <add>, %268, %cst_55 [0] : vector<8x64xf32> to vector<64xf32>
    %270 = vector.shape_cast %269 : vector<64xf32> to vector<1x64xf32>
    %271 = vector.extract_strided_slice %41 {offsets = [0, 15], sizes = [8, 1], strides = [1, 1]} : vector<8x16xf32> to vector<8x1xf32>
    %272 = vector.broadcast %271 : vector<8x1xf32> to vector<8x64xf32>
    %273 = arith.mulf %195, %272 : vector<8x64xf32>
    %cst_56 = arith.constant dense<0.000000e+00> : vector<64xf32>
    %274 = vector.multi_reduction <add>, %273, %cst_56 [0] : vector<8x64xf32> to vector<64xf32>
    %275 = vector.shape_cast %274 : vector<64xf32> to vector<1x64xf32>
    %276 = vector.broadcast %137 : vector<1x64xf32> to vector<16x64xf32>
    %277 = arith.mulf %276, %7 : vector<16x64xf32>
    %278 = tpu.concatenate %200, %205, %210, %215, %220, %225, %230, %235, %240, %245, %250, %255, %260, %265, %270, %275 in 0 : vector<1x64xf32>, vector<1x64xf32>, vector<1x64xf32>, vector<1x64xf32>, vector<1x64xf32>, vector<1x64xf32>, vector<1x64xf32>, vector<1x64xf32>, vector<1x64xf32>, vector<1x64xf32>, vector<1x64xf32>, vector<1x64xf32>, vector<1x64xf32>, vector<1x64xf32>, vector<1x64xf32>, vector<1x64xf32> -> vector<16x64xf32>
    %279 = arith.addf %277, %278 : vector<16x64xf32>
    %c0_57 = arith.constant 0 : index
    %c0_58 = arith.constant 0 : index
    %280 = vector.load %arg10[%c0_57, %c0_58] : memref<16x64xf32, #tpu.memory_space<vmem>>, vector<16x64xf32>
    tpu.vector_store %arg10[%c0_57, %c0_58], %279 {strides = array<i32>} : memref<16x64xf32, #tpu.memory_space<vmem>>, vector<16x64xf32>,
    %281 = tpu.concatenate %153, %166, %179, %192 in 1 : vector<8x16xf32>, vector<8x16xf32>, vector<8x16xf32>, vector<8x16xf32> -> vector<8x64xf32>
    %282 = arith.addf %281, %194 : vector<8x64xf32>
    %c0_59 = arith.constant 0 : index
    %c0_60 = arith.constant 0 : index
    %283 = vector.load %arg6[%c0_59, %c0_60] : memref<1x64xf32, #tpu.memory_space<vmem>>, vector<1x64xf32>
    %284 = vector.broadcast %283 : vector<1x64xf32> to vector<8x64xf32>
    %285 = arith.mulf %284, %40 : vector<8x64xf32>
    %286 = arith.addf %282, %285 : vector<8x64xf32>
    %287 = arith.negf %4 : vector<8x64xf32>
    %288 = math.exp %287 : vector<8x64xf32>
    %cst_61 = arith.constant 1.000000e+00 : f32
    %289 = vector.broadcast %cst_61 : f32 to vector<8x64xf32>
    %290 = arith.addf %289, %288 : vector<8x64xf32>
    %291 = arith.divf %289, %290 : vector<8x64xf32>
    %292 = arith.mulf %4, %291 : vector<8x64xf32>
    %293 = arith.mulf %286, %292 : vector<8x64xf32>
    %294 = arith.mulf %293, %293 : vector<8x64xf32>
    %cst_62 = arith.constant dense<0.000000e+00> : vector<8xf32>
    %295 = vector.multi_reduction <add>, %294, %cst_62 [1] : vector<8x64xf32> to vector<8xf32>
    %296 = vector.shape_cast %295 : vector<8xf32> to vector<8x1xf32>
    %cst_63 = arith.constant 6.400000e+01 : f32
    %297 = vector.broadcast %cst_63 : f32 to vector<8x1xf32>
    %298 = arith.divf %296, %297 : vector<8x1xf32>
    %cst_64 = arith.constant 9.99999974E-6 : f32
    %299 = vector.broadcast %cst_64 : f32 to vector<8x1xf32>
    %300 = arith.addf %298, %299 : vector<8x1xf32>
    %301 = math.rsqrt %300 : vector<8x1xf32>
    %302 = vector.broadcast %301 : vector<8x1xf32> to vector<8x64xf32>
    %303 = arith.mulf %293, %302 : vector<8x64xf32>
    %304 = arith.truncf %303 : vector<8x64xf32> to vector<8x64xbf16>
    %c0_65 = arith.constant 0 : index
    %c0_66 = arith.constant 0 : index
    %305 = vector.load %arg7[%c0_65, %c0_66] : memref<64x64xbf16, #tpu.memory_space<vmem>>, vector<64x64xbf16>
    %cst_67 = arith.constant dense<0.000000e+00> : vector<8x64xf32>
    %306 = tpu.matmul %304, %305, %cst_67 {dimension_numbers = #tpu.dot_dimension_numbers<[1], [0], [0], [1], [0, 0, 1, 1], [], []>} : vector<8x64xbf16>, vector<64x64xbf16>, vector<8x64xf32> -> vector<8x64xf32>
    %c0_68 = arith.constant 0 : index
    %c0_69 = arith.constant 0 : index
    %307 = vector.load %arg8[%c0_68, %c0_69] : memref<8x64xf32, #tpu.memory_space<vmem>>, vector<8x64xf32>
    tpu.vector_store %arg8[%c0_68, %c0_69], %306 {strides = array<i32>} : memref<8x64xf32, #tpu.memory_space<vmem>>, vector<8x64xf32>,
    return
  }
  func.func @transform_0(%arg0: i32) -> (i32, i32) {
    %c0_i32 = arith.constant 0 : i32
    %c0_i32_0 = arith.constant 0 : i32
    return %arg0, %c0_i32 : i32, i32
  }
  func.func @transform_1(%arg0: i32) -> (i32, i32) {
    %c0_i32 = arith.constant 0 : i32
    %c0_i32_0 = arith.constant 0 : i32
    %c0_i32_1 = arith.constant 0 : i32
    return %c0_i32, %c0_i32_0 : i32, i32
  }
  func.func @transform_2(%arg0: i32) -> (i32, i32) {
    %c0_i32 = arith.constant 0 : i32
    %c0_i32_0 = arith.constant 0 : i32
    %c0_i32_1 = arith.constant 0 : i32
    return %c0_i32, %c0_i32_0 : i32, i32
  }
  func.func @transform_3(%arg0: i32) -> (i32, i32) {
    %c0_i32 = arith.constant 0 : i32
    %c0_i32_0 = arith.constant 0 : i32
    %c0_i32_1 = arith.constant 0 : i32
    return %c0_i32, %c0_i32_0 : i32, i32
  }
  func.func @transform_4(%arg0: i32) -> (i32, i32) {
    %c0_i32 = arith.constant 0 : i32
    %c0_i32_0 = arith.constant 0 : i32
    %c0_i32_1 = arith.constant 0 : i32
    return %c0_i32, %c0_i32_0 : i32, i32
  }
  func.func @transform_5(%arg0: i32) -> (i32, i32) {
    %c0_i32 = arith.constant 0 : i32
    %c0_i32_0 = arith.constant 0 : i32
    %c0_i32_1 = arith.constant 0 : i32
    return %c0_i32, %c0_i32_0 : i32, i32
  }
  func.func @transform_6(%arg0: i32) -> (i32, i32) {
    %c0_i32 = arith.constant 0 : i32
    %c0_i32_0 = arith.constant 0 : i32
    %c0_i32_1 = arith.constant 0 : i32
    return %c0_i32, %c0_i32_0 : i32, i32
  }
  func.func @transform_7(%arg0: i32) -> (i32, i32) {
    %c0_i32 = arith.constant 0 : i32
    %c0_i32_0 = arith.constant 0 : i32
    return %arg0, %c0_i32 : i32, i32
  }
}

module attributes {stable_mosaic.version = 11 : i64} {
  func.func @_epilogue_kernel(%arg0: i32, %arg1: memref<8x64xf32, #tpu.memory_space<vmem>>, %arg2: memref<8x64xf32, #tpu.memory_space<vmem>>, %arg3: memref<8x64xf32, #tpu.memory_space<vmem>>, %arg4: memref<64x64xbf16, #tpu.memory_space<vmem>>, %arg5: memref<64x256xbf16, #tpu.memory_space<vmem>>, %arg6: memref<128x64xbf16, #tpu.memory_space<vmem>>, %arg7: memref<8x64xf32, #tpu.memory_space<vmem>>) attributes {dimension_semantics = [#tpu.dimension_semantics<parallel>], iteration_bounds = array<i64: 1>, scalar_prefetch = 0 : i64, scratch_operands = 0 : i64, tpu.core_type = #tpu.core_type<tc>, window_params = [{transform_indices = @transform_0, window_bounds = array<i64: 8, 64>}, {transform_indices = @transform_1, window_bounds = array<i64: 8, 64>}, {transform_indices = @transform_2, window_bounds = array<i64: 8, 64>}, {pipeline_mode = #tpu.pipeline_mode<synchronous>, transform_indices = @transform_3, window_bounds = array<i64: 64, 64>}, {pipeline_mode = #tpu.pipeline_mode<synchronous>, transform_indices = @transform_4, window_bounds = array<i64: 64, 256>}, {pipeline_mode = #tpu.pipeline_mode<synchronous>, transform_indices = @transform_5, window_bounds = array<i64: 128, 64>}, {transform_indices = @transform_6, window_bounds = array<i64: 8, 64>}]} {
    %c0 = arith.constant 0 : index
    %c0_0 = arith.constant 0 : index
    %0 = vector.load %arg1[%c0, %c0_0] : memref<8x64xf32, #tpu.memory_space<vmem>>, vector<8x64xf32>
    %1 = arith.truncf %0 : vector<8x64xf32> to vector<8x64xbf16>
    %c0_1 = arith.constant 0 : index
    %c0_2 = arith.constant 0 : index
    %2 = vector.load %arg4[%c0_1, %c0_2] : memref<64x64xbf16, #tpu.memory_space<vmem>>, vector<64x64xbf16>
    %cst = arith.constant dense<0.000000e+00> : vector<8x64xf32>
    %3 = tpu.matmul %1, %2, %cst {dimension_numbers = #tpu.dot_dimension_numbers<[1], [0], [0], [1], [0, 0, 1, 1], [], []>} : vector<8x64xbf16>, vector<64x64xbf16>, vector<8x64xf32> -> vector<8x64xf32>
    %c0_3 = arith.constant 0 : index
    %c0_4 = arith.constant 0 : index
    %4 = vector.load %arg2[%c0_3, %c0_4] : memref<8x64xf32, #tpu.memory_space<vmem>>, vector<8x64xf32>
    %5 = arith.addf %3, %4 : vector<8x64xf32>
    %c0_5 = arith.constant 0 : index
    %c0_6 = arith.constant 0 : index
    %6 = vector.load %arg3[%c0_5, %c0_6] : memref<8x64xf32, #tpu.memory_space<vmem>>, vector<8x64xf32>
    %7 = arith.addf %5, %6 : vector<8x64xf32>
    %8 = arith.mulf %7, %7 : vector<8x64xf32>
    %cst_7 = arith.constant dense<0.000000e+00> : vector<8xf32>
    %9 = vector.multi_reduction <add>, %8, %cst_7 [1] : vector<8x64xf32> to vector<8xf32>
    %10 = vector.shape_cast %9 : vector<8xf32> to vector<8x1xf32>
    %cst_8 = arith.constant 6.400000e+01 : f32
    %11 = vector.broadcast %cst_8 : f32 to vector<8x1xf32>
    %12 = arith.divf %10, %11 : vector<8x1xf32>
    %cst_9 = arith.constant 9.99999974E-6 : f32
    %13 = vector.broadcast %cst_9 : f32 to vector<8x1xf32>
    %14 = arith.addf %12, %13 : vector<8x1xf32>
    %15 = math.rsqrt %14 : vector<8x1xf32>
    %16 = vector.broadcast %15 : vector<8x1xf32> to vector<8x64xf32>
    %17 = arith.mulf %7, %16 : vector<8x64xf32>
    %18 = arith.truncf %17 : vector<8x64xf32> to vector<8x64xbf16>
    %c0_10 = arith.constant 0 : index
    %c0_11 = arith.constant 0 : index
    %19 = vector.load %arg5[%c0_10, %c0_11] : memref<64x256xbf16, #tpu.memory_space<vmem>>, vector<64x256xbf16>
    %cst_12 = arith.constant dense<0.000000e+00> : vector<8x256xf32>
    %20 = tpu.matmul %18, %19, %cst_12 {dimension_numbers = #tpu.dot_dimension_numbers<[1], [0], [0], [1], [0, 0, 1, 1], [], []>} : vector<8x64xbf16>, vector<64x256xbf16>, vector<8x256xf32> -> vector<8x256xf32>
    %21 = vector.extract_strided_slice %20 {offsets = [0, 0], sizes = [8, 128], strides = [1, 1]} : vector<8x256xf32> to vector<8x128xf32>
    %22 = vector.extract_strided_slice %20 {offsets = [0, 128], sizes = [8, 128], strides = [1, 1]} : vector<8x256xf32> to vector<8x128xf32>
    %23 = arith.negf %21 : vector<8x128xf32>
    %24 = math.exp %23 : vector<8x128xf32>
    %cst_13 = arith.constant 1.000000e+00 : f32
    %25 = vector.broadcast %cst_13 : f32 to vector<8x128xf32>
    %26 = arith.addf %25, %24 : vector<8x128xf32>
    %27 = arith.divf %25, %26 : vector<8x128xf32>
    %28 = arith.mulf %21, %27 : vector<8x128xf32>
    %29 = arith.mulf %28, %22 : vector<8x128xf32>
    %30 = arith.truncf %29 : vector<8x128xf32> to vector<8x128xbf16>
    %c0_14 = arith.constant 0 : index
    %c0_15 = arith.constant 0 : index
    %31 = vector.load %arg6[%c0_14, %c0_15] : memref<128x64xbf16, #tpu.memory_space<vmem>>, vector<128x64xbf16>
    %cst_16 = arith.constant dense<0.000000e+00> : vector<8x64xf32>
    %32 = tpu.matmul %30, %31, %cst_16 {dimension_numbers = #tpu.dot_dimension_numbers<[1], [0], [0], [1], [0, 0, 1, 1], [], []>} : vector<8x128xbf16>, vector<128x64xbf16>, vector<8x64xf32> -> vector<8x64xf32>
    %33 = arith.addf %7, %32 : vector<8x64xf32>
    %c0_17 = arith.constant 0 : index
    %c0_18 = arith.constant 0 : index
    %34 = vector.load %arg7[%c0_17, %c0_18] : memref<8x64xf32, #tpu.memory_space<vmem>>, vector<8x64xf32>
    tpu.vector_store %arg7[%c0_17, %c0_18], %33 {strides = array<i32>} : memref<8x64xf32, #tpu.memory_space<vmem>>, vector<8x64xf32>,
    return
  }
  func.func @transform_0(%arg0: i32) -> (i32, i32) {
    %c0_i32 = arith.constant 0 : i32
    %c0_i32_0 = arith.constant 0 : i32
    return %arg0, %c0_i32 : i32, i32
  }
  func.func @transform_1(%arg0: i32) -> (i32, i32) {
    %c0_i32 = arith.constant 0 : i32
    %c0_i32_0 = arith.constant 0 : i32
    return %arg0, %c0_i32 : i32, i32
  }
  func.func @transform_2(%arg0: i32) -> (i32, i32) {
    %c0_i32 = arith.constant 0 : i32
    %c0_i32_0 = arith.constant 0 : i32
    return %arg0, %c0_i32 : i32, i32
  }
  func.func @transform_3(%arg0: i32) -> (i32, i32) {
    %c0_i32 = arith.constant 0 : i32
    %c0_i32_0 = arith.constant 0 : i32
    %c0_i32_1 = arith.constant 0 : i32
    return %c0_i32, %c0_i32_0 : i32, i32
  }
  func.func @transform_4(%arg0: i32) -> (i32, i32) {
    %c0_i32 = arith.constant 0 : i32
    %c0_i32_0 = arith.constant 0 : i32
    %c0_i32_1 = arith.constant 0 : i32
    return %c0_i32, %c0_i32_0 : i32, i32
  }
  func.func @transform_5(%arg0: i32) -> (i32, i32) {
    %c0_i32 = arith.constant 0 : i32
    %c0_i32_0 = arith.constant 0 : i32
    %c0_i32_1 = arith.constant 0 : i32
    return %c0_i32, %c0_i32_0 : i32, i32
  }
  func.func @transform_6(%arg0: i32) -> (i32, i32) {
    %c0_i32 = arith.constant 0 : i32
    %c0_i32_0 = arith.constant 0 : i32
    return %arg0, %c0_i32 : i32, i32
  }
}

</mosaic_0001>

<bundles_post_ra>
// kernel: falcon_h1_parallel_hybrid.5
= control target key start
LH: loop header
LB: loop body
LE: loop exit
PB: predicated region body
PF: predicated region fallthrough
CT: control target
= control target key end

     0   :  { %s459_s0 = inlined_call_operand.<no memory space> [shape: s32[1], index: 0, kind: input, shape index: {}, may-alias: {0,1}]   ;;  %s460_s1 = inlined_call_operand.<no memory space> [shape: s32[1], index: 1, kind: input, shape index: {}, may-alias: {0,1}]   ;;  %s461_s2 = inlined_call_operand.vmem [shape: f32[8,64], index: 2, kind: input, shape index: {}]   ;;  %s462_s3 = inlined_call_operand.vmem [shape: f32[8,128], index: 3, kind: input, shape index: {}]   ;;  %s463_s4 = inlined_call_operand.vmem [shape: f32[8,64], index: 4, kind: output, shape index: {}]  }
   0x1   :  { %p43_p0 = scmp.lt.s32.totalorder %s459_s0, 0  ;;  %p49_p1 = scmp.lt.s32.totalorder %s460_s1, 0 }
   0x2   :  { %p337_p2 = scmp.ne.s32.totalorder %s460_s1, 0 }
   0x3   :  { %s44_s21 = scalar_select %p43_p0, %s459_s0, 0 }
   0x4   :  { %s50_s24 = scalar_select %p49_p1, %s460_s1, 0 }
   0x5   :  { %s334_s25 = sshll.u32 %s44_s21, 3  ;;  %65 = sbr.rel (%p337_p2) target bundleno = 17 (0x11), region = 13 }
   0x6   :  { %s46_s28 = scalar_lea.vmem %s461_s2, %s334_s25  ;;  %s335_s29 = sshll.u32 %s50_s24, 3 }
   0x7   :  { %s52_s6 = scalar_lea.vmem %s462_s3, %s335_s29  ;;  %s424_s9 = scalar_lea.vmem %s463_s4, %s334_s25 }
   0xa   :  { %vm66_vm0 = vcmask 7168   ;;  %v370_v0 = vmov -1e+30   ;;  %vm71_vm1 = vcmask 261120   ;;  %v371_v1 = vmov 0.0  }
   0xb   :  { %67 = vst.msk [vmem:[#allocation2] sm:$0xff] %vm66_vm0, %v370_v0 }
   0xc   :  { %68 = vst.msk [vmem:[#allocation2 + $0x8] sm:$0xff] %vm66_vm0, %v370_v0 }
   0xd   :  { %69 = vst.msk [vmem:[#allocation3] sm:$0xff] %vm66_vm0, %v371_v1 }
   0xe   :  { %70 = vst.msk [vmem:[#allocation3 + $0x8] sm:$0xff] %vm66_vm0, %v371_v1 }
   0xf   :  { %72 = vst.msk [vmem:[#allocation4] sm:$0xff] %vm71_vm1, %v371_v1 }
  0x10   :  { %73 = vst.msk [vmem:[#allocation4 + $0x8] sm:$0xff] %vm71_vm1, %v371_v1 }
  0x11 PF:  { %v178_v2 = vld [vmem:[%s52_s6] sm:$0xff]  ;;  %s372_s2 = smov 96   ;;  %vm87_vm2 = vcmask 261120   ;;  %s373_s3 = smov 32   ;;  %v75_v6 = vlaneseq  ;;  %vm117_vm4 = vcmask 64512   ;;  %v375_v21 = vmov 0  }
  0x12   :  { %183 = vrot.lane.b32.xlu0 %v178_v2, %s372_s2  ;;  %v177_v3 = vld [vmem:[%s46_s28] sm:$0xff]  ;;  %340 = vmatpush.xpose.msk.msra.mxu0 %vm87_vm2, %v178_v2  ;;  %s338_s13 = sshll.u32 %s459_s0, 3  ;;  %s339_s16 = sshll.u32 %s460_s1, 3  ;;  %vm139_vm5 = vcmask 7168  }
  0x13   :  { %v76_v7 = vshrl.u32 %v75_v6, 7  ;;  %v81_v8 = vand.u32 127, %v75_v6  ;;  %v77_v9 = vstv %s338_s13  ;;  %v82_v10 = vstv %s339_s16  ;;  %s374_s17 = smov 64   ;;  %355 = vset.pattern.permute.xlu2 %v375_v21  ;;  %356 = vset.pattern.permute.xlu0 %v375_v21  ;;  %v211_v22 = vld [vmem:[#allocation2 + $0x8] sm:$0xff]  ;;  %v116_v25 = vld [vmem:[#allocation2] sm:$0xff]  ;;  %p346_p3 = scmp.ne.s32.totalorder %s460_s1, %s459_s0 }
  0x14   :  { %v133_v51 = vld [vmem:[#allocation3] sm:$0xff]  ;;  %s377_s22 = smov (!%p346_p3), 32  }
  0x15   :  { %341 = vmatmul.msk.f32.vlgmr.msra.gmra.mxu0 %vm87_vm2, %v177_v3  ;;  %v78_v11 = vadd.s32 %v77_v9, %v76_v7  ;;  %v83_v12 = vadd.s32 %v82_v10, %v81_v8  ;;  %v227_v46 = vld [vmem:[#allocation3 + $0x8] sm:$0xff] }
  0x16   :  { %v141_v57 = vld [vmem:[#allocation4] sm:$0xff] }
  0x17   :  { %vm84_vm3 = vcmp.le.s32.totalorder %v83_v12, %v78_v11  ;;  %v234_v55 = vld [vmem:[#allocation4 + $0x8] sm:$0xff] }
  0x1a   :  { %180 = vrot.lane.b32.xlu0 %v177_v3, %s372_s2 }
  0x22   :  { %241 = vrot.lane.b32.xlu0 %v178_v2, %s373_s3 }
  0x84   :  { %v184_v4 = vpop.permute.xlu0 %183 }
  0x85   :  { %343 = vmatpush.xpose.msk.msra.mxu2 %vm87_vm2, %v184_v4 }
  0x8c   :  { %v181_v5 = vpop.permute.xlu0 %180 }
  0x8d   :  { %344 = vmatmul.msk.f32.vlgmr.msra.gmra.mxu2 %vm87_vm2, %v181_v5 }
  0x92   :  { %v111_v14 = vpop.f32.mrf.mxu0 }
  0x93   :  { %v114_v17 = vmul.f32 0.17677669, %v111_v14 }
  0x94   :  { %v242_v34 = vpop.permute.xlu0 %241 }
  0x95   :  { %v115_v19 = vsel %vm84_vm3, %v114_v17, -1e+30  ;;  %262 = vmatpush.msra.mxu3 %v242_v34 }
  0x96   :  { %v118_v20 = vsel %vm117_vm4, %v115_v19, -inf }
 0x110   :  { %v206_v13 = vpop.f32.mrf.mxu2 }
 0x111   :  { %v209_v15 = vmul.f32 0.17677669, %v206_v13 }
 0x113   :  { %v210_v16 = vsel %vm84_vm3, %v209_v15, -1e+30 }
 0x114   :  { %v212_v18 = vsel %vm117_vm4, %v210_v16, -inf }
 0x115   :  { %213 = vmax.xlane.f32.xlu1 %v212_v18 }
 0x11d   :  { %119 = vmax.xlane.f32.xlu1 %v118_v20 }
 0x136   :  { %148 = vrot.lane.b32.xlu1 %v178_v2, %s374_s17 }
 0x188   :  { %v214_v23 = vpop.xlane.xlu1 %213 }
 0x189   :  { %v215_v24 = vmax.f32 %v211_v22, %v214_v23 }
 0x18b   :  { %269 = vst.msk [vmem:[#allocation2 + $0x8] sm:$0xff] %vm139_vm5, %v215_v24  ;;  %221 = vperm.xlu2 %355, %v215_v24   ;;  %v216_v30 = vsub.f32 %v211_v22, %v215_v24 }
 0x18d   :  { %v217_v31 = vmul.f32 1.442695, %v216_v30 }
 0x190   :  { %v120_v26 = vpop.xlane.xlu1 %119 }
 0x191   :  { %v121_v27 = vmax.f32 %v116_v25, %v120_v26 }
 0x193   :  { %v122_v28 = vsub.f32 %v116_v25, %v121_v27  ;;  %176 = vst.msk [vmem:[#allocation2] sm:$0xff] %vm139_vm5, %v121_v27  ;;  %127 = vperm.xlu2 %355, %v121_v27  }
 0x195   :  { %v123_v29 = vmul.f32 1.442695, %v122_v28 }
 0x197   :  { %357 = vpow2.f32 %v123_v29 }
 0x198   :  { %359 = vpow2.f32 %v217_v31 }
 0x19d   :  { %v358_v32 = vpop.eup %357 }
 0x19e   :  { %144 = vperm.xlu0 %356, %v358_v32   ;;  %v360_v33 = vpop.eup %359  ;;  %v134_v52 = vmul.f32 %v358_v32, %v133_v51 }
 0x19f   :  { %v228_v47 = vmul.f32 %v360_v33, %v227_v46 }
 0x1a6   :  { %237 = vperm.xlu0 %356, %v360_v33  }
 0x1a8   :  { %v149_v35 = vpop.permute.xlu1 %148 }
 0x1a9   :  { %169 = vmatpush.msra.mxu1 %v149_v35 }
 0x1e5   :  { %v222_v36 = vpop.permute.xlu2 %221 }
 0x1e6   :  { %v224_v37 = vsub.f32 %v210_v16, %v222_v36 }
 0x1e8   :  { %v225_v38 = vmul.f32 1.442695, %v224_v37 }
 0x1ea   :  { %361 = vpow2.f32 %v225_v38 }
 0x1ed   :  { %v128_v39 = vpop.permute.xlu2 %127 }
 0x1ee   :  { %v130_v40 = vsub.f32 %v115_v19, %v128_v39 }
 0x1f0   :  { %v362_v41 = vpop.eup %361  ;;  %v131_v42 = vmul.f32 1.442695, %v130_v40 }
 0x1f1   :  { %345 = vmatmul.msk.f32.vlgmr.msra.gmra.mxu3 %vm117_vm4, %v362_v41  ;;  %v229_v43 = vsel %vm117_vm4, %v362_v41, 0.0 }
 0x1f2   :  { %363 = vpow2.f32 %v131_v42  ;;  %230 = vadd.xlane.f32.xlu1 %v229_v43 }
 0x1f8   :  { %v364_v44 = vpop.eup %363 }
 0x1f9   :  { %342 = vmatmul.msk.f32.vlgmr.msra.gmra.mxu1 %vm117_vm4, %v364_v44  ;;  %v135_v45 = vsel %vm117_vm4, %v364_v44, 0.0 }
 0x1fa   :  { %136 = vadd.xlane.f32.xlu2 %v135_v45 }
 0x210   :  { %v145_v49 = vpop.permute.xlu0 %144 }
 0x211   :  { %v147_v60 = vmul.f32 %v145_v49, %v141_v57 }
 0x218   :  { %v238_v56 = vpop.permute.xlu0 %237 }
 0x219   :  { %v240_v58 = vmul.f32 %v238_v56, %v234_v55 }
 0x265   :  { %v231_v48 = vpop.xlane.xlu1 %230 }
 0x266   :  { %v232_v50 = vadd.f32 %v231_v48, %v228_v47 }
 0x268   :  { %233 = vst.msk [vmem:[#allocation3 + $0x8] sm:$0xff] %vm139_vm5, %v232_v50 }
 0x26d   :  { %v137_v53 = vpop.xlane.xlu2 %136 }
 0x26e   :  { %v138_v54 = vadd.f32 %v137_v53, %v134_v52 }
 0x270   :  { %140 = vst.msk [vmem:[#allocation3] sm:$0xff] %vm139_vm5, %v138_v54 }
 0x274   :  { %v264_v59 = vpop.f32.mrf.mxu3 }
 0x275   :  { %v267_v61 = vadd.f32 %v264_v59, %v240_v58  ;;  %273 = sbr.rel (%p346_p3) target bundleno = 876 (0x36c), region = 17 }
 0x276   :  { %v171_v62 = vpop.f32.mrf.mxu1 }
 0x277   :  { %268 = vst.msk [vmem:[#allocation4 + $0x8] sm:$0xff] %vm87_vm2, %v267_v61  ;;  %v174_v63 = vadd.f32 %v171_v62, %v147_v60 }
 0x279   :  { %175 = vst.msk [vmem:[#allocation4] sm:$0xff] %vm87_vm2, %v174_v63 }
 0x27a   :  { %v284_v0 = vld [vmem:[#allocation3 + $0x8] sm:$0xff]  ;;  %v376_v1 = vmov 0   ;;  %v275_v2 = vld [vmem:[#allocation3] sm:$0xff]  ;;  %vm297_vm6 = vcmask 523264  }
 0x27b   :  { %365 = vset.pattern.permute.xlu0 %v376_v1  ;;  %366 = vrcp.f32 %v284_v0 }
 0x27c   :  { %368 = vrcp.f32 %v275_v2 }
 0x27e   :  { %v283_v5 = vld [vmem:[#allocation4 + $0x8] sm:$0xff] }
 0x280   :  { %v274_v9 = vld [vmem:[#allocation4] sm:$0xff] }
 0x281   :  { %v367_v3 = vpop.eup %366 }
 0x282   :  { %288 = vperm.xlu0 %365, %v367_v3   ;;  %v369_v4 = vpop.eup %368 }
 0x28a   :  { %279 = vperm.xlu0 %365, %v369_v4  }
 0x2f4   :  { %v289_v6 = vpop.permute.xlu0 %288 }
 0x2f5   :  { %v291_v7 = vmul.f32 %v289_v6, %v283_v5 }
 0x2f7   :  { %293 = vrot.lane.b32.xlu1 %v291_v7, %s377_s22 }
 0x2fc   :  { %v280_v8 = vpop.permute.xlu0 %279 }
 0x2fd   :  { %v282_v10 = vmul.f32 %v280_v8, %v274_v9 }
 0x369   :  { %v294_v11 = vpop.permute.xlu1 %293 }
 0x36a   :  { %v296_v12 = vsel %vm87_vm2, %v282_v10, %v294_v11 }
 0x36b   :  { %298 = vst.msk [vmem:[%s424_s9] sm:$0xff] %vm297_vm6, %v296_v12 }
 0x36c PF:  {}

// kernel: falcon_h1_parallel_hybrid.4
= control target key start
LH: loop header
LB: loop body
LE: loop exit
PB: predicated region body
PF: predicated region fallthrough
CT: control target
= control target key end

     0   :  { %11 = vsyncpa [#allocation3], 0  ;;  %s469_s21 = smov [#allocation2]   ;;  %s470_s23 = smov 256   ;;  %s586_s0 = inlined_call_operand.vmem [shape: f32[8,64], index: 0, kind: input, shape index: {}]   ;;  %s587_s1 = inlined_call_operand.vmem [shape: f32[8,32], index: 1, kind: input, shape index: {}]   ;;  %s588_s2 = inlined_call_operand.hbm [shape: bf16[64,512], index: 2, kind: input, shape index: {}]   ;;  %s589_s3 = inlined_call_operand.vmem [shape: f32[8,64], index: 3, kind: output, shape index: {0}]   ;;  %s590_s4 = inlined_call_operand.vmem [shape: f32[8,128], index: 4, kind: output, shape index: {1}]   ;;  %s591_s5 = inlined_call_operand.vmem [shape: f32[8,256], index: 5, kind: output, shape index: {2}]  }
   0x1   :  { %s20_s20 = sshll.u32 %s588_s2, 4  ;;  %s22_s22 = sshll.u32 %s469_s21, 4  ;;  %s21_s20 = int_to_ptr.hbm [resolvable:$true] %s20_s20  ;;  %s23_s22 = int_to_ptr.vmem [resolvable:$true] %s22_s22 }
   0x2   :  { %s471_s24 = smov 16  }
   0x3   :  { %28 = dma.hbm_to_vmem [thread:$0]  %s21_s20, 2048, %s23_s22, [#allocation3], %s470_s23, %s470_s23, %s471_s24  }
   0x4   :  { %467 = dma.done.wait [#allocation3], 2048  }
   0x5   :  { %468 = vsyncadd [#allocation3], 4294965248  ;;  %v516_v0 = vld [vmem:[%s586_s0] sm:$0xff]  ;;  %vm36_vm0 = vcmask 523264   ;;  %v472_v3 = vmov 64.0   ;;  %s473_s27 = smov 96  }
   0x6   :  { %v35_v1 = vmul.f32 %v516_v0, %v516_v0  ;;  %439 = vrcp.f32 %v472_v3  ;;  %v395_v5 = vld [vmem:[#allocation2 + $0x60] sm:$0xf]  ;;  %v427_v6 = vld [vmem:[#allocation2 + $0x6c] sm:$0xf0]  ;;  %v425_v7 = vld [vmem:[#allocation2 + $0x64] sm:$0xf] }
   0x7   :  { %v396_v8 = vor.u32 %v427_v6, %v395_v5  ;;  %v397_v9 = vld [vmem:[#allocation2 + $0x70] sm:$0xf0]  ;;  %v403_v10 = vld [vmem:[#allocation2 + $0x68] sm:$0xf]  ;;  %v428_v11 = vld [vmem:[#allocation2 + $0x74] sm:$0xf0] }
   0x8   :  { %v37_v2 = vsel %vm36_vm0, %v35_v1, 0.0  ;;  %v400_v12 = vor.u32 %v425_v7, %v397_v9  ;;  %v404_v13 = vor.u32 %v428_v11, %v403_v10  ;;  %v426_v14 = vld [vmem:[#allocation2 + $0x6c] sm:$0xf]  ;;  %v405_v15 = vld [vmem:[#allocation2 + $0x78] sm:$0xf0]  ;;  %v527_v43 = vld [vmem:[%s587_s1] sm:$0xff] }
   0x9   :  { %38 = vadd.xlane.f32.xlu0 %v37_v2  ;;  %164 = vmatpush.bf16.msra.mxu0 %v396_v8  ;;  %v408_v17 = vor.u32 %v426_v14, %v405_v15  ;;  %v379_v18 = vld [vmem:[#allocation2 + $0x40] sm:$0xf]  ;;  %v423_v19 = vld [vmem:[#allocation2 + $0x4c] sm:$0xf0]  ;;  %v421_v20 = vld [vmem:[#allocation2 + $0x44] sm:$0xf] }
   0xa   :  { %177 = vmatpush.bf16.msra.mxu1 %v400_v12  ;;  %190 = vmatpush.bf16.msra.mxu2 %v404_v13  ;;  %v380_v21 = vor.u32 %v423_v19, %v379_v18  ;;  %v381_v22 = vld [vmem:[#allocation2 + $0x50] sm:$0xf0]  ;;  %v387_v23 = vld [vmem:[#allocation2 + $0x48] sm:$0xf]  ;;  %v424_v24 = vld [vmem:[#allocation2 + $0x54] sm:$0xf0] }
   0xb   :  { %203 = vmatpush.bf16.msra.mxu3 %v408_v17  ;;  %v384_v25 = vor.u32 %v421_v20, %v381_v22  ;;  %v388_v26 = vor.u32 %v424_v24, %v387_v23  ;;  %v422_v27 = vld [vmem:[#allocation2 + $0x4c] sm:$0xf]  ;;  %v389_v28 = vld [vmem:[#allocation2 + $0x58] sm:$0xf0]  ;;  %v363_v31 = vld [vmem:[#allocation2 + $0x20] sm:$0xf]  ;;  %296 = vrot.lane.b32.xlu1 %v527_v43, %s473_s27 }
   0xc   :  { %v521_v4 = vpop.eup %439  ;;  %v392_v30 = vor.u32 %v422_v27, %v389_v28  ;;  %v419_v32 = vld [vmem:[#allocation2 + $0x2c] sm:$0xf0]  ;;  %v417_v33 = vld [vmem:[#allocation2 + $0x24] sm:$0xf]  ;;  %v365_v35 = vld [vmem:[#allocation2 + $0x30] sm:$0xf0] }
   0xd   :  { %v41_v16 = vmul.f32 64.0, %v521_v4  ;;  %165 = vmatpush.bf16.msra.mxu0 %v380_v21  ;;  %v364_v34 = vor.u32 %v419_v32, %v363_v31  ;;  %v371_v36 = vld [vmem:[#allocation2 + $0x28] sm:$0xf]  ;;  %v420_v37 = vld [vmem:[#allocation2 + $0x34] sm:$0xf0]  ;;  %v368_v38 = vor.u32 %v417_v33, %v365_v35  ;;  %s474_s28 = smov 80   ;;  %vm45_vm1 = vweird.f32 %v521_v4 }
   0xe   :  { %178 = vmatpush.bf16.msra.mxu1 %v384_v25  ;;  %191 = vmatpush.bf16.msra.mxu2 %v388_v26  ;;  %v372_v39 = vor.u32 %v420_v37, %v371_v36  ;;  %v418_v40 = vld [vmem:[#allocation2 + $0x2c] sm:$0xf]  ;;  %v373_v41 = vld [vmem:[#allocation2 + $0x38] sm:$0xf0]  ;;  %v347_v44 = vld [vmem:[#allocation2] sm:$0xf] }
   0xf   :  { %v42_v29 = vsub.f32 1.0, %v41_v16  ;;  %204 = vmatpush.bf16.msra.mxu3 %v392_v30  ;;  %v376_v42 = vor.u32 %v418_v40, %v373_v41  ;;  %v415_v45 = vld [vmem:[#allocation2 + $0xc] sm:$0xf0]  ;;  %v413_v48 = vld [vmem:[#allocation2 + $0x4] sm:$0xf]  ;;  %s475_s1 = smov 32  }
  0x10   :  { %v348_v47 = vor.u32 %v415_v45, %v347_v44  ;;  %v349_v49 = vld [vmem:[#allocation2 + $0x10] sm:$0xf0]  ;;  %v355_v50 = vld [vmem:[#allocation2 + $0x8] sm:$0xf]  ;;  %v416_v52 = vld [vmem:[#allocation2 + $0x14] sm:$0xf0]  ;;  %235 = vrot.lane.b32.xlu2 %v527_v43, %s475_s1 }
  0x11   :  { %166 = vmatpush.bf16.msra.mxu0 %v364_v34  ;;  %v43_v46 = vmul.f32 %v521_v4, %v42_v29  ;;  %v352_v51 = vor.u32 %v413_v48, %v349_v49  ;;  %v414_v53 = vld [vmem:[#allocation2 + $0xc] sm:$0xf]  ;;  %v357_v54 = vld [vmem:[#allocation2 + $0x18] sm:$0xf0]  ;;  %v356_v55 = vor.u32 %v416_v52, %v355_v50  ;;  %s476_s29 = smov 112   ;;  %s477_s30 = smov 48  }
  0x12   :  { %179 = vmatpush.bf16.msra.mxu1 %v368_v38  ;;  %192 = vmatpush.bf16.msra.mxu2 %v372_v39  ;;  %v360_v56 = vor.u32 %v414_v53, %v357_v54  ;;  %s478_s6 = smov 64   ;;  %vm233_vm5 = vcmask 130048   ;;  %vm266_vm6 = vcmask 261120  }
  0x13   :  { %205 = vmatpush.bf16.msra.mxu3 %v376_v42  ;;  %v44_v57 = vadd.f32 %v521_v4, %v43_v46  ;;  %220 = vrot.lane.b32.xlu1 %v527_v43, %s471_s24 }
  0x15   :  { %167 = vmatpush.bf16.msra.mxu0 %v348_v47  ;;  %v46_v58 = vsel %vm45_vm1, %v521_v4, %v44_v57 }
  0x16   :  { %180 = vmatpush.bf16.msra.mxu1 %v352_v51  ;;  %193 = vmatpush.bf16.msra.mxu2 %v356_v55 }
  0x17   :  { %206 = vmatpush.bf16.msra.mxu3 %v360_v56 }
  0x18   :  { %224 = vrot.lane.b32.xlu2 %v527_v43, %s476_s29 }
  0x1b   :  { %244 = vrot.lane.b32.xlu1 %v527_v43, %s477_s30 }
  0x1d   :  { %278 = vrot.lane.b32.xlu0 %v527_v43, %s474_s28 }
  0x20   :  { %269 = vrot.lane.b32.xlu2 %v527_v43, %s478_s6 }
  0x6a   :  { %v236_v8 = vpop.permute.xlu2 %235 }
  0x72   :  { %v225_v10 = vpop.permute.xlu2 %224 }
  0x7a   :  { %v270_v18 = vpop.permute.xlu2 %269 }
  0x7c   :  { %v39_v59 = vpop.xlane.xlu0 %38 }
  0x7d   :  { %v47_v60 = vmul.f32 %v46_v58, %v39_v59  ;;  %v297_v9 = vpop.permute.xlu1 %296 }
  0x7f   :  { %v48_v61 = vadd.f32 1e-05, %v47_v60 }
  0x81   :  { %441 = vrsqrt.f32 %v48_v61  ;;  %vm55_vm3 = vweird.f32 %v48_v61 }
  0x85   :  { %v221_v11 = vpop.permute.xlu1 %220 }
  0x87   :  { %v442_v62 = vpop.eup %441 }
  0x88   :  { %v50_v63 = vmul.f32 %v442_v62, %v48_v61  ;;  %vm56_vm2 = vweird.f32 %v442_v62 }
  0x89   :  { %vm57_vm4 = vmor %vm55_vm3, %vm56_vm2 }
  0x8a   :  { %v51_v1 = vmul.f32 %v442_v62, %v50_v63 }
  0x8c   :  { %v52_v2 = vmul.f32 0.5, %v51_v1 }
  0x8d   :  { %v245_v19 = vpop.permute.xlu1 %244 }
  0x8e   :  { %v53_v3 = vsub.f32 1.5, %v52_v2 }
  0x8f   :  { %v279_v12 = vpop.permute.xlu0 %278 }
  0x90   :  { %v54_v4 = vmul.f32 %v442_v62, %v53_v3 }
  0x92   :  { %v58_v5 = vsel %vm57_vm4, %v442_v62, %v54_v4 }
  0x93   :  { %v59_v6 = vmul.f32 %v58_v5, %v516_v0 }
  0x95   :  { %v60_v7 = vpack.c.bf16 %v59_v6, %v59_v6 }
  0x97   :  { %409 = vmatmul.msk.bf16.vlgmr.msra.gmra.mxu0 %vm36_vm0, %v60_v7  ;;  %410 = vmatmul.msk.bf16.vlgmr.msra.gmra.mxu1 %vm36_vm0, %v60_v7 }
  0x98   :  { %411 = vmatmul.msk.bf16.vlgmr.msra.gmra.mxu2 %vm36_vm0, %v60_v7  ;;  %412 = vmatmul.msk.bf16.vlgmr.msra.gmra.mxu3 %vm36_vm0, %v60_v7 }
 0x114   :  { %v169_v13 = vpop.f32.mrf.mxu0  ;;  %v182_v14 = vpop.f32.mrf.mxu1 }
 0x115   :  { %v281_v15 = vmul.f32 %v279_v12, %v169_v13  ;;  %v299_v16 = vmul.f32 %v297_v9, %v169_v13  ;;  %v238_v17 = vmul.f32 %v236_v8, %v169_v13  ;;  %v227_v0 = vmul.f32 %v225_v10, %v169_v13 }
 0x116   :  { %v247_v24 = vmul.f32 %v245_v19, %v169_v13  ;;  %v223_v25 = vmul.f32 %v221_v11, %v169_v13  ;;  %v272_v26 = vmul.f32 %v270_v18, %v169_v13  ;;  %v213_v31 = vmul.f32 %v527_v43, %v169_v13 }
 0x117   :  { %301 = vrot.lane.b32.xlu1 %v299_v16, %s476_s29  ;;  %240 = vrot.lane.b32.xlu0 %v238_v17, %s476_s29 }
 0x118   :  { %306 = vrot.lane.b32.xlu2 %v281_v15, %s471_s24 }
 0x11b   :  { %v195_v20 = vpop.f32.mrf.mxu2  ;;  %v208_v21 = vpop.f32.mrf.mxu3 }
 0x11c   :  { %330 = vst [vmem:[%s591_s5] sm:$0xff] %v195_v20  ;;  %v171_v22 = vpop.f32.mrf.mxu0  ;;  %v184_v23 = vpop.f32.mrf.mxu1 }
 0x11d   :  { %331 = vst [vmem:[%s591_s5 + $0x8] sm:$0xff] %v208_v21 }
 0x11f   :  { %283 = vrot.lane.b32.xlu0 %v247_v24, %s471_s24  ;;  %249 = vrot.lane.b32.xlu1 %v223_v25, %s471_s24 }
 0x120   :  { %274 = vrot.lane.b32.xlu2 %v272_v26, %s476_s29 }
 0x123   :  { %v197_v27 = vpop.f32.mrf.mxu2  ;;  %v210_v28 = vpop.f32.mrf.mxu3 }
 0x172   :  { %v307_v29 = vpop.permute.xlu2 %306 }
 0x173   :  { %v309_v30 = vadd.f32 %v307_v29, %v227_v0 }
 0x175   :  { %315 = vrot.lane.b32.xlu2 %v309_v30, %s475_s1 }
 0x17a   :  { %v275_v40 = vpop.permute.xlu2 %274 }
 0x17b   :  { %v277_v41 = vsub.f32 %v272_v26, %v275_v40 }
 0x17d   :  { %215 = vrot.lane.b32.xlu2 %v213_v31, %s476_s29 }
 0x189   :  { %v302_v32 = vpop.permute.xlu1 %301  ;;  %v241_v33 = vpop.permute.xlu0 %240 }
 0x18a   :  { %v304_v34 = vsub.f32 %v299_v16, %v302_v32  ;;  %v243_v35 = vsub.f32 %v238_v17, %v241_v33 }
 0x18c   :  { %311 = vrot.lane.b32.xlu1 %v304_v34, %s475_s1  ;;  %254 = vrot.lane.b32.xlu0 %v243_v35, %s473_s27 }
 0x191   :  { %v250_v36 = vpop.permute.xlu1 %249  ;;  %v284_v37 = vpop.permute.xlu0 %283 }
 0x192   :  { %v252_v38 = vadd.f32 %v250_v36, %v247_v24  ;;  %v286_v39 = vadd.f32 %v284_v37, %v281_v15 }
 0x194   :  { %258 = vrot.lane.b32.xlu1 %v252_v38, %s473_s27  ;;  %229 = vrot.lane.b32.xlu0 %v227_v0, %s471_s24 }
 0x195   :  { %292 = vrot.lane.b32.xlu2 %v286_v39, %s478_s6 }
 0x19c   :  { %288 = vrot.lane.b32.xlu1 %v277_v41, %s478_s6 }
 0x19d   :  { %324 = vrot.lane.b32.xlu2 %v182_v14, %s478_s6 }
 0x1cf   :  { %v316_v42 = vpop.permute.xlu2 %315 }
 0x1d7   :  { %v216_v48 = vpop.permute.xlu2 %215 }
 0x1d8   :  { %v218_v58 = vsub.f32 %v213_v31, %v216_v48 }
 0x1ef   :  { %v293_v49 = vpop.permute.xlu2 %292 }
 0x1f7   :  { %v325_v54 = vpop.permute.xlu2 %324 }
 0x1fe   :  { %v312_v43 = vpop.permute.xlu1 %311  ;;  %v255_v45 = vpop.permute.xlu0 %254 }
 0x1ff   :  { %v318_v44 = vsel %vm233_vm5, %v312_v43, %v316_v42 }
 0x200   :  { %320 = vrot.lane.b32.xlu0 %v318_v44, %s475_s1 }
 0x206   :  { %v259_v46 = vpop.permute.xlu1 %258  ;;  %v230_v50 = vpop.permute.xlu0 %229 }
 0x207   :  { %v261_v47 = vsel %vm233_vm5, %v255_v45, %v259_v46  ;;  %v232_v57 = vadd.f32 %v230_v50, %v223_v25 }
 0x208   :  { %263 = vrot.lane.b32.xlu1 %v261_v47, %s475_s1 }
 0x209   :  { %v234_v60 = vsel %vm233_vm5, %v218_v58, %v232_v57 }
 0x20e   :  { %v289_v51 = vpop.permute.xlu1 %288 }
 0x20f   :  { %v295_v52 = vsel %vm233_vm5, %v289_v51, %v293_v49 }
 0x272   :  { %v321_v53 = vpop.permute.xlu0 %320 }
 0x273   :  { %v327_v55 = vsel %vm266_vm6, %v295_v52, %v321_v53 }
 0x274   :  { %v328_v56 = vsel %vm36_vm0, %v327_v55, %v325_v54 }
 0x275   :  { %329 = vst [vmem:[%s590_s4] sm:$0xff] %v328_v56 }
 0x27a   :  { %v264_v59 = vpop.permute.xlu1 %263 }
 0x27b   :  { %v267_v61 = vsel %vm266_vm6, %v234_v60, %v264_v59 }
 0x27c   :  { %268 = vst.msk [vmem:[%s589_s3] sm:$0xff] %vm36_vm0, %v267_v61 }
 0x27d   :  { %344 = vsyncpa [#allocation3], 1 }

// kernel: falcon_h1_parallel_hybrid.7
= control target key start
LH: loop header
LB: loop body
LE: loop exit
PB: predicated region body
PF: predicated region fallthrough
CT: control target
= control target key end

     0   :  { %s582_s0 = inlined_call_operand.vmem [shape: f32[8,64], index: 0, kind: input, shape index: {}]   ;;  %s583_s1 = inlined_call_operand.vmem [shape: f32[8,64], index: 1, kind: input, shape index: {}]   ;;  %s584_s2 = inlined_call_operand.vmem [shape: f32[8,64], index: 2, kind: input, shape index: {}]   ;;  %s585_s3 = inlined_call_operand.vmem [shape: bf16[64,64], index: 3, kind: input, shape index: {}]   ;;  %s586_s4 = inlined_call_operand.vmem [shape: bf16[64,256], index: 4, kind: input, shape index: {}]   ;;  %s587_s5 = inlined_call_operand.vmem [shape: bf16[128,64], index: 5, kind: input, shape index: {}]   ;;  %s588_s6 = inlined_call_operand.hbm [shape: f32[8,64], index: 6, kind: output, shape index: {}]  }
   0x1   :  { %v385_v0 = vld [vmem:[%s585_s3 + $0x18] sm:$0xff]  ;;  %v384_v1 = vld [vmem:[%s585_s3 + $0x10] sm:$0xff] }
   0x2   :  { %68 = vmatpush.bf16.msra.mxu0 %v385_v0 }
   0x3   :  { %11 = vsyncpa [#allocation3], 0  ;;  %v383_v2 = vld [vmem:[%s585_s3 + $0x8] sm:$0xff]  ;;  %v382_v3 = vld [vmem:[%s585_s3] sm:$0xff]  ;;  %vm60_vm0 = vcmask 523264   ;;  %v438_v14 = vmov 64.0  }
   0x4   :  { %v25_v4 = vld [vmem:[%s582_s0] sm:$0xff]  ;;  %404 = vrcp.f32 %v438_v14  ;;  %v341_v16 = vld [vmem:[%s586_s4 + $0x30] sm:$0xf]  ;;  %v393_v17 = vld [vmem:[%s586_s4 + $0x34] sm:$0xf0]  ;;  %s289_s29 = sshll.u32 %s588_s6, 4  ;;  %s290_s29 = int_to_ptr.hbm [resolvable:$true] %s289_s29 }
   0x5   :  { %v26_v5 = vpack.c.bf16 %v25_v4, %v25_v4  ;;  %v35_v6 = vld [vmem:[%s583_s1] sm:$0xff]  ;;  %v392_v18 = vld [vmem:[%s586_s4 + $0x34] sm:$0xf]  ;;  %v342_v19 = vor.u32 %v393_v17, %v341_v16  ;;  %v343_v20 = vld [vmem:[%s586_s4 + $0x38] sm:$0xf0] }
   0x6   :  { %69 = vmatpush.bf16.msra.mxu0 %v384_v1  ;;  %v77_v8 = vld [vmem:[%s584_s2] sm:$0xff]  ;;  %v346_v21 = vor.u32 %v392_v18, %v343_v20  ;;  %v391_v24 = vld [vmem:[%s586_s4 + $0x24] sm:$0xf0]  ;;  %v335_v27 = vld [vmem:[%s586_s4 + $0x28] sm:$0xf0] }
   0x7   :  { %159 = vmatpush.bf16.msra.mxu1 %v342_v19  ;;  %v333_v23 = vld [vmem:[%s586_s4 + $0x20] sm:$0xf]  ;;  %v390_v25 = vld [vmem:[%s586_s4 + $0x24] sm:$0xf]  ;;  %v325_v30 = vld [vmem:[%s586_s4 + $0x10] sm:$0xf] }
   0x8   :  { %172 = vmatpush.bf16.msra.mxu2 %v346_v21  ;;  %v334_v26 = vor.u32 %v391_v24, %v333_v23  ;;  %v338_v28 = vor.u32 %v390_v25, %v335_v27  ;;  %v389_v31 = vld [vmem:[%s586_s4 + $0x14] sm:$0xf0]  ;;  %v388_v32 = vld [vmem:[%s586_s4 + $0x14] sm:$0xf]  ;;  %v327_v34 = vld [vmem:[%s586_s4 + $0x18] sm:$0xf0] }
   0x9   :  { %v326_v33 = vor.u32 %v389_v31, %v325_v30  ;;  %v317_v35 = vld [vmem:[%s586_s4] sm:$0xf]  ;;  %v387_v36 = vld [vmem:[%s586_s4 + $0x4] sm:$0xf0]  ;;  %v330_v37 = vor.u32 %v388_v32, %v327_v34  ;;  %v386_v38 = vld [vmem:[%s586_s4 + $0x4] sm:$0xf] }
   0xa   :  { %70 = vmatpush.bf16.msra.mxu0 %v383_v2  ;;  %v405_v15 = vpop.eup %404  ;;  %v319_v39 = vld [vmem:[%s586_s4 + $0x8] sm:$0xf0]  ;;  %v318_v40 = vor.u32 %v387_v36, %v317_v35  ;;  %v401_v57 = vld [vmem:[%s587_s5 + $0x38] sm:$0xff]  ;;  %v400_v58 = vld [vmem:[%s587_s5 + $0x30] sm:$0xff] }
   0xb   :  { %v84_v22 = vmul.f32 64.0, %v405_v15  ;;  %160 = vmatpush.bf16.msra.mxu1 %v334_v26  ;;  %v322_v41 = vor.u32 %v386_v38, %v319_v39  ;;  %vm88_vm1 = vweird.f32 %v405_v15  ;;  %267 = vmatpush.bf16.msra.mxu3 %v401_v57  ;;  %v399_v59 = vld [vmem:[%s587_s5 + $0x28] sm:$0xff]  ;;  %v398_v60 = vld [vmem:[%s587_s5 + $0x20] sm:$0xff]  ;;  %v397_v61 = vld [vmem:[%s587_s5 + $0x18] sm:$0xff] }
   0xc   :  { %173 = vmatpush.bf16.msra.mxu2 %v338_v28  ;;  %v396_v62 = vld [vmem:[%s587_s5 + $0x10] sm:$0xff]  ;;  %v395_v63 = vld [vmem:[%s587_s5 + $0x8] sm:$0xff]  ;;  %v394_v0 = vld [vmem:[%s587_s5] sm:$0xff]  ;;  %s439_s5 = smov [#allocation2]  }
   0xd   :  { %v85_v29 = vsub.f32 1.0, %v84_v22  ;;  %s287_s26 = sshll.u32 %s439_s5, 4  ;;  %s288_s26 = int_to_ptr.vmem [resolvable:$true] %s287_s26 }
   0xe   :  { %71 = vmatpush.bf16.msra.mxu0 %v382_v3 }
   0xf   :  { %161 = vmatpush.bf16.msra.mxu1 %v326_v33  ;;  %v86_v42 = vmul.f32 %v405_v15, %v85_v29  ;;  %268 = vmatpush.bf16.msra.mxu3 %v400_v58 }
  0x10   :  { %174 = vmatpush.bf16.msra.mxu2 %v330_v37 }
  0x11   :  { %314 = vmatmul.msk.bf16.vlgmr.msra.gmra.mxu0 %vm60_vm0, %v26_v5  ;;  %v87_v43 = vadd.f32 %v405_v15, %v86_v42 }
  0x13   :  { %162 = vmatpush.bf16.msra.mxu1 %v318_v40  ;;  %v89_v44 = vsel %vm88_vm1, %v405_v15, %v87_v43  ;;  %269 = vmatpush.bf16.msra.mxu3 %v399_v59 }
  0x14   :  { %175 = vmatpush.bf16.msra.mxu2 %v322_v41 }
  0x17   :  { %270 = vmatpush.bf16.msra.mxu3 %v398_v60 }
  0x1b   :  { %271 = vmatpush.bf16.msra.mxu3 %v397_v61 }
  0x1f   :  { %272 = vmatpush.bf16.msra.mxu3 %v396_v62 }
  0x23   :  { %273 = vmatpush.bf16.msra.mxu3 %v395_v63 }
  0x27   :  { %274 = vmatpush.bf16.msra.mxu3 %v394_v0 }
  0x8e   :  { %v73_v7 = vpop.f32.mrf.mxu0 }
  0x8f   :  { %v74_v9 = vadd.f32 %v73_v7, %v35_v6 }
  0x91   :  { %v497_v10 = vadd.f32 %v77_v8, %v74_v9 }
  0x93   :  { %v79_v11 = vmul.f32 %v497_v10, %v497_v10 }
  0x95   :  { %v80_v12 = vsel %vm60_vm0, %v79_v11, 0.0 }
  0x96   :  { %v75_v13 = vpop.f32.mrf.mxu0  ;;  %81 = vadd.xlane.f32.xlu0 %v80_v12 }
 0x109   :  { %v82_v45 = vpop.xlane.xlu0 %81 }
 0x10a   :  { %v90_v46 = vmul.f32 %v89_v44, %v82_v45 }
 0x10c   :  { %v91_v47 = vadd.f32 1e-05, %v90_v46 }
 0x10e   :  { %406 = vrsqrt.f32 %v91_v47  ;;  %vm98_vm3 = vweird.f32 %v91_v47 }
 0x114   :  { %v407_v48 = vpop.eup %406 }
 0x115   :  { %v93_v49 = vmul.f32 %v407_v48, %v91_v47  ;;  %vm99_vm2 = vweird.f32 %v407_v48 }
 0x116   :  { %vm100_vm4 = vmor %vm98_vm3, %vm99_vm2 }
 0x117   :  { %v94_v50 = vmul.f32 %v407_v48, %v93_v49 }
 0x119   :  { %v95_v51 = vmul.f32 0.5, %v94_v50 }
 0x11b   :  { %v96_v52 = vsub.f32 1.5, %v95_v51 }
 0x11d   :  { %v97_v53 = vmul.f32 %v407_v48, %v96_v52 }
 0x11f   :  { %v101_v54 = vsel %vm100_vm4, %v407_v48, %v97_v53 }
 0x120   :  { %v102_v55 = vmul.f32 %v101_v54, %v497_v10 }
 0x122   :  { %v103_v56 = vpack.c.bf16 %v102_v55, %v102_v55 }
 0x124   :  { %347 = vmatmul.msk.bf16.vlgmr.msra.gmra.mxu1 %vm60_vm0, %v103_v56  ;;  %348 = vmatmul.msk.bf16.vlgmr.msra.gmra.mxu2 %vm60_vm0, %v103_v56 }
 0x1a1   :  { %v164_v1 = vpop.f32.mrf.mxu1 }
 0x1a2   :  { %v349_v2 = vmul.f32 -1.442695, %v164_v1 }
 0x1a4   :  { %408 = vpow2.f32 %v349_v2 }
 0x1a7   :  { %v177_v3 = vpop.f32.mrf.mxu2 }
 0x1a9   :  { %v166_v4 = vpop.f32.mrf.mxu1 }
 0x1aa   :  { %v409_v5 = vpop.eup %408 }
 0x1ab   :  { %v184_v6 = vadd.f32 1.0, %v409_v5 }
 0x1ad   :  { %410 = vrcp.f32 %v184_v6  ;;  %v196_v12 = vand.u32 2147483648, %v184_v6  ;;  %v194_v14 = vand.u32 2147483647, %v184_v6  ;;  %vm190_vm6 = vweird.f32 %v184_v6 }
 0x1af   :  { %v179_v7 = vpop.f32.mrf.mxu2  ;;  %v197_v16 = vor.u32 1.1754944e-38, %v196_v12  ;;  %vm195_vm8 = vcmp.eq.f32.partialorder %v194_v14, 8.507059e+37 }
 0x1b3   :  { %v411_v8 = vpop.eup %410 }
 0x1b4   :  { %v186_v9 = vmul.f32 %v411_v8, %v184_v6  ;;  %vm191_vm5 = vweird.f32 %v411_v8 }
 0x1b5   :  { %vm192_vm7 = vmor %vm190_vm6, %vm191_vm5 }
 0x1b6   :  { %v187_v11 = vsub.f32 1.0, %v186_v9 }
 0x1b8   :  { %v188_v13 = vmul.f32 %v411_v8, %v187_v11 }
 0x1ba   :  { %v189_v15 = vadd.f32 %v411_v8, %v188_v13 }
 0x1bc   :  { %v193_v17 = vsel %vm192_vm7, %v411_v8, %v189_v15 }
 0x1bd   :  { %v198_v18 = vsel %vm195_vm8, %v197_v16, %v193_v17 }
 0x1be   :  { %v200_v19 = vmul.f32 %v198_v18, %v164_v1 }
 0x1c0   :  { %v201_v20 = vmul.f32 %v200_v19, %v177_v3 }
 0x1c2   :  { %v202_v21 = vpack.c.bf16 %v201_v20, %v201_v20 }
 0x1c4   :  { %275 = vmatmul.bf16.vlgmr.msra.gmra.mxu3 %v202_v21 }
 0x247   :  { %v276_v22 = vpop.f32.mrf.mxu3 }
 0x248   :  { %v280_v23 = vadd.f32 %v276_v22, %v497_v10 }
 0x24a   :  { %281 = vst.msk [vmem:[#allocation2] sm:$0xff] %vm60_vm0, %v280_v23 }
 0x24b   :  { %292 = dma.vmem_to_hbm [thread:$0]  %s288_s26, 128, %s290_s29, [#allocation3]  }
 0x24f   :  { %v278_v24 = vpop.f32.mrf.mxu3 }
 0x250   :  { %436 = dma.done.wait [#allocation3], 128  }
 0x251   :  { %437 = vsyncadd [#allocation3], 4294967168 }
 0x252   :  { %297 = vsyncpa [#allocation3], 1 }

// kernel: falcon_h1_parallel_hybrid.6
= control target key start
LH: loop header
LB: loop body
LE: loop exit
PB: predicated region body
PF: predicated region fallthrough
CT: control target
= control target key end

     0   :  { %12 = vsyncpa [#allocation5], 0  ;;  %s1096_s27 = smov [#allocation4]   ;;  %s1097_s29 = smov 64   ;;  %s1434_s0 = inlined_call_operand.vmem [shape: f32[8,256], index: 0, kind: input, shape index: {}]   ;;  %s1435_s1 = inlined_call_operand.vmem [shape: f32[4,96], index: 1, kind: input, shape index: {}]   ;;  %s1436_s2 = inlined_call_operand.vmem [shape: f32[1,96], index: 2, kind: input, shape index: {}]   ;;  %s1437_s3 = inlined_call_operand.vmem [shape: f32[1,4], index: 3, kind: input, shape index: {}]   ;;  %s1438_s4 = inlined_call_operand.vmem [shape: f32[1,4], index: 4, kind: input, shape index: {}]   ;;  %s1439_s5 = inlined_call_operand.vmem [shape: f32[1,64], index: 5, kind: input, shape index: {}]   ;;  %s1440_s6 = inlined_call_operand.hbm [shape: bf16[64,64], index: 6, kind: input, shape index: {}]   ;;  %s1441_s7 = inlined_call_operand.vmem [shape: f32[8,64], index: 7, kind: output, shape index: {}]  }
   0x1   :  { %s29_s26 = sshll.u32 %s1440_s6, 4  ;;  %s31_s28 = sshll.u32 %s1096_s27, 4  ;;  %s30_s26 = int_to_ptr.hbm [resolvable:$true] %s29_s26  ;;  %s32_s28 = int_to_ptr.vmem [resolvable:$true] %s31_s28 }
   0x2   :  { %s1098_s30 = smov 4  }
   0x3   :  { %37 = dma.hbm_to_vmem [thread:$0]  %s30_s26, 512, %s32_s28, [#allocation5], %s1097_s29, %s1097_s29, %s1098_s30  }
   0x4   :  { %1094 = dma.done.wait [#allocation5], 512  }
   0x5   :  { %1095 = vsyncadd [#allocation5], 4294966784  ;;  %v1032_v0 = vld [vmem:[%s1438_s4] ss:$0 sm:$0xff]  ;;  %s1099_s10 = smov 32   ;;  %v1188_v2 = vld [vmem:[%s1434_s0 + $0x8] sm:$0xff]  ;;  %v165_v20 = vlaneseq }
   0x6   :  { %145 = vrot.lane.b32.xlu0 %v1032_v0, %s1099_s10  ;;  %v1033_v1 = vld [vmem:[%s1437_s3] ss:$0 sm:$0xff]  ;;  %v69_v8 = vrot.slane %v1188_v2, 5  ;;  %s1100_s3 = smov 96   ;;  %vm47_vm0 = vcmask 780288   ;;  %v1101_v19 = vmov 0.0  }
   0x7   :  { %v1203_v17 = vld [vmem:[%s1434_s0] sm:$0xff]  ;;  %48 = vst.msk [vmem:[#allocation2] sm:$0x7] %vm47_vm0, %v1101_v19  ;;  %vm49_vm1 = vcmask 523264   ;;  %v166_v21 = vshrl.u32 %v165_v20, 7  ;;  %v168_v22 = vand.u32 127, %v165_v20 }
   0x8   :  { %72 = vrot.lane.b32.xlu2 %v69_v8, %s1097_s29  ;;  %v68_v18 = vrot.slane %v1203_v17, 5  ;;  %50 = vst.msk [vmem:[#allocation3] sm:$0xff] %vm49_vm1, %v1101_v19  ;;  %vm176_vm3 = vcmask 64512   ;;  %v1036_v27 = vld [vmem:[%s1435_s1 + $0x1] ss:$0 sm:$0xff]  ;;  %vm76_vm4 = vcmask 1042432  }
   0x9   :  { %51 = vst.msk [vmem:[#allocation3 + $0x8] sm:$0xff] %vm49_vm1, %v1101_v19  ;;  %vm1209_vm2 = vcmp.le.s32.totalorder %v168_v22, %v166_v21  ;;  %v1037_v28 = vld [vmem:[%s1435_s1 + $0x2] ss:$0 sm:$0xff]  ;;  %v1038_v29 = vld [vmem:[%s1435_s1 + $0x3] ss:$0 sm:$0xff]  ;;  %vm92_vm5 = vcmask 1046528  }
   0xa   :  { %v922_v24 = vsel %vm1209_vm2, 1.0, %v1101_v19  ;;  %v1034_v30 = vld [vmem:[%s1435_s1] ss:$0 sm:$0xff]  ;;  %vm104_vm6 = vcmask 1045504   ;;  %vm116_vm7 = vcmask 1044480   ;;  %v1102_v56 = vmov 2  }
   0xb   :  { %v1035_v33 = vld [vmem:[%s1436_s2] ss:$0 sm:$0xff]  ;;  %999 = vset.pattern.permute.xlu0 %v1102_v56  ;;  %v1103_v57 = vmov 1   ;;  %v1104_v59 = vmov 0   ;;  %s1106_s1 = smov 48   ;;  %v1110_v20 = vmov 34  }
   0xc   :  { %998 = vset.pattern.permute.xlu1 %v1103_v57  ;;  %997 = vset.pattern.permute.xlu2 %v1104_v59  ;;  %vm225_vm12 = vcmask 130048   ;;  %vm227_vm13 = vcmask 261120   ;;  %vm229_vm14 = vcmask 392192   ;;  %s1112_s2 = smov 112   ;;  %s1113_s24 = smov 80   ;;  %vm200_vm15 = vcmask 294144  }
   0xd   :  { %s1114_s25 = smov 16  }
   0xe   :  { %161 = vrot.lane.b32.xlu0 %v1033_v1, %s1099_s10  ;;  %v56_v31 = vld [vmem:[#allocation2] sm:$0x7] }
  0x62   :  { %v73_v26 = vpop.permute.xlu2 %72 }
  0x78   :  { %v146_v3 = vpop.permute.xlu0 %145 }
  0x79   :  { %v148_v4 = vadd.f32 %v146_v3, %v1188_v2 }
  0x7b   :  { %v150_v5 = vand.u32 2147483647, %v148_v4  ;;  %v149_v12 = vmax.f32 %v148_v4, 0.0 }
  0x7d   :  { %v151_v6 = vsub.f32 0.0, %v150_v5 }
  0x7f   :  { %v152_v7 = vmul.f32 1.442695, %v151_v6 }
  0x80   :  { %v162_v14 = vpop.permute.xlu0 %161 }
  0x81   :  { %1040 = vpow2.f32 %v152_v7 }
  0x87   :  { %v1041_v9 = vpop.eup %1040 }
  0x88   :  { %v154_v10 = vadd.f32 1.0, %v1041_v9 }
  0x8a   :  { %1042 = vlog2.f32 %v154_v10 }
  0x90   :  { %v1043_v11 = vpop.eup %1042 }
  0x91   :  { %v156_v13 = vmul.f32 0.6931472, %v1043_v11 }
  0x93   :  { %v1193_v15 = vadd.f32 %v156_v13, %v149_v12  ;;  %v1105_v12 = vmov 3   ;;  %v1107_v13 = vmov 35  }
  0x95   :  { %v1196_v16 = vmul.f32 %v162_v14, %v1193_v15  ;;  %v1108_v14 = vmov 32  }
  0x97   :  { %173 = vrot.lane.b32.xlu1 %v1196_v16, %s1100_s3 }
  0x9f   :  { %70 = vrot.lane.b32.xlu1 %v68_v18, %s1097_s29  ;;  %v1109_v18 = vmov 33  }
 0x109   :  { %v174_v25 = vpop.permute.xlu1 %173 }
 0x10a   :  { %195 = vmatpush.msra.mxu0 %v174_v25 }
 0x10b   :  { %923 = vmatmul.msk.f32.vlgmr.msra.gmra.mxu0 %vm176_vm3, %v922_v24  ;;  %v1111_v24 = vmov 0.125  }
 0x111   :  { %v71_v32 = vpop.permute.xlu1 %70 }
 0x112   :  { %v74_v34 = vsel %vm49_vm1, %v71_v32, %v73_v26 }
 0x113   :  { %v77_v35 = vsel %vm76_vm4, %v56_v31, %v74_v34  ;;  %v89_v36 = vmul.f32 %v1036_v27, %v74_v34  ;;  %v101_v37 = vmul.f32 %v1037_v28, %v74_v34  ;;  %v113_v38 = vmul.f32 %v1038_v29, %v74_v34 }
 0x114   :  { %v81_v39 = vmul.f32 %v1034_v30, %v77_v35  ;;  %v88_v40 = vmul.f32 %v1036_v27, %v77_v35  ;;  %v100_v41 = vmul.f32 %v1037_v28, %v77_v35  ;;  %v112_v42 = vmul.f32 %v1038_v29, %v77_v35  ;;  %v1263_v27 = vld [vmem:[#allocation3 + $0x8] sm:$0xff]  ;;  %v1268_v28 = vld [vmem:[#allocation3] sm:$0xff] }
 0x115   :  { %v94_v43 = vrot.slane %v89_v36, 1  ;;  %v106_v44 = vrot.slane %v101_v37, 2  ;;  %v118_v45 = vrot.slane %v113_v38, 3 }
 0x116   :  { %v85_v46 = vadd.f32 %v1035_v33, %v81_v39  ;;  %v93_v47 = vrot.slane %v88_v40, 1  ;;  %v105_v48 = vrot.slane %v100_v41, 2  ;;  %v117_v49 = vrot.slane %v112_v42, 3 }
 0x118   :  { %v95_v50 = vsel %vm92_vm5, %v93_v47, %v94_v43  ;;  %v107_v51 = vsel %vm104_vm6, %v105_v48, %v106_v44  ;;  %v119_v53 = vsel %vm116_vm7, %v117_v49, %v118_v45 }
 0x119   :  { %v97_v52 = vadd.f32 %v95_v50, %v85_v46 }
 0x11b   :  { %v109_v54 = vadd.f32 %v107_v51, %v97_v52 }
 0x11d   :  { %v121_v55 = vadd.f32 %v119_v53, %v109_v54 }
 0x11f   :  { %v921_v58 = vmul.f32 -1.442695, %v121_v55 }
 0x121   :  { %1044 = vpow2.f32 %v921_v58 }
 0x127   :  { %v1045_v60 = vpop.eup %1044 }
 0x128   :  { %v125_v61 = vadd.f32 1.0, %v1045_v60 }
 0x12a   :  { %1046 = vrcp.f32 %v125_v61  ;;  %v137_v0 = vand.u32 2147483648, %v125_v61  ;;  %vm131_vm8 = vweird.f32 %v125_v61  ;;  %v135_v3 = vand.u32 2147483647, %v125_v61 }
 0x12c   :  { %v138_v5 = vor.u32 1.1754944e-38, %v137_v0  ;;  %vm136_vm11 = vcmp.eq.f32.partialorder %v135_v3, 8.507059e+37 }
 0x130   :  { %v1047_v62 = vpop.eup %1046 }
 0x131   :  { %v127_v63 = vmul.f32 %v1047_v62, %v125_v61  ;;  %vm132_vm9 = vweird.f32 %v1047_v62 }
 0x132   :  { %vm133_vm10 = vmor %vm131_vm8, %vm132_vm9  ;;  %vm66_vm9 = vcmask 785413  }
 0x133   :  { %v128_v1 = vsub.f32 1.0, %v127_v63 }
 0x135   :  { %v129_v4 = vmul.f32 %v1047_v62, %v128_v1 }
 0x137   :  { %v130_v6 = vadd.f32 %v1047_v62, %v129_v4 }
 0x139   :  { %v134_v7 = vsel %vm133_vm10, %v1047_v62, %v130_v6 }
 0x13a   :  { %v139_v8 = vsel %vm136_vm11, %v138_v5, %v134_v7  ;;  %v939_v7 = vmul.f32 -1.442695, %v1203_v17 }
 0x13b   :  { %v1236_v9 = vmul.f32 %v139_v8, %v121_v55  ;;  %v201_v8 = vsel %vm200_vm15, %v1196_v16, 0.0 }
 0x13d   :  { %306 = vrot.lane.b32.xlu0 %v1236_v9, %s1097_s29 }
 0x188   :  { %v1240_v10 = vpop.f32.mrf.mxu0 }
 0x189   :  { %333 = vperm.xlu2 %997, %v1240_v10   ;;  %390 = vperm.xlu1 %998, %v1240_v10   ;;  %v232_v11 = vmul.f32 1.442695, %v1240_v10 }
 0x18a   :  { %448 = vperm.xlu0 %999, %v1240_v10  }
 0x18b   :  { %1048 = vpow2.f32 %v232_v11 }
 0x191   :  { %1000 = vset.pattern.permute.xlu1 %v1105_v12  ;;  %304 = vrot.lane.b32.xlu2 %v1236_v9, %s1106_s1  ;;  %v1049_v19 = vpop.eup %1048 }
 0x192   :  { %1004 = vset.pattern.permute.xlu0 %v1107_v13  ;;  %505 = vperm.xlu1 %1000, %v1240_v10  }
 0x193   :  { %222 = vperm.xlu0 %1004, %v1193_v15   ;;  %1001 = vset.pattern.permute.xlu2 %v1108_v14 }
 0x199   :  { %210 = vperm.xlu2 %1001, %v1193_v15  }
 0x19a   :  { %1002 = vset.pattern.permute.xlu1 %v1109_v18 }
 0x19b   :  { %1006 = vset.pattern.permute.xlu0 %v1103_v57  ;;  %214 = vperm.xlu1 %1002, %v1193_v15  }
 0x19c   :  { %240 = vperm.xlu0 %1006, %v1049_v19  }
 0x1a1   :  { %1003 = vset.pattern.permute.xlu2 %v1110_v20 }
 0x1a2   :  { %218 = vperm.xlu2 %1003, %v1193_v15  }
 0x1a3   :  { %1007 = vset.pattern.permute.xlu1 %v1102_v56 }
 0x1a4   :  { %1009 = vset.pattern.permute.xlu0 %v1108_v14 }
 0x1aa   :  { %1005 = vset.pattern.permute.xlu2 %v1104_v59 }
 0x1af   :  { %v307_v21 = vpop.permute.xlu0 %306 }
 0x1b0   :  { %924 = vmatpush.xpose.msk.msra.mxu1 %vm225_vm12, %v307_v21 }
 0x1e3   :  { %v334_v22 = vpop.permute.xlu2 %333 }
 0x1e4   :  { %926 = vmatpush.xpose.msk.msrb.mxu0 %vm176_vm3, %v334_v22 }
 0x1e7   :  { %927 = vmatmul.msk.f32.vlgmr.msrb.gmra.mxu0 %vm176_vm3, %v1111_v24 }
 0x1eb   :  { %v305_v25 = vpop.permute.xlu2 %304 }
 0x1ec   :  { %925 = vmatmul.msk.f32.vlgmr.msra.gmra.mxu1 %vm225_vm12, %v305_v25 }
 0x1f3   :  { %v211_v29 = vpop.permute.xlu2 %210 }
 0x1fb   :  { %v391_v26 = vpop.permute.xlu1 %390 }
 0x1fc   :  { %v449_v15 = vpop.permute.xlu0 %448  ;;  %929 = vmatpush.xpose.msk.msra.mxu0 %vm176_vm3, %v391_v26  ;;  %v219_v32 = vpop.permute.xlu2 %218 }
 0x1fd   :  { %932 = vmatpush.xpose.msk.msrb.mxu1 %vm176_vm3, %v449_v15 }
 0x1ff   :  { %930 = vmatmul.msk.f32.vlgmr.msra.gmra.mxu0 %vm176_vm3, %v1111_v24 }
 0x200   :  { %933 = vmatmul.msk.f32.vlgmr.msrb.gmra.mxu1 %vm176_vm3, %v1111_v24 }
 0x201   :  { %575 = vmatpush.msra.mxu1 %v1263_v27 }
 0x203   :  { %576 = vmatpush.msra.mxu1 %v1268_v28 }
 0x204   :  { %v506_v30 = vpop.permute.xlu1 %505 }
 0x205   :  { %935 = vmatpush.xpose.msk.msrb.mxu0 %vm176_vm3, %v506_v30  ;;  %v223_v34 = vpop.permute.xlu0 %222 }
 0x208   :  { %938 = vmatmul.msk.f32.vlgmr.msra.gmra.mxu1 %vm225_vm12, %v305_v25  ;;  %936 = vmatmul.msk.f32.vlgmr.msrb.gmra.mxu0 %vm176_vm3, %v1111_v24 }
 0x20d   :  { %v215_v31 = vpop.permute.xlu1 %214 }
 0x20e   :  { %v226_v33 = vsel %vm225_vm12, %v211_v29, %v215_v31 }
 0x20f   :  { %v228_v35 = vsel %vm227_vm13, %v226_v33, %v219_v32 }
 0x210   :  { %v230_v36 = vsel %vm229_vm14, %v228_v35, %v223_v34 }
 0x211   :  { %v1280_v37 = vmul.f32 %v230_v36, %v1236_v9 }
 0x213   :  { %478 = vrot.lane.b32.xlu2 %v1280_v37, %s1100_s3  ;;  %421 = vrot.lane.b32.xlu1 %v1280_v37, %s1112_s2 }
 0x214   :  { %384 = vmatpush.msra.mxu3 %v1280_v37 }
 0x21b   :  { %236 = vperm.xlu2 %1005, %v1049_v19   ;;  %535 = vrot.lane.b32.xlu1 %v1280_v37, %s1113_s24 }
 0x223   :  { %1008 = vset.pattern.permute.xlu2 %v1105_v12  ;;  %244 = vperm.xlu1 %1007, %v1049_v19   ;;  %v202_v12 = vrot.slane %v201_v8, 4 }
 0x224   :  { %248 = vperm.xlu2 %1008, %v1049_v19  }
 0x225   :  { %v203_v21 = vadd.f32 %v202_v12, %v201_v8  ;;  %v1125_v8 = vmov 76   ;;  %v1127_v12 = vmov 70  }
 0x227   :  { %v204_v25 = vrot.slane %v203_v21, 2 }
 0x22b   :  { %1015 = vset.pattern.permute.xlu1 %v1110_v20 }
 0x22c   :  { %1010 = vset.pattern.permute.xlu2 %v1109_v18 }
 0x264   :  { %v358_v38 = vpop.f32.mrf.mxu0 }
 0x265   :  { %v361_v39 = vsub.f32 %v334_v22, %v358_v38  ;;  %v241_v38 = vpop.permute.xlu0 %240 }
 0x267   :  { %v362_v40 = vsel %vm1209_vm2, %v361_v39, -1e+30 }
 0x268   :  { %v363_v41 = vmul.f32 1.442695, %v362_v40 }
 0x269   :  { %v329_v44 = vpop.f32.mrf.mxu1 }
 0x26a   :  { %1050 = vpow2.f32 %v363_v41 }
 0x26d   :  { %v479_v42 = vpop.permute.xlu2 %478 }
 0x26e   :  { %499 = vmatpush.msra.mxu2 %v479_v42 }
 0x270   :  { %v1051_v43 = vpop.eup %1050 }
 0x271   :  { %v365_v45 = vmul.f32 %v1051_v43, %v329_v44 }
 0x273   :  { %928 = vmatmul.msk.f32.vlgmr.msra.gmra.mxu3 %vm176_vm3, %v365_v45 }
 0x275   :  { %v237_v6 = vpop.permute.xlu2 %236 }
 0x276   :  { %v251_v41 = vsel %vm225_vm12, %v237_v6, %v241_v38  ;;  %v1123_v6 = vmov 74  }
 0x27c   :  { %v412_v46 = vpop.f32.mrf.mxu0 }
 0x27d   :  { %v415_v47 = vsub.f32 %v391_v26, %v412_v46  ;;  %v470_v48 = vpop.f32.mrf.mxu1  ;;  %v205_v26 = vadd.f32 %v204_v25, %v203_v21  ;;  %v1129_v21 = vmov 71  }
 0x27e   :  { %v473_v49 = vsub.f32 %v449_v15, %v470_v48  ;;  %v249_v11 = vpop.permute.xlu2 %248 }
 0x27f   :  { %v416_v50 = vsel %vm1209_vm2, %v415_v47, -1e+30 }
 0x280   :  { %v417_v51 = vmul.f32 1.442695, %v416_v50  ;;  %v474_v52 = vsel %vm1209_vm2, %v473_v49, -1e+30  ;;  %v1039_v49 = vld [vmem:[%s1439_s5] ss:$0 sm:$0xff] }
 0x281   :  { %v475_v53 = vmul.f32 1.442695, %v474_v52 }
 0x282   :  { %1052 = vpow2.f32 %v417_v51 }
 0x283   :  { %1054 = vpow2.f32 %v475_v53 }
 0x285   :  { %v527_v54 = vpop.f32.mrf.mxu0  ;;  %v422_v56 = vpop.permute.xlu1 %421 }
 0x286   :  { %v530_v55 = vsub.f32 %v506_v30, %v527_v54  ;;  %442 = vmatpush.msrb.mxu3 %v422_v56  ;;  %v578_v50 = vpop.f32.mrf.mxu1 }
 0x288   :  { %v1053_v57 = vpop.eup %1052  ;;  %v531_v58 = vsel %vm1209_vm2, %v530_v55, -1e+30 }
 0x289   :  { %v1055_v59 = vpop.eup %1054  ;;  %v532_v60 = vmul.f32 1.442695, %v531_v58  ;;  %v419_v61 = vmul.f32 %v1053_v57, %v329_v44  ;;  %v819_v58 = vmul.f32 %v1039_v49, %v1236_v9 }
 0x28a   :  { %v477_v62 = vmul.f32 %v1055_v59, %v329_v44 }
 0x28b   :  { %1056 = vpow2.f32 %v532_v60  ;;  %931 = vmatmul.msk.f32.vlgmr.msrb.gmra.mxu3 %vm176_vm3, %v419_v61 }
 0x28c   :  { %934 = vmatmul.msk.f32.vlgmr.msra.gmra.mxu2 %vm176_vm3, %v477_v62  ;;  %1058 = vpow2.f32 %v939_v7  ;;  %v1124_v7 = vmov 73  }
 0x28d   :  { %v536_v63 = vpop.permute.xlu1 %535 }
 0x28e   :  { %556 = vmatpush.msra.mxu3 %v536_v63 }
 0x291   :  { %v1057_v0 = vpop.eup %1056 }
 0x292   :  { %v534_v1 = vmul.f32 %v1057_v0, %v329_v44  ;;  %v1059_v19 = vpop.eup %1058 }
 0x293   :  { %v824_v22 = vadd.f32 1.0, %v1059_v19  ;;  %v1128_v19 = vmov 77  }
 0x294   :  { %937 = vmatmul.msk.f32.vlgmr.msra.gmra.mxu3 %vm176_vm3, %v534_v1  ;;  %v1118_v1 = vmov 69  }
 0x295   :  { %1060 = vrcp.f32 %v824_v22  ;;  %v245_v34 = vpop.permute.xlu1 %244  ;;  %vm830_vm0 = vweird.f32 %v824_v22  ;;  %v836_v36 = vand.u32 2147483648, %v824_v22  ;;  %v834_v40 = vand.u32 2147483647, %v824_v22 }
 0x296   :  { %v252_v42 = vsel %vm227_vm13, %v251_v41, %v245_v34  ;;  %v958_v34 = vld [vmem:[#allocation4 + $0x8] sm:$0xff] }
 0x297   :  { %v837_v45 = vor.u32 1.1754944e-38, %v836_v36  ;;  %vm835_vm8 = vcmp.eq.f32.partialorder %v834_v40, 8.507059e+37  ;;  %v253_v47 = vsel %vm229_vm14, %v252_v42, %v249_v11  ;;  %v1126_v11 = vmov 75  }
 0x298   :  { %v581_v52 = vmul.f32 %v578_v50, %v253_v47 }
 0x29b   :  { %v1061_v15 = vpop.eup %1060 }
 0x29c   :  { %v826_v29 = vmul.f32 %v1061_v15, %v824_v22  ;;  %vm831_vm2 = vweird.f32 %v1061_v15  ;;  %v1130_v22 = vmov 78  }
 0x29d   :  { %vm832_vm3 = vmor %vm830_vm0, %vm831_vm2  ;;  %vm780_vm2 = vcmask 1041408  }
 0x29e   :  { %v827_v32 = vsub.f32 1.0, %v826_v29 }
 0x2a0   :  { %v828_v35 = vmul.f32 %v1061_v15, %v827_v32 }
 0x2a2   :  { %v829_v39 = vadd.f32 %v1061_v15, %v828_v35  ;;  %v957_v35 = vld [vmem:[#allocation4] sm:$0xff] }
 0x2a4   :  { %v833_v46 = vsel %vm832_vm3, %v1061_v15, %v829_v39 }
 0x2a5   :  { %v838_v51 = vsel %vm835_vm8, %v837_v45, %v833_v46 }
 0x2a6   :  { %v840_v59 = vmul.f32 %v838_v51, %v1203_v17 }
 0x2f6   :  { %v386_v3 = vpop.f32.mrf.mxu3 }
 0x30e   :  { %v444_v4 = vpop.f32.mrf.mxu3 }
 0x30f   :  { %v501_v5 = vpop.f32.mrf.mxu2  ;;  %800 = vrot.lane.b32.xlu1 %v444_v4, %s1114_s25  ;;  %v1120_v4 = vmov 68  }
 0x310   :  { %804 = vrot.lane.b32.xlu2 %v501_v5, %s1099_s10  ;;  %v1121_v5 = vmov 79  }
 0x317   :  { %v558_v23 = vpop.f32.mrf.mxu3 }
 0x318   :  { %59 = vrot.lane.b32.xlu2 %v1203_v17, %s1097_s29  ;;  %808 = vrot.lane.b32.xlu0 %v558_v23, %s1106_s1  ;;  %v1115_v17 = vmov 65   ;;  %v1122_v23 = vmov 67  }
 0x320   :  { %255 = vrot.lane.b32.xlu2 %v1240_v10, %s1099_s10  ;;  %61 = vrot.lane.b32.xlu0 %v1188_v2, %s1097_s29  ;;  %v206_v2 = vrot.slane %v205_v26, 1 }
 0x322   :  { %v207_v30 = vadd.f32 %v206_v2, %v205_v26  ;;  %v1131_v26 = vmov 64.0   ;;  %v960_v2 = vld [vmem:[#allocation4 + $0x18] sm:$0xff] }
 0x323   :  { %906 = vmatpush.bf16.msrb.mxu2 %v960_v2 }
 0x324   :  { %v281_v56 = vmul.f32 1.442695, %v207_v30 }
 0x36a   :  { %v805_v24 = vpop.permute.xlu2 %804 }
 0x372   :  { %v1312_v10 = vpop.permute.xlu2 %59 }
 0x37a   :  { %v256_v31 = vpop.permute.xlu2 %255 }
 0x37b   :  { %v258_v33 = vsub.f32 %v207_v30, %v256_v31  ;;  %v959_v30 = vld [vmem:[#allocation4 + $0x10] sm:$0xff] }
 0x37c   :  { %907 = vmatpush.bf16.msrb.mxu2 %v959_v30 }
 0x37d   :  { %v259_v16 = vmul.f32 1.442695, %v258_v33 }
 0x37f   :  { %1062 = vpow2.f32 %v259_v16 }
 0x380   :  { %1064 = vpow2.f32 %v281_v56  ;;  %908 = vmatpush.bf16.msrb.mxu2 %v958_v34 }
 0x381   :  { %v801_v43 = vpop.permute.xlu1 %800  ;;  %1066 = vrcp.f32 %v1131_v26 }
 0x382   :  { %v811_v48 = vsel %vm225_vm12, %v386_v3, %v801_v43 }
 0x383   :  { %v812_v53 = vsel %vm227_vm13, %v811_v48, %v805_v24 }
 0x384   :  { %909 = vmatpush.bf16.msrb.mxu2 %v957_v35 }
 0x385   :  { %v1063_v44 = vpop.eup %1062 }
 0x386   :  { %267 = vperm.xlu2 %1010, %v1063_v44   ;;  %263 = vperm.xlu0 %1009, %v1063_v44   ;;  %v1065_v0 = vpop.eup %1064 }
 0x387   :  { %v1067_v15 = vpop.eup %1066 }
 0x388   :  { %v847_v29 = vmul.f32 64.0, %v1067_v15  ;;  %vm851_vm10 = vweird.f32 %v1067_v15 }
 0x38a   :  { %v809_v54 = vpop.permute.xlu0 %808  ;;  %v848_v32 = vsub.f32 1.0, %v847_v29 }
 0x38b   :  { %v813_v55 = vsel %vm229_vm14, %v812_v53, %v809_v54 }
 0x38c   :  { %v814_v57 = vadd.f32 %v813_v55, %v581_v52 }
 0x38e   :  { %v820_v60 = vadd.f32 %v819_v58, %v814_v57  ;;  %1011 = vset.pattern.permute.xlu2 %v1110_v20  ;;  %1012 = vset.pattern.permute.xlu0 %v1107_v13  ;;  %v1116_v13 = vmov 72   ;;  %v1117_v20 = vmov 64  }
 0x38f   :  { %271 = vperm.xlu2 %1011, %v1063_v44   ;;  %275 = vperm.xlu0 %1012, %v1063_v44  }
 0x390   :  { %v1327_v61 = vmul.f32 %v840_v59, %v820_v60 }
 0x392   :  { %v842_v62 = vmul.f32 %v1327_v61, %v1327_v61 }
 0x394   :  { %v843_v63 = vsel %vm49_vm1, %v842_v62, 0.0 }
 0x395   :  { %844 = vadd.xlane.f32.xlu1 %v843_v63 }
 0x397   :  { %1013 = vset.pattern.permute.xlu2 %v1108_v14  ;;  %297 = vperm.xlu0 %1012, %v1065_v0   ;;  %v1119_v14 = vmov 66  }
 0x398   :  { %285 = vperm.xlu2 %1013, %v1065_v0  }
 0x39f   :  { %1017 = vset.pattern.permute.xlu0 %v1115_v17 }
 0x3a0   :  { %1014 = vset.pattern.permute.xlu2 %v1109_v18  ;;  %596 = vperm.xlu0 %1017, %v1236_v9   ;;  %v62_v18 = vpop.permute.xlu0 %61 }
 0x3a1   :  { %289 = vperm.xlu2 %1014, %v1065_v0   ;;  %v64_v3 = vsel %vm49_vm1, %v1312_v10, %v62_v18 }
 0x3a2   :  { %67 = vst.msk [vmem:[#allocation2 - $0x5] sm:$0xe0] %vm66_vm9, %v64_v3 }
 0x3a8   :  { %1021 = vset.pattern.permute.xlu0 %v1116_v13 }
 0x3a9   :  { %1016 = vset.pattern.permute.xlu2 %v1117_v20  ;;  %680 = vperm.xlu0 %1021, %v1236_v9  }
 0x3aa   :  { %584 = vperm.xlu2 %1016, %v1236_v9  }
 0x3ae   :  { %293 = vperm.xlu1 %1015, %v1065_v0  }
 0x3b1   :  { %1026 = vset.pattern.permute.xlu0 %v1118_v1 }
 0x3b2   :  { %1018 = vset.pattern.permute.xlu2 %v1119_v14  ;;  %644 = vperm.xlu0 %1026, %v1236_v9  }
 0x3b3   :  { %608 = vperm.xlu2 %1018, %v1236_v9  }
 0x3b6   :  { %1020 = vset.pattern.permute.xlu1 %v1120_v4 }
 0x3b7   :  { %632 = vperm.xlu1 %1020, %v1236_v9  }
 0x3ba   :  { %1031 = vset.pattern.permute.xlu0 %v1121_v5 }
 0x3bb   :  { %1019 = vset.pattern.permute.xlu2 %v1122_v23  ;;  %764 = vperm.xlu0 %1031, %v1236_v9  }
 0x3bc   :  { %620 = vperm.xlu2 %1019, %v1236_v9  }
 0x3bf   :  { %1023 = vset.pattern.permute.xlu1 %v1123_v6 }
 0x3c0   :  { %704 = vperm.xlu1 %1023, %v1236_v9  }
 0x3c4   :  { %1022 = vset.pattern.permute.xlu2 %v1124_v7 }
 0x3c5   :  { %692 = vperm.xlu2 %1022, %v1236_v9  }
 0x3c8   :  { %1025 = vset.pattern.permute.xlu1 %v1125_v8 }
 0x3c9   :  { %728 = vperm.xlu1 %1025, %v1236_v9  }
 0x3cd   :  { %1024 = vset.pattern.permute.xlu2 %v1126_v11 }
 0x3ce   :  { %716 = vperm.xlu2 %1024, %v1236_v9  }
 0x3d1   :  { %1028 = vset.pattern.permute.xlu1 %v1127_v12 }
 0x3d2   :  { %656 = vperm.xlu1 %1028, %v1236_v9  }
 0x3d6   :  { %1027 = vset.pattern.permute.xlu2 %v1128_v19 }
 0x3d7   :  { %740 = vperm.xlu2 %1027, %v1236_v9  }
 0x3da   :  { %1030 = vset.pattern.permute.xlu1 %v1129_v21 }
 0x3db   :  { %668 = vperm.xlu1 %1030, %v1236_v9  }
 0x3df   :  { %1029 = vset.pattern.permute.xlu2 %v1130_v22 }
 0x3e0   :  { %752 = vperm.xlu2 %1029, %v1236_v9   ;;  %v268_v24 = vpop.permute.xlu2 %267  ;;  %v849_v9 = vmul.f32 %v1067_v15, %v848_v32 }
 0x3e2   :  { %v850_v38 = vadd.f32 %v1067_v15, %v849_v9 }
 0x3e4   :  { %v852_v40 = vsel %vm851_vm10, %v1067_v15, %v850_v38 }
 0x3e9   :  { %v272_v25 = vpop.permute.xlu2 %271 }
 0x3f2   :  { %v286_v10 = vpop.permute.xlu2 %285 }
 0x3f8   :  { %v264_v31 = vpop.permute.xlu0 %263 }
 0x3f9   :  { %v278_v55 = vsel %vm225_vm12, %v264_v31, %v268_v24 }
 0x3fa   :  { %v279_v60 = vsel %vm227_vm13, %v278_v55, %v272_v25 }
 0x3fb   :  { %v290_v33 = vpop.permute.xlu2 %289 }
 0x3fc   :  { %v1353_v16 = vsel %vm225_vm12, %v286_v10, %v290_v33  ;;  %vm778_vm12 = vcmask 1040384  }
 0x401   :  { %v276_v36 = vpop.permute.xlu0 %275 }
 0x402   :  { %v280_v63 = vsel %vm229_vm14, %v279_v60, %v276_v36 }
 0x403   :  { %v1365_v17 = vmul.f32 %v280_v63, %v1280_v37 }
 0x404   :  { %v585_v39 = vpop.permute.xlu2 %584 }
 0x408   :  { %v845_v41 = vpop.xlane.xlu1 %844 }
 0x409   :  { %v1355_v42 = vpop.permute.xlu0 %297  ;;  %v853_v43 = vmul.f32 %v852_v40, %v845_v41 }
 0x40b   :  { %v854_v44 = vadd.f32 1e-05, %v853_v43 }
 0x40d   :  { %1068 = vrsqrt.f32 %v854_v44  ;;  %v609_v45 = vpop.permute.xlu2 %608  ;;  %vm861_vm15 = vweird.f32 %v854_v44 }
 0x40e   :  { %v611_v7 = vmul.f32 %v609_v45, %v1365_v17 }
 0x410   :  { %v612_v15 = vsel %vm49_vm1, %v611_v7, 0.0 }
 0x411   :  { %v613_v38 = vrot.slane %v612_v15, 4 }
 0x412   :  { %v597_v46 = vpop.permute.xlu0 %596 }
 0x413   :  { %v1069_v47 = vpop.eup %1068  ;;  %v599_v8 = vmul.f32 %v597_v46, %v1365_v17 }
 0x414   :  { %v856_v48 = vmul.f32 %v1069_v47, %v854_v44  ;;  %vm862_vm11 = vweird.f32 %v1069_v47 }
 0x415   :  { %vm863_vm0 = vmor %vm861_vm15, %vm862_vm11  ;;  %v600_v2 = vsel %vm49_vm1, %v599_v8, 0.0 }
 0x416   :  { %v857_v49 = vmul.f32 %v1069_v47, %v856_v48  ;;  %v621_v50 = vpop.permute.xlu2 %620 }
 0x417   :  { %v623_v34 = vmul.f32 %v621_v50, %v1365_v17 }
 0x418   :  { %v858_v51 = vmul.f32 0.5, %v857_v49 }
 0x41a   :  { %v859_v52 = vsub.f32 1.5, %v858_v51 }
 0x41b   :  { %v681_v53 = vpop.permute.xlu0 %680 }
 0x41c   :  { %v860_v54 = vmul.f32 %v1069_v47, %v859_v52  ;;  %v683_v20 = vmul.f32 %v681_v53, %v1365_v17  ;;  %v1388_v53 = vadd.f32 %v613_v38, %v612_v15 }
 0x41e   :  { %v864_v56 = vsel %vm863_vm0, %v1069_v47, %v860_v54  ;;  %v684_v3 = vsel %vm49_vm1, %v683_v20, 0.0  ;;  %v624_v47 = vsel %vm49_vm1, %v623_v34, 0.0 }
 0x41f   :  { %v693_v57 = vpop.permute.xlu2 %692  ;;  %v865_v58 = vmul.f32 %v864_v56, %v1327_v61  ;;  %v587_v61 = vmul.f32 %v585_v39, %v1365_v17  ;;  %v685_v37 = vrot.slane %v684_v3, 4  ;;  %v601_v39 = vrot.slane %v600_v2, 4 }
 0x420   :  { %v1359_v59 = vpop.permute.xlu1 %293  ;;  %v695_v13 = vmul.f32 %v693_v57, %v1365_v17  ;;  %v625_v63 = vrot.slane %v624_v47, 4 }
 0x421   :  { %v866_v62 = vpack.c.bf16 %v865_v58, %v865_v58  ;;  %v588_v5 = vsel %vm49_vm1, %v587_v61, 0.0  ;;  %v686_v26 = vadd.f32 %v685_v37, %v684_v3  ;;  %v602_v50 = vadd.f32 %v601_v39, %v600_v2 }
 0x422   :  { %v696_v18 = vsel %vm49_vm1, %v695_v13, 0.0  ;;  %v589_v11 = vrot.slane %v588_v5, 4  ;;  %v301_v15 = vsel %vm227_vm13, %v1353_v16, %v1359_v59  ;;  %vm783_vm13 = vcmask 1043456  }
 0x423   :  { %956 = vmatmul.msk.bf16.vlgmr.msrb.gmra.mxu2 %vm49_vm1, %v866_v62  ;;  %v697_v23 = vrot.slane %v696_v18, 4  ;;  %v687_v40 = vrot.slane %v686_v26, 2 }
 0x424   :  { %v645_v0 = vpop.permute.xlu0 %644  ;;  %v590_v31 = vadd.f32 %v589_v11, %v588_v5 }
 0x425   :  { %v698_v22 = vadd.f32 %v697_v23, %v696_v18  ;;  %v688_v54 = vadd.f32 %v687_v40, %v686_v26  ;;  %v647_v13 = vmul.f32 %v645_v0, %v1365_v17  ;;  %v615_v0 = vrot.slane %v1388_v53, 2 }
 0x426   :  { %v591_v45 = vrot.slane %v590_v31, 2 }
 0x427   :  { %v699_v9 = vrot.slane %v698_v22, 2  ;;  %v689_v5 = vrot.slane %v688_v54, 1 }
 0x428   :  { %v717_v1 = vpop.permute.xlu2 %716 }
 0x429   :  { %v633_v14 = vpop.permute.xlu1 %632  ;;  %v719_v4 = vmul.f32 %v717_v1, %v1365_v17  ;;  %v700_v48 = vadd.f32 %v699_v9, %v698_v22 }
 0x42a   :  { %v635_v46 = vmul.f32 %v633_v14, %v1365_v17 }
 0x42b   :  { %v720_v12 = vsel %vm49_vm1, %v719_v4, 0.0  ;;  %v701_v14 = vrot.slane %v700_v48, 1  ;;  %v1396_v4 = vadd.f32 %v591_v45, %v590_v31 }
 0x42c   :  { %v721_v29 = vrot.slane %v720_v12, 4  ;;  %v636_v20 = vsel %vm49_vm1, %v635_v46, 0.0 }
 0x42d   :  { %v765_v6 = vpop.permute.xlu0 %764  ;;  %v637_v7 = vrot.slane %v636_v20, 4  ;;  %v702_v22 = vadd.f32 %v701_v14, %v700_v48  ;;  %v593_v14 = vrot.slane %v1396_v4, 1 }
 0x42e   :  { %v767_v19 = vmul.f32 %v765_v6, %v1365_v17  ;;  %v722_v41 = vadd.f32 %v721_v29, %v720_v12  ;;  %v603_v12 = vrot.slane %v602_v50, 2 }
 0x42f   :  { %v638_v31 = vadd.f32 %v637_v7, %v636_v20 }
 0x430   :  { %v768_v32 = vsel %vm49_vm1, %v767_v19, 0.0  ;;  %v723_v57 = vrot.slane %v722_v41, 2  ;;  %v626_v19 = vadd.f32 %v625_v63, %v624_v47  ;;  %v604_v9 = vadd.f32 %v603_v12, %v602_v50 }
 0x431   :  { %v741_v21 = vpop.permute.xlu2 %740  ;;  %v769_v43 = vrot.slane %v768_v32, 4  ;;  %v639_v47 = vrot.slane %v638_v31, 2 }
 0x432   :  { %v743_v24 = vmul.f32 %v741_v21, %v1365_v17  ;;  %v705_v25 = vpop.permute.xlu1 %704  ;;  %v724_v37 = vadd.f32 %v723_v57, %v722_v41  ;;  %v627_v39 = vrot.slane %v626_v19, 2  ;;  %v302_v41 = vsel %vm229_vm14, %v301_v15, %v1355_v42 }
 0x433   :  { %v707_v10 = vmul.f32 %v705_v25, %v1365_v17  ;;  %v770_v58 = vadd.f32 %v769_v43, %v768_v32  ;;  %v605_v57 = vrot.slane %v604_v9, 1  ;;  %v640_v63 = vadd.f32 %v639_v47, %v638_v31 }
 0x434   :  { %v744_v30 = vsel %vm49_vm1, %v743_v24, 0.0  ;;  %v648_v24 = vsel %vm49_vm1, %v647_v13, 0.0 }
 0x435   :  { %v708_v33 = vsel %vm49_vm1, %v707_v10, 0.0  ;;  %v745_v35 = vrot.slane %v744_v30, 4  ;;  %v771_v8 = vrot.slane %v770_v58, 2  ;;  %v690_v10 = vadd.f32 %v689_v5, %v688_v54 }
 0x436   :  { %v709_v36 = vrot.slane %v708_v33, 4  ;;  %v616_v54 = vadd.f32 %v615_v0, %v1388_v53 }
 0x437   :  { %v746_v49 = vadd.f32 %v745_v35, %v744_v30  ;;  %v725_v30 = vrot.slane %v724_v37, 1  ;;  %v772_v32 = vadd.f32 %v771_v8, %v770_v58  ;;  %v649_v35 = vrot.slane %v648_v24, 4 }
 0x438   :  { %v710_v44 = vadd.f32 %v709_v36, %v708_v33  ;;  %v788_v40 = vsel %vm778_vm12, %v690_v10, %v702_v22  ;;  %v628_v58 = vadd.f32 %v627_v39, %v626_v19  ;;  %v617_v8 = vrot.slane %v616_v54, 1 }
 0x439   :  { %v747_v61 = vrot.slane %v746_v49, 2  ;;  %v726_v46 = vadd.f32 %v725_v30, %v724_v37  ;;  %v773_v48 = vrot.slane %v772_v32, 1  ;;  %v594_v19 = vadd.f32 %v593_v14, %v1396_v4 }
 0x43a   :  { %v711_v51 = vrot.slane %v710_v44, 2  ;;  %v753_v52 = vpop.permute.xlu2 %752  ;;  %v629_v37 = vrot.slane %v628_v58, 1 }
 0x43b   :  { %v755_v55 = vmul.f32 %v753_v52, %v1365_v17  ;;  %v729_v56 = vpop.permute.xlu1 %728  ;;  %v748_v25 = vadd.f32 %v747_v61, %v746_v49  ;;  %v650_v52 = vadd.f32 %v649_v35, %v648_v24  ;;  %v774_v13 = vadd.f32 %v773_v48, %v772_v32 }
 0x43c   :  { %v712_v60 = vadd.f32 %v711_v51, %v710_v44  ;;  %v731_v62 = vmul.f32 %v729_v56, %v1365_v17  ;;  %v775_v51 = vperm.slane %v302_v41, 0  ;;  %v630_v24 = vadd.f32 %v629_v37, %v628_v58 }
 0x43d   :  { %v756_v1 = vsel %vm49_vm1, %v755_v55, 0.0  ;;  %v749_v43 = vrot.slane %v748_v25, 1 }
 0x43e   :  { %v757_v18 = vrot.slane %v756_v1, 4  ;;  %v732_v3 = vsel %vm49_vm1, %v731_v62, 0.0  ;;  %v713_v23 = vrot.slane %v712_v60, 1  ;;  %v777_v61 = vmul.f32 %v775_v51, %v1263_v27 }
 0x43f   :  { %v733_v6 = vrot.slane %v732_v3, 4  ;;  %v750_v55 = vadd.f32 %v749_v43, %v748_v25 }
 0x440   :  { %v758_v11 = vadd.f32 %v757_v18, %v756_v1  ;;  %v714_v2 = vadd.f32 %v713_v23, %v712_v60  ;;  %v651_v18 = vrot.slane %v650_v52, 2 }
 0x441   :  { %v734_v21 = vadd.f32 %v733_v6, %v732_v3  ;;  %v606_v6 = vadd.f32 %v605_v57, %v604_v9 }
 0x442   :  { %v759_v26 = vrot.slane %v758_v11, 2  ;;  %v789_v16 = vsel %vm780_vm2, %v788_v40, %v714_v2 }
 0x443   :  { %v735_v29 = vrot.slane %v734_v21, 2  ;;  %v790_v42 = vsel %vm76_vm4, %v789_v16, %v726_v46  ;;  %v779_v22 = vsel %vm778_vm12, %v594_v19, %v606_v6 }
 0x444   :  { %v760_v33 = vadd.f32 %v759_v26, %v758_v11  ;;  %v657_v34 = vpop.permute.xlu1 %656  ;;  %v641_v11 = vrot.slane %v640_v63, 1  ;;  %v618_v26 = vadd.f32 %v617_v8, %v616_v54 }
 0x445   :  { %v736_v36 = vadd.f32 %v735_v29, %v734_v21  ;;  %v659_v38 = vmul.f32 %v657_v34, %v1365_v17  ;;  %v652_v21 = vadd.f32 %v651_v18, %v650_v52 }
 0x446   :  { %v761_v59 = vrot.slane %v760_v33, 1  ;;  %v781_v29 = vsel %vm780_vm2, %v779_v22, %v618_v26 }
 0x447   :  { %v737_v44 = vrot.slane %v736_v36, 1  ;;  %v660_v45 = vsel %vm49_vm1, %v659_v38, 0.0  ;;  %v653_v15 = vrot.slane %v652_v21, 1  ;;  %v782_v30 = vsel %vm76_vm4, %v781_v29, %v630_v24 }
 0x448   :  { %v661_v49 = vrot.slane %v660_v45, 4  ;;  %v762_v60 = vadd.f32 %v761_v59, %v760_v33 }
 0x449   :  { %v738_v50 = vadd.f32 %v737_v44, %v736_v36  ;;  %v654_v33 = vadd.f32 %v653_v15, %v652_v21  ;;  %v776_v36 = vmul.f32 %v775_v51, %v1268_v28 }
 0x44a   :  { %v662_v56 = vadd.f32 %v661_v49, %v660_v45 }
 0x44b   :  { %v791_v62 = vsel %vm783_vm13, %v790_v42, %v738_v50 }
 0x44c   :  { %v792_v20 = vsel %vm116_vm7, %v791_v62, %v750_v55  ;;  %v663_v1 = vrot.slane %v662_v56, 2 }
 0x44d   :  { %v793_v53 = vsel %vm104_vm6, %v792_v20, %v762_v60  ;;  %v669_v3 = vpop.permute.xlu1 %668 }
 0x44e   :  { %v794_v5 = vsel %vm92_vm5, %v793_v53, %v774_v13  ;;  %v671_v23 = vmul.f32 %v669_v3, %v1365_v17  ;;  %v664_v0 = vadd.f32 %v663_v1, %v662_v56  ;;  %v642_v17 = vadd.f32 %v641_v11, %v640_v63 }
 0x44f   :  { %v796_v7 = vadd.f32 %v794_v5, %v777_v61 }
 0x450   :  { %v672_v12 = vsel %vm49_vm1, %v671_v23, 0.0  ;;  %v665_v10 = vrot.slane %v664_v0, 1  ;;  %v784_v4 = vsel %vm783_vm13, %v782_v30, %v642_v17 }
 0x451   :  { %798 = vst.msk [vmem:[#allocation3 + $0x8] sm:$0xff] %vm49_vm1, %v796_v7  ;;  %v673_v27 = vrot.slane %v672_v12, 4  ;;  %v785_v9 = vsel %vm116_vm7, %v784_v4, %v654_v33 }
 0x452   :  { %v666_v32 = vadd.f32 %v665_v10, %v664_v0 }
 0x453   :  { %v674_v25 = vadd.f32 %v673_v27, %v672_v12 }
 0x454   :  { %v786_v38 = vsel %vm104_vm6, %v785_v9, %v666_v32 }
 0x455   :  { %v675_v2 = vrot.slane %v674_v25, 2 }
 0x457   :  { %v676_v31 = vadd.f32 %v675_v2, %v674_v25 }
 0x459   :  { %v677_v34 = vrot.slane %v676_v31, 1 }
 0x45b   :  { %v678_v35 = vadd.f32 %v677_v34, %v676_v31 }
 0x45d   :  { %v787_v39 = vsel %vm92_vm5, %v786_v38, %v678_v35 }
 0x45e   :  { %v795_v40 = vadd.f32 %v787_v39, %v776_v36 }
 0x460   :  { %797 = vst.msk [vmem:[#allocation3] sm:$0xff] %vm49_vm1, %v795_v40 }
 0x4a6   :  { %v911_v41 = vpop.f32.mrf.mxu2 }
 0x4a7   :  { %915 = vst.msk [vmem:[%s1441_s7] sm:$0xff] %vm49_vm1, %v911_v41 }
 0x4ae   :  { %v913_v43 = vpop.f32.mrf.mxu2 }
 0x4af   :  { %920 = vsyncpa [#allocation5], 1 }

</bundles_post_ra>
